<compile_context>
chip_gen: v7x
topology: tpu7x:2x2x1
jax: 0.10.0
libtpu: 0.0.40
codegen_flags: <defaults>
</compile_context>

<pallas_src>
import functools
import math

import numpy as np
import jax
import jax.numpy as jnp
from jax.experimental import pallas as pl
from jax.experimental.pallas import tpu as pltpu


# ----------------------------- in-kernel math helpers -----------------------------

_GELU_C = math.sqrt(2.0 / math.pi)


def _gelu(x):
    # tanh-approximate GELU (EUP-friendly).
    return 0.5 * x * (1.0 + jnp.tanh(_GELU_C * (x + 0.044715 * x * x * x)))


def _layernorm(x, gamma2d, beta2d, eps):
    # x: (S, D); gamma/beta: (1, D). Statistics kept in f32.
    mu = jnp.mean(x, axis=-1, keepdims=True)
    var = jnp.mean((x - mu) ** 2, axis=-1, keepdims=True)
    return (x - mu) * jax.lax.rsqrt(var + eps) * gamma2d + beta2d


# ----------------------------------- fused kernel -----------------------------------

def fused_transformer_kernel(num_layers, nhead, eps, input_dim,
                             # inputs
                             src_ref, emb_w, emb_b, pe_ref,
                             ln1g, ln1b, wq, bq, wk, bk, wv, bv, wo, bo,
                             ln2g, ln2b, w1, b1, w2, b2,
                             hw1, hb1, hlng, hlnb, hw2, hb2,
                             # outputs / scratch
                             out_ref, x_sc):
    """grid = (batch, layer). x_sc (S, D) f32 is the resident residual stream."""
    layer = pl.program_id(1)
    bf16 = jnp.bfloat16

    # ---- embedding (tiny K -> VPU broadcast multiply-add), only at layer 0 ----
    @pl.when(layer == 0)
    def _():
        src = src_ref[0]                                     # (S, input_dim) f32
        y = pe_ref[...] + emb_b[...]                         # (S, D)
        for i in range(input_dim):                           # static unroll, input_dim tiny
            y = y + src[:, i:i + 1] * emb_w[i:i + 1, :].astype(jnp.float32)
        x_sc[...] = y

    x = x_sc[...]                                            # (S, D) f32 residual stream
    S, D = x.shape
    Dh = D // nhead
    scale = 1.0 / math.sqrt(Dh)

    def split_heads(t):                                      # (S, D) -> (H, S, Dh)
        return jnp.transpose(t.reshape(S, nhead, Dh), (1, 0, 2))

    # ---------------- self-attention sublayer (pre-norm) ----------------
    h = _layernorm(x, ln1g[...], ln1b[...], eps).astype(bf16)
    q = jnp.dot(h, wq[...], preferred_element_type=jnp.float32) + bq[...]
    k = jnp.dot(h, wk[...], preferred_element_type=jnp.float32) + bk[...]
    v = jnp.dot(h, wv[...], preferred_element_type=jnp.float32) + bv[...]

    qh = split_heads(q).astype(bf16)                         # (H, S, Dh)
    kh = split_heads(k).astype(bf16)
    vh = split_heads(v).astype(bf16)

    s = jnp.einsum('hqd,hkd->hqk', qh, kh,
                   preferred_element_type=jnp.float32) * scale      # (H, S, S) f32
    s = s - jnp.max(s, axis=-1, keepdims=True)
    p = jnp.exp(s)
    p = p * pl.reciprocal(jnp.sum(p, axis=-1, keepdims=True), approx=True)
    o = jnp.einsum('hqk,hkd->hqd', p.astype(bf16), vh,
                   preferred_element_type=jnp.float32)               # (H, S, Dh)
    o = jnp.transpose(o, (1, 0, 2)).reshape(S, D).astype(bf16)       # (S, D)
    attn = jnp.dot(o, wo[...], preferred_element_type=jnp.float32) + bo[...]
    x = x + attn

    # ---------------- feed-forward sublayer (pre-norm) ----------------
    h2 = _layernorm(x, ln2g[...], ln2b[...], eps).astype(bf16)
    y = jnp.dot(h2, w1[...], preferred_element_type=jnp.float32) + b1[...]
    y = _gelu(y).astype(bf16)
    y = jnp.dot(y, w2[...], preferred_element_type=jnp.float32) + b2[...]
    x = x + y
    x_sc[...] = x

    # ---------------- output head, only at the last layer ----------------
    @pl.when(layer == num_layers - 1)
    def _():
        z = jnp.dot(x.astype(bf16), hw1[...],
                    preferred_element_type=jnp.float32) + hb1[...]
        z = _layernorm(z, hlng[...], hlnb[...], eps)
        z = _gelu(z).astype(bf16)
        z = jnp.dot(z, hw2[...], preferred_element_type=jnp.float32) + hb2[...]
        out_ref[0] = z                                        # lane-dense padded store


# ------------------------------- pallas_call wrapper -------------------------------

_LAYER_NAMES = ["ln1_g", "ln1_b", "wq", "bq", "wk", "bk", "wv", "bv",
                "wo", "bo", "ln2_g", "ln2_b", "w1", "b1", "w2", "b2"]


def transformer_forward(params, src, pe, nhead, eps):
    B, S, input_dim = src.shape
    D = pe.shape[-1]
    layers = params["layers"]
    L = len(layers)
    ep, hp = params["embed"], params["head"]

    # Stack per-layer params with a leading layer axis (streamed by the layer grid axis).
    stacked = [jnp.stack([lp[n] for lp in layers], axis=0) for n in _LAYER_NAMES]

    # Lane-dense final projection: pad output columns up to a multiple of 128.
    out_dim = hp["w2"].shape[1]
    out_pad = max(128, ((out_dim + 127) // 128) * 128)
    hw2 = jnp.zeros((hp["w2"].shape[0], out_pad), hp["w2"].dtype).at[:, :out_dim].set(hp["w2"])
    hb2 = jnp.zeros((1, out_pad), jnp.float32).at[:, :out_dim].set(hp["b2"])

    const_params = [ep["w"], ep["b"], pe]
    head_params = [hp["w1"], hp["b1"], hp["ln_g"], hp["ln_b"], hw2, hb2]

    def const_spec(a):
        return pl.BlockSpec(a.shape, lambda b, l, _n=a.ndim: (0,) * _n)

    def layer_spec(a):
        return pl.BlockSpec((None,) + tuple(a.shape[1:]),
                            lambda b, l, _n=a.ndim: (l,) + (0,) * (_n - 1))

    in_specs = (
        [pl.BlockSpec((1, S, input_dim), lambda b, l: (b, 0, 0))]
        + [const_spec(a) for a in const_params]
        + [layer_spec(a) for a in stacked]
        + [const_spec(a) for a in head_params]
    )

    kern = functools.partial(fused_transformer_kernel, L, nhead, eps, input_dim)
    out = pl.pallas_call(
        kern,
        out_shape=jax.ShapeDtypeStruct((B, S, out_pad), jnp.float32),
        grid=(B, L),
        in_specs=in_specs,
        # Output block index constant along the layer axis -> stays resident in VMEM,
        # written back only when the batch index changes / at the end.
        out_specs=pl.BlockSpec((1, S, out_pad), lambda b, l: (b, 0, 0)),
        scratch_shapes=[pltpu.VMEM((S, D), jnp.float32)],     # resident residual stream
        compiler_params=pltpu.CompilerParams(
            dimension_semantics=("parallel", "arbitrary")),
        # NOTE: for large d_model / dim_feedforward, set vmem_limit_bytes here and
        # re-derive the double-buffered weight footprint per chip (64 MiB on v7x).
    )(src, *const_params, *stacked, *head_params)
    return out[:, :, :out_dim]


# --------------------------------- pure-JAX reference --------------------------------

def ref_forward(params, src, pe, nhead, eps):
    bf16 = jnp.bfloat16
    ep = params["embed"]
    x = src @ ep["w"].astype(jnp.float32) + ep["b"] + pe[None]
    B, S, D = x.shape
    Dh = D // nhead
    scale = 1.0 / math.sqrt(Dh)

    def ln(t, g, b):
        mu = jnp.mean(t, axis=-1, keepdims=True)
        var = jnp.mean((t - mu) ** 2, axis=-1, keepdims=True)
        return (t - mu) * jax.lax.rsqrt(var + eps) * g + b

    def mm(a, w):  # bf16 matmul inputs, f32 accumulation (matches kernel numerics)
        return jnp.einsum('bsd,de->bse', a.astype(bf16), w,
                          preferred_element_type=jnp.float32)

    for lp in params["layers"]:
        h = ln(x, lp["ln1_g"], lp["ln1_b"])
        q = (mm(h, lp["wq"]) + lp["bq"]).reshape(B, S, nhead, Dh)
        k = (mm(h, lp["wk"]) + lp["bk"]).reshape(B, S, nhead, Dh)
        v = (mm(h, lp["wv"]) + lp["bv"]).reshape(B, S, nhead, Dh)
        s = jnp.einsum('bqhd,bkhd->bhqk', q.astype(bf16), k.astype(bf16),
                       preferred_element_type=jnp.float32) * scale
        p = jax.nn.softmax(s, axis=-1)
        o = jnp.einsum('bhqk,bkhd->bqhd', p.astype(bf16), v.astype(bf16),
                       preferred_element_type=jnp.float32).reshape(B, S, D)
        x = x + (mm(o, lp["wo"]) + lp["bo"])
        h2 = ln(x, lp["ln2_g"], lp["ln2_b"])
        y = mm(h2, lp["w1"]) + lp["b1"]
        y = mm(_gelu(y), lp["w2"]) + lp["b2"]
        x = x + y

    hp = params["head"]
    z = mm(x, hp["w1"]) + hp["b1"]
    z = ln(z, hp["ln_g"], hp["ln_b"])
    z = _gelu(z)
    return mm(z, hp["w2"]) + hp["b2"]


# ------------------------------------ setup ------------------------------------------

def sinusoidal_pe(seq_len, d_model):
    pos = np.arange(seq_len, dtype=np.float64)[:, None]
    i = np.arange(d_model, dtype=np.float64)[None, :]
    angle = pos / np.power(10000.0, (2.0 * (i // 2)) / d_model)
    pe = np.zeros((seq_len, d_model), np.float32)
    pe[:, 0::2] = np.sin(angle[:, 0::2])
    pe[:, 1::2] = np.cos(angle[:, 1::2])
    return jnp.asarray(pe)


def init_params(key, input_dim, d_model, nhead, num_layers, dim_ff, output_dim):
    assert d_model % nhead == 0, "d_model must be divisible by nhead"
    keys = iter(jax.random.split(key, 2 + 12 * num_layers + 4))

    def w(shape, scale=0.05):   # matmul weights stored bf16 (MXU-native, half HBM traffic)
        return (scale * jax.random.normal(next(keys), shape, jnp.float32)).astype(jnp.bfloat16)

    def b(shape, scale=0.05):   # biases stay f32 (added to f32 accumulators)
        return scale * jax.random.normal(next(keys), shape, jnp.float32)

    params = {"embed": {"w": w((input_dim, d_model)), "b": b((1, d_model))}, "layers": []}
    for _ in range(num_layers):
        params["layers"].append({
            "ln1_g": jnp.ones((1, d_model), jnp.float32),
            "ln1_b": jnp.zeros((1, d_model), jnp.float32),
            "wq": w((d_model, d_model)), "bq": b((1, d_model)),
            "wk": w((d_model, d_model)), "bk": b((1, d_model)),
            "wv": w((d_model, d_model)), "bv": b((1, d_model)),
            "wo": w((d_model, d_model)), "bo": b((1, d_model)),
            "ln2_g": jnp.ones((1, d_model), jnp.float32),
            "ln2_b": jnp.zeros((1, d_model), jnp.float32),
            "w1": w((d_model, dim_ff)), "b1": b((1, dim_ff)),
            "w2": w((dim_ff, d_model)), "b2": b((1, d_model)),
        })
    dh = d_model // 2
    params["head"] = {
        "w1": w((d_model, dh)), "b1": b((1, dh)),
        "ln_g": jnp.ones((1, dh), jnp.float32),
        "ln_b": jnp.zeros((1, dh), jnp.float32),
        "w2": w((dh, output_dim)), "b2": b((1, output_dim)),
    }
    return params


if __name__ == "__main__":
    # Small, self-consistent config (scaled-down defaults of the PyTorch module).
    B, S = 2, 16
    INPUT_DIM, OUTPUT_DIM = 1, 4
    D_MODEL, NHEAD, NUM_LAYERS, DIM_FF = 128, 4, 2, 256
    EPS = 1e-5

    root = jax.random.PRNGKey(0)
    k_param, k_src = jax.random.split(root)
    params = init_params(k_param, INPUT_DIM, D_MODEL, NHEAD, NUM_LAYERS, DIM_FF, OUTPUT_DIM)
    pe = sinusoidal_pe(S, D_MODEL)
    src = jax.random.normal(k_src, (B, S, INPUT_DIM), jnp.float32)

    out = jax.block_until_ready(transformer_forward(params, src, pe, NHEAD, EPS))
    ref = jax.block_until_ready(ref_forward(params, src, pe, NHEAD, EPS))

    assert out.shape == (B, S, OUTPUT_DIM), out.shape
    # Kernel and reference share bf16-matmul numerics; residual difference comes from
    # the approximate softmax reciprocal and accumulation ordering.
    assert np.allclose(np.asarray(out), np.asarray(ref), atol=3e-3, rtol=3e-3), (
        float(np.max(np.abs(np.asarray(out) - np.asarray(ref)))))

    print("KERNEL_OK")
</pallas_src>

<mosaic_0001>
module attributes {stable_mosaic.version = 11 : i64} {
  func.func @fused_transformer_kernel(%arg0: i32, %arg1: i32, %arg2: memref<1x16x1xf32, #tpu.memory_space<vmem>>, %arg3: memref<1x128xbf16, #tpu.memory_space<vmem>>, %arg4: memref<1x128xf32, #tpu.memory_space<vmem>>, %arg5: memref<16x128xf32, #tpu.memory_space<vmem>>, %arg6: memref<1x1x128xf32, #tpu.memory_space<vmem>>, %arg7: memref<1x1x128xf32, #tpu.memory_space<vmem>>, %arg8: memref<1x128x128xbf16, #tpu.memory_space<vmem>>, %arg9: memref<1x1x128xf32, #tpu.memory_space<vmem>>, %arg10: memref<1x128x128xbf16, #tpu.memory_space<vmem>>, %arg11: memref<1x1x128xf32, #tpu.memory_space<vmem>>, %arg12: memref<1x128x128xbf16, #tpu.memory_space<vmem>>, %arg13: memref<1x1x128xf32, #tpu.memory_space<vmem>>, %arg14: memref<1x128x128xbf16, #tpu.memory_space<vmem>>, %arg15: memref<1x1x128xf32, #tpu.memory_space<vmem>>, %arg16: memref<1x1x128xf32, #tpu.memory_space<vmem>>, %arg17: memref<1x1x128xf32, #tpu.memory_space<vmem>>, %arg18: memref<1x128x256xbf16, #tpu.memory_space<vmem>>, %arg19: memref<1x1x256xf32, #tpu.memory_space<vmem>>, %arg20: memref<1x256x128xbf16, #tpu.memory_space<vmem>>, %arg21: memref<1x1x128xf32, #tpu.memory_space<vmem>>, %arg22: memref<128x64xbf16, #tpu.memory_space<vmem>>, %arg23: memref<1x64xf32, #tpu.memory_space<vmem>>, %arg24: memref<1x64xf32, #tpu.memory_space<vmem>>, %arg25: memref<1x64xf32, #tpu.memory_space<vmem>>, %arg26: memref<64x128xbf16, #tpu.memory_space<vmem>>, %arg27: memref<1x128xf32, #tpu.memory_space<vmem>>, %arg28: memref<1x16x128xf32, #tpu.memory_space<vmem>>, %arg29: memref<16x128xf32, #tpu.memory_space<vmem>>) attributes {dimension_semantics = [#tpu.dimension_semantics<parallel>, #tpu.dimension_semantics<arbitrary>], iteration_bounds = array<i64: 2, 2>, scalar_prefetch = 0 : i64, scratch_operands = 1 : i64, tpu.core_type = #tpu.core_type<tc>, window_params = [{transform_indices = @transform_0, window_bounds = array<i64: 1, 16, 1>}, {pipeline_mode = #tpu.pipeline_mode<synchronous>, transform_indices = @transform_1, window_bounds = array<i64: 1, 128>}, {pipeline_mode = #tpu.pipeline_mode<synchronous>, transform_indices = @transform_2, window_bounds = array<i64: 1, 128>}, {pipeline_mode = #tpu.pipeline_mode<synchronous>, transform_indices = @transform_3, window_bounds = array<i64: 16, 128>}, {transform_indices = @transform_4, window_bounds = array<i64: 1, 1, 128>}, {transform_indices = @transform_5, window_bounds = array<i64: 1, 1, 128>}, {transform_indices = @transform_6, window_bounds = array<i64: 1, 128, 128>}, {transform_indices = @transform_7, window_bounds = array<i64: 1, 1, 128>}, {transform_indices = @transform_8, window_bounds = array<i64: 1, 128, 128>}, {transform_indices = @transform_9, window_bounds = array<i64: 1, 1, 128>}, {transform_indices = @transform_10, window_bounds = array<i64: 1, 128, 128>}, {transform_indices = @transform_11, window_bounds = array<i64: 1, 1, 128>}, {transform_indices = @transform_12, window_bounds = array<i64: 1, 128, 128>}, {transform_indices = @transform_13, window_bounds = array<i64: 1, 1, 128>}, {transform_indices = @transform_14, window_bounds = array<i64: 1, 1, 128>}, {transform_indices = @transform_15, window_bounds = array<i64: 1, 1, 128>}, {transform_indices = @transform_16, window_bounds = array<i64: 1, 128, 256>}, {transform_indices = @transform_17, window_bounds = array<i64: 1, 1, 256>}, {transform_indices = @transform_18, window_bounds = array<i64: 1, 256, 128>}, {transform_indices = @transform_19, window_bounds = array<i64: 1, 1, 128>}, {pipeline_mode = #tpu.pipeline_mode<synchronous>, transform_indices = @transform_20, window_bounds = array<i64: 128, 64>}, {pipeline_mode = #tpu.pipeline_mode<synchronous>, transform_indices = @transform_21, window_bounds = array<i64: 1, 64>}, {pipeline_mode = #tpu.pipeline_mode<synchronous>, transform_indices = @transform_22, window_bounds = array<i64: 1, 64>}, {pipeline_mode = #tpu.pipeline_mode<synchronous>, transform_indices = @transform_23, window_bounds = array<i64: 1, 64>}, {pipeline_mode = #tpu.pipeline_mode<synchronous>, transform_indices = @transform_24, window_bounds = array<i64: 64, 128>}, {pipeline_mode = #tpu.pipeline_mode<synchronous>, transform_indices = @transform_25, window_bounds = array<i64: 1, 128>}, {transform_indices = @transform_26, window_bounds = array<i64: 1, 16, 128>}]} {
    %c0_i32 = arith.constant 0 : i32
    %0 = arith.cmpi eq, %arg1, %c0_i32 : i32
    %1 = arith.extui %0 : i1 to i32
    %c0_i32_0 = arith.constant 0 : i32
    %2 = arith.cmpi ne, %1, %c0_i32_0 : i32
    scf.if %2 {
      %c0_77 = arith.constant 0 : index
      %c0_78 = arith.constant 0 : index
      %c0_79 = arith.constant 0 : index
      %147 = vector.load %arg2[%c0_77, %c0_78, %c0_79] : memref<1x16x1xf32, #tpu.memory_space<vmem>>, vector<1x16x1xf32>
      %148 = vector.shape_cast %147 : vector<1x16x1xf32> to vector<16x1xf32>
      %c0_80 = arith.constant 0 : index
      %c0_81 = arith.constant 0 : index
      %149 = vector.load %arg5[%c0_80, %c0_81] : memref<16x128xf32, #tpu.memory_space<vmem>>, vector<16x128xf32>
      %c0_82 = arith.constant 0 : index
      %c0_83 = arith.constant 0 : index
      %150 = vector.load %arg4[%c0_82, %c0_83] : memref<1x128xf32, #tpu.memory_space<vmem>>, vector<1x128xf32>
      %151 = vector.broadcast %150 : vector<1x128xf32> to vector<16x128xf32>
      %152 = arith.addf %149, %151 : vector<16x128xf32>
      %c0_84 = arith.constant 0 : index
      %c0_85 = arith.constant 0 : index
      %153 = vector.load %arg3[%c0_84, %c0_85] : memref<1x128xbf16, #tpu.memory_space<vmem>>, vector<1x128xbf16>
      %154 = arith.extf %153 : vector<1x128xbf16> to vector<1x128xf32>
      %155 = vector.broadcast %148 : vector<16x1xf32> to vector<16x128xf32>
      %156 = vector.broadcast %154 : vector<1x128xf32> to vector<16x128xf32>
      %157 = arith.mulf %155, %156 : vector<16x128xf32>
      %158 = arith.addf %152, %157 : vector<16x128xf32>
      %c0_86 = arith.constant 0 : index
      %c0_87 = arith.constant 0 : index
      %159 = vector.load %arg29[%c0_86, %c0_87] : memref<16x128xf32, #tpu.memory_space<vmem>>, vector<16x128xf32>
      tpu.vector_store %arg29[%c0_86, %c0_87], %158 {strides = array<i32>} : memref<16x128xf32, #tpu.memory_space<vmem>>, vector<16x128xf32>,
    } else {
    }
    %c0 = arith.constant 0 : index
    %c0_1 = arith.constant 0 : index
    %3 = vector.load %arg29[%c0, %c0_1] : memref<16x128xf32, #tpu.memory_space<vmem>>, vector<16x128xf32>
    %c0_2 = arith.constant 0 : index
    %c0_3 = arith.constant 0 : index
    %c0_4 = arith.constant 0 : index
    %4 = vector.load %arg6[%c0_2, %c0_3, %c0_4] : memref<1x1x128xf32, #tpu.memory_space<vmem>>, vector<1x1x128xf32>
    %5 = vector.shape_cast %4 : vector<1x1x128xf32> to vector<1x128xf32>
    %c0_5 = arith.constant 0 : index
    %c0_6 = arith.constant 0 : index
    %c0_7 = arith.constant 0 : index
    %6 = vector.load %arg7[%c0_5, %c0_6, %c0_7] : memref<1x1x128xf32, #tpu.memory_space<vmem>>, vector<1x1x128xf32>
    %7 = vector.shape_cast %6 : vector<1x1x128xf32> to vector<1x128xf32>
    %cst = arith.constant dense<0.000000e+00> : vector<16xf32>
    %8 = vector.multi_reduction <add>, %3, %cst [1] : vector<16x128xf32> to vector<16xf32>
    %9 = vector.shape_cast %8 : vector<16xf32> to vector<16x1xf32>
    %cst_8 = arith.constant 1.280000e+02 : f32
    %10 = vector.broadcast %cst_8 : f32 to vector<16x1xf32>
    %11 = arith.divf %9, %10 : vector<16x1xf32>
    %12 = vector.broadcast %11 : vector<16x1xf32> to vector<16x128xf32>
    %13 = arith.subf %3, %12 : vector<16x128xf32>
    %14 = arith.mulf %13, %13 : vector<16x128xf32>
    %cst_9 = arith.constant dense<0.000000e+00> : vector<16xf32>
    %15 = vector.multi_reduction <add>, %14, %cst_9 [1] : vector<16x128xf32> to vector<16xf32>
    %16 = vector.shape_cast %15 : vector<16xf32> to vector<16x1xf32>
    %cst_10 = arith.constant 1.280000e+02 : f32
    %17 = vector.broadcast %cst_10 : f32 to vector<16x1xf32>
    %18 = arith.divf %16, %17 : vector<16x1xf32>
    %19 = vector.broadcast %11 : vector<16x1xf32> to vector<16x128xf32>
    %20 = arith.subf %3, %19 : vector<16x128xf32>
    %cst_11 = arith.constant 9.99999974E-6 : f32
    %21 = vector.broadcast %cst_11 : f32 to vector<16x1xf32>
    %22 = arith.addf %18, %21 : vector<16x1xf32>
    %23 = math.rsqrt %22 : vector<16x1xf32>
    %24 = vector.broadcast %23 : vector<16x1xf32> to vector<16x128xf32>
    %25 = arith.mulf %20, %24 : vector<16x128xf32>
    %26 = vector.broadcast %5 : vector<1x128xf32> to vector<16x128xf32>
    %27 = arith.mulf %25, %26 : vector<16x128xf32>
    %28 = vector.broadcast %7 : vector<1x128xf32> to vector<16x128xf32>
    %29 = arith.addf %27, %28 : vector<16x128xf32>
    %30 = arith.truncf %29 : vector<16x128xf32> to vector<16x128xbf16>
    %c0_12 = arith.constant 0 : index
    %c0_13 = arith.constant 0 : index
    %c0_14 = arith.constant 0 : index
    %31 = vector.load %arg8[%c0_12, %c0_13, %c0_14] : memref<1x128x128xbf16, #tpu.memory_space<vmem>>, vector<1x128x128xbf16>
    %32 = vector.shape_cast %31 : vector<1x128x128xbf16> to vector<128x128xbf16>
    %cst_15 = arith.constant dense<0.000000e+00> : vector<16x128xf32>
    %33 = tpu.matmul %30, %32, %cst_15 {dimension_numbers = #tpu.dot_dimension_numbers<[1], [0], [0], [1], [0, 0, 1, 1], [], []>} : vector<16x128xbf16>, vector<128x128xbf16>, vector<16x128xf32> -> vector<16x128xf32>
    %c0_16 = arith.constant 0 : index
    %c0_17 = arith.constant 0 : index
    %c0_18 = arith.constant 0 : index
    %34 = vector.load %arg9[%c0_16, %c0_17, %c0_18] : memref<1x1x128xf32, #tpu.memory_space<vmem>>, vector<1x1x128xf32>
    %35 = vector.shape_cast %34 : vector<1x1x128xf32> to vector<1x128xf32>
    %36 = vector.broadcast %35 : vector<1x128xf32> to vector<16x128xf32>
    %37 = arith.addf %33, %36 : vector<16x128xf32>
    %c0_19 = arith.constant 0 : index
    %c0_20 = arith.constant 0 : index
    %c0_21 = arith.constant 0 : index
    %38 = vector.load %arg10[%c0_19, %c0_20, %c0_21] : memref<1x128x128xbf16, #tpu.memory_space<vmem>>, vector<1x128x128xbf16>
    %39 = vector.shape_cast %38 : vector<1x128x128xbf16> to vector<128x128xbf16>
    %cst_22 = arith.constant dense<0.000000e+00> : vector<16x128xf32>
    %40 = tpu.matmul %30, %39, %cst_22 {dimension_numbers = #tpu.dot_dimension_numbers<[1], [0], [0], [1], [0, 0, 1, 1], [], []>} : vector<16x128xbf16>, vector<128x128xbf16>, vector<16x128xf32> -> vector<16x128xf32>
    %c0_23 = arith.constant 0 : index
    %c0_24 = arith.constant 0 : index
    %c0_25 = arith.constant 0 : index
    %41 = vector.load %arg11[%c0_23, %c0_24, %c0_25] : memref<1x1x128xf32, #tpu.memory_space<vmem>>, vector<1x1x128xf32>
    %42 = vector.shape_cast %41 : vector<1x1x128xf32> to vector<1x128xf32>
    %43 = vector.broadcast %42 : vector<1x128xf32> to vector<16x128xf32>
    %44 = arith.addf %40, %43 : vector<16x128xf32>
    %c0_26 = arith.constant 0 : index
    %c0_27 = arith.constant 0 : index
    %c0_28 = arith.constant 0 : index
    %45 = vector.load %arg12[%c0_26, %c0_27, %c0_28] : memref<1x128x128xbf16, #tpu.memory_space<vmem>>, vector<1x128x128xbf16>
    %46 = vector.shape_cast %45 : vector<1x128x128xbf16> to vector<128x128xbf16>
    %cst_29 = arith.constant dense<0.000000e+00> : vector<16x128xf32>
    %47 = tpu.matmul %30, %46, %cst_29 {dimension_numbers = #tpu.dot_dimension_numbers<[1], [0], [0], [1], [0, 0, 1, 1], [], []>} : vector<16x128xbf16>, vector<128x128xbf16>, vector<16x128xf32> -> vector<16x128xf32>
    %c0_30 = arith.constant 0 : index
    %c0_31 = arith.constant 0 : index
    %c0_32 = arith.constant 0 : index
    %48 = vector.load %arg13[%c0_30, %c0_31, %c0_32] : memref<1x1x128xf32, #tpu.memory_space<vmem>>, vector<1x1x128xf32>
    %49 = vector.shape_cast %48 : vector<1x1x128xf32> to vector<1x128xf32>
    %50 = vector.broadcast %49 : vector<1x128xf32> to vector<16x128xf32>
    %51 = arith.addf %47, %50 : vector<16x128xf32>
    %52 = vector.shape_cast %37 : vector<16x128xf32> to vector<16x4x32xf32>
    %53 = tpu.transpose %52, [1, 0, 2] : vector<16x4x32xf32> -> vector<4x16x32xf32>
    %54 = arith.truncf %53 : vector<4x16x32xf32> to vector<4x16x32xbf16>
    %55 = vector.shape_cast %44 : vector<16x128xf32> to vector<16x4x32xf32>
    %56 = tpu.transpose %55, [1, 0, 2] : vector<16x4x32xf32> -> vector<4x16x32xf32>
    %57 = arith.truncf %56 : vector<4x16x32xf32> to vector<4x16x32xbf16>
    %58 = vector.shape_cast %51 : vector<16x128xf32> to vector<16x4x32xf32>
    %59 = tpu.transpose %58, [1, 0, 2] : vector<16x4x32xf32> -> vector<4x16x32xf32>
    %60 = arith.truncf %59 : vector<4x16x32xf32> to vector<4x16x32xbf16>
    "tpu.trace_start"() <{level = 10 : i32, message = "hqd,hkd->hqk"}> : () -> ()
    %cst_33 = arith.constant dense<0.000000e+00> : vector<4x16x16xf32>
    %61 = tpu.matmul %54, %57, %cst_33 {dimension_numbers = #tpu.dot_dimension_numbers<[2], [2], [1], [1], [0, 0, 0, 1, 1, 1], [0], [0]>} : vector<4x16x32xbf16>, vector<4x16x32xbf16>, vector<4x16x16xf32> -> vector<4x16x16xf32>
    "tpu.trace_stop"() : () -> ()
    %cst_34 = arith.constant 0.176776692 : f32
    %62 = vector.broadcast %cst_34 : f32 to vector<4x16x16xf32>
    %63 = arith.mulf %61, %62 : vector<4x16x16xf32>
    %cst_35 = arith.constant dense<0xFF800000> : vector<4x16xf32>
    %64 = vector.multi_reduction <maximumf>, %63, %cst_35 [2] : vector<4x16x16xf32> to vector<4x16xf32>
    %65 = vector.shape_cast %64 : vector<4x16xf32> to vector<4x16x1xf32>
    %66 = vector.broadcast %65 : vector<4x16x1xf32> to vector<4x16x16xf32>
    %67 = arith.subf %63, %66 : vector<4x16x16xf32>
    %68 = math.exp %67 : vector<4x16x16xf32>
    %cst_36 = arith.constant dense<0.000000e+00> : vector<4x16xf32>
    %69 = vector.multi_reduction <add>, %68, %cst_36 [2] : vector<4x16x16xf32> to vector<4x16xf32>
    %70 = vector.shape_cast %69 : vector<4x16xf32> to vector<4x16x1xf32>
    %71 = tpu.reciprocal %70 {approx = true} : vector<4x16x1xf32> -> vector<4x16x1xf32>
    %72 = vector.broadcast %71 : vector<4x16x1xf32> to vector<4x16x16xf32>
    %73 = arith.mulf %68, %72 : vector<4x16x16xf32>
    %74 = arith.truncf %73 : vector<4x16x16xf32> to vector<4x16x16xbf16>
    "tpu.trace_start"() <{level = 10 : i32, message = "hqk,hkd->hqd"}> : () -> ()
    %cst_37 = arith.constant dense<0.000000e+00> : vector<4x16x32xf32>
    %75 = tpu.matmul %74, %60, %cst_37 {dimension_numbers = #tpu.dot_dimension_numbers<[2], [1], [1], [2], [0, 0, 0, 1, 1, 2], [0], [0]>} : vector<4x16x16xbf16>, vector<4x16x32xbf16>, vector<4x16x32xf32> -> vector<4x16x32xf32>
    "tpu.trace_stop"() : () -> ()
    %76 = tpu.transpose %75, [1, 0, 2] : vector<4x16x32xf32> -> vector<16x4x32xf32>
    %77 = vector.shape_cast %76 : vector<16x4x32xf32> to vector<16x128xf32>
    %78 = arith.truncf %77 : vector<16x128xf32> to vector<16x128xbf16>
    %c0_38 = arith.constant 0 : index
    %c0_39 = arith.constant 0 : index
    %c0_40 = arith.constant 0 : index
    %79 = vector.load %arg14[%c0_38, %c0_39, %c0_40] : memref<1x128x128xbf16, #tpu.memory_space<vmem>>, vector<1x128x128xbf16>
    %80 = vector.shape_cast %79 : vector<1x128x128xbf16> to vector<128x128xbf16>
    %cst_41 = arith.constant dense<0.000000e+00> : vector<16x128xf32>
    %81 = tpu.matmul %78, %80, %cst_41 {dimension_numbers = #tpu.dot_dimension_numbers<[1], [0], [0], [1], [0, 0, 1, 1], [], []>} : vector<16x128xbf16>, vector<128x128xbf16>, vector<16x128xf32> -> vector<16x128xf32>
    %c0_42 = arith.constant 0 : index
    %c0_43 = arith.constant 0 : index
    %c0_44 = arith.constant 0 : index
    %82 = vector.load %arg15[%c0_42, %c0_43, %c0_44] : memref<1x1x128xf32, #tpu.memory_space<vmem>>, vector<1x1x128xf32>
    %83 = vector.shape_cast %82 : vector<1x1x128xf32> to vector<1x128xf32>
    %84 = vector.broadcast %83 : vector<1x128xf32> to vector<16x128xf32>
    %85 = arith.addf %81, %84 : vector<16x128xf32>
    %86 = arith.addf %3, %85 : vector<16x128xf32>
    %c0_45 = arith.constant 0 : index
    %c0_46 = arith.constant 0 : index
    %c0_47 = arith.constant 0 : index
    %87 = vector.load %arg16[%c0_45, %c0_46, %c0_47] : memref<1x1x128xf32, #tpu.memory_space<vmem>>, vector<1x1x128xf32>
    %88 = vector.shape_cast %87 : vector<1x1x128xf32> to vector<1x128xf32>
    %c0_48 = arith.constant 0 : index
    %c0_49 = arith.constant 0 : index
    %c0_50 = arith.constant 0 : index
    %89 = vector.load %arg17[%c0_48, %c0_49, %c0_50] : memref<1x1x128xf32, #tpu.memory_space<vmem>>, vector<1x1x128xf32>
    %90 = vector.shape_cast %89 : vector<1x1x128xf32> to vector<1x128xf32>
    %cst_51 = arith.constant dense<0.000000e+00> : vector<16xf32>
    %91 = vector.multi_reduction <add>, %86, %cst_51 [1] : vector<16x128xf32> to vector<16xf32>
    %92 = vector.shape_cast %91 : vector<16xf32> to vector<16x1xf32>
    %cst_52 = arith.constant 1.280000e+02 : f32
    %93 = vector.broadcast %cst_52 : f32 to vector<16x1xf32>
    %94 = arith.divf %92, %93 : vector<16x1xf32>
    %95 = vector.broadcast %94 : vector<16x1xf32> to vector<16x128xf32>
    %96 = arith.subf %86, %95 : vector<16x128xf32>
    %97 = arith.mulf %96, %96 : vector<16x128xf32>
    %cst_53 = arith.constant dense<0.000000e+00> : vector<16xf32>
    %98 = vector.multi_reduction <add>, %97, %cst_53 [1] : vector<16x128xf32> to vector<16xf32>
    %99 = vector.shape_cast %98 : vector<16xf32> to vector<16x1xf32>
    %cst_54 = arith.constant 1.280000e+02 : f32
    %100 = vector.broadcast %cst_54 : f32 to vector<16x1xf32>
    %101 = arith.divf %99, %100 : vector<16x1xf32>
    %102 = vector.broadcast %94 : vector<16x1xf32> to vector<16x128xf32>
    %103 = arith.subf %86, %102 : vector<16x128xf32>
    %cst_55 = arith.constant 9.99999974E-6 : f32
    %104 = vector.broadcast %cst_55 : f32 to vector<16x1xf32>
    %105 = arith.addf %101, %104 : vector<16x1xf32>
    %106 = math.rsqrt %105 : vector<16x1xf32>
    %107 = vector.broadcast %106 : vector<16x1xf32> to vector<16x128xf32>
    %108 = arith.mulf %103, %107 : vector<16x128xf32>
    %109 = vector.broadcast %88 : vector<1x128xf32> to vector<16x128xf32>
    %110 = arith.mulf %108, %109 : vector<16x128xf32>
    %111 = vector.broadcast %90 : vector<1x128xf32> to vector<16x128xf32>
    %112 = arith.addf %110, %111 : vector<16x128xf32>
    %113 = arith.truncf %112 : vector<16x128xf32> to vector<16x128xbf16>
    %c0_56 = arith.constant 0 : index
    %c0_57 = arith.constant 0 : index
    %c0_58 = arith.constant 0 : index
    %114 = vector.load %arg18[%c0_56, %c0_57, %c0_58] : memref<1x128x256xbf16, #tpu.memory_space<vmem>>, vector<1x128x256xbf16>
    %115 = vector.shape_cast %114 : vector<1x128x256xbf16> to vector<128x256xbf16>
    %cst_59 = arith.constant dense<0.000000e+00> : vector<16x256xf32>
    %116 = tpu.matmul %113, %115, %cst_59 {dimension_numbers = #tpu.dot_dimension_numbers<[1], [0], [0], [1], [0, 0, 1, 1], [], []>} : vector<16x128xbf16>, vector<128x256xbf16>, vector<16x256xf32> -> vector<16x256xf32>
    %c0_60 = arith.constant 0 : index
    %c0_61 = arith.constant 0 : index
    %c0_62 = arith.constant 0 : index
    %117 = vector.load %arg19[%c0_60, %c0_61, %c0_62] : memref<1x1x256xf32, #tpu.memory_space<vmem>>, vector<1x1x256xf32>
    %118 = vector.shape_cast %117 : vector<1x1x256xf32> to vector<1x256xf32>
    %119 = vector.broadcast %118 : vector<1x256xf32> to vector<16x256xf32>
    %120 = arith.addf %116, %119 : vector<16x256xf32>
    %cst_63 = arith.constant 5.000000e-01 : f32
    %121 = vector.broadcast %cst_63 : f32 to vector<16x256xf32>
    %122 = arith.mulf %121, %120 : vector<16x256xf32>
    %cst_64 = arith.constant 4.471500e-02 : f32
    %123 = vector.broadcast %cst_64 : f32 to vector<16x256xf32>
    %124 = arith.mulf %123, %120 : vector<16x256xf32>
    %125 = arith.mulf %124, %120 : vector<16x256xf32>
    %126 = arith.mulf %125, %120 : vector<16x256xf32>
    %127 = arith.addf %120, %126 : vector<16x256xf32>
    %cst_65 = arith.constant 0.797884583 : f32
    %128 = vector.broadcast %cst_65 : f32 to vector<16x256xf32>
    %129 = arith.mulf %128, %127 : vector<16x256xf32>
    %130 = math.tanh %129 : vector<16x256xf32>
    %cst_66 = arith.constant 1.000000e+00 : f32
    %131 = vector.broadcast %cst_66 : f32 to vector<16x256xf32>
    %132 = arith.addf %131, %130 : vector<16x256xf32>
    %133 = arith.mulf %122, %132 : vector<16x256xf32>
    %134 = arith.truncf %133 : vector<16x256xf32> to vector<16x256xbf16>
    %c0_67 = arith.constant 0 : index
    %c0_68 = arith.constant 0 : index
    %c0_69 = arith.constant 0 : index
    %135 = vector.load %arg20[%c0_67, %c0_68, %c0_69] : memref<1x256x128xbf16, #tpu.memory_space<vmem>>, vector<1x256x128xbf16>
    %136 = vector.shape_cast %135 : vector<1x256x128xbf16> to vector<256x128xbf16>
    %cst_70 = arith.constant dense<0.000000e+00> : vector<16x128xf32>
    %137 = tpu.matmul %134, %136, %cst_70 {dimension_numbers = #tpu.dot_dimension_numbers<[1], [0], [0], [1], [0, 0, 1, 1], [], []>} : vector<16x256xbf16>, vector<256x128xbf16>, vector<16x128xf32> -> vector<16x128xf32>
    %c0_71 = arith.constant 0 : index
    %c0_72 = arith.constant 0 : index
    %c0_73 = arith.constant 0 : index
    %138 = vector.load %arg21[%c0_71, %c0_72, %c0_73] : memref<1x1x128xf32, #tpu.memory_space<vmem>>, vector<1x1x128xf32>
    %139 = vector.shape_cast %138 : vector<1x1x128xf32> to vector<1x128xf32>
    %140 = vector.broadcast %139 : vector<1x128xf32> to vector<16x128xf32>
    %141 = arith.addf %137, %140 : vector<16x128xf32>
    %142 = arith.addf %86, %141 : vector<16x128xf32>
    %c0_74 = arith.constant 0 : index
    %c0_75 = arith.constant 0 : index
    %143 = vector.load %arg29[%c0_74, %c0_75] : memref<16x128xf32, #tpu.memory_space<vmem>>, vector<16x128xf32>
    tpu.vector_store %arg29[%c0_74, %c0_75], %142 {strides = array<i32>} : memref<16x128xf32, #tpu.memory_space<vmem>>, vector<16x128xf32>,
    %c1_i32 = arith.constant 1 : i32
    %144 = arith.cmpi eq, %arg1, %c1_i32 : i32
    %145 = arith.extui %144 : i1 to i32
    %c0_i32_76 = arith.constant 0 : i32
    %146 = arith.cmpi ne, %145, %c0_i32_76 : i32
    scf.if %146 {
      %147 = arith.truncf %142 : vector<16x128xf32> to vector<16x128xbf16>
      %c0_77 = arith.constant 0 : index
      %c0_78 = arith.constant 0 : index
      %148 = vector.load %arg22[%c0_77, %c0_78] : memref<128x64xbf16, #tpu.memory_space<vmem>>, vector<128x64xbf16>
      %cst_79 = arith.constant dense<0.000000e+00> : vector<16x64xf32>
      %149 = tpu.matmul %147, %148, %cst_79 {dimension_numbers = #tpu.dot_dimension_numbers<[1], [0], [0], [1], [0, 0, 1, 1], [], []>} : vector<16x128xbf16>, vector<128x64xbf16>, vector<16x64xf32> -> vector<16x64xf32>
      %c0_80 = arith.constant 0 : index
      %c0_81 = arith.constant 0 : index
      %150 = vector.load %arg23[%c0_80, %c0_81] : memref<1x64xf32, #tpu.memory_space<vmem>>, vector<1x64xf32>
      %151 = vector.broadcast %150 : vector<1x64xf32> to vector<16x64xf32>
      %152 = arith.addf %149, %151 : vector<16x64xf32>
      %c0_82 = arith.constant 0 : index
      %c0_83 = arith.constant 0 : index
      %153 = vector.load %arg24[%c0_82, %c0_83] : memref<1x64xf32, #tpu.memory_space<vmem>>, vector<1x64xf32>
      %c0_84 = arith.constant 0 : index
      %c0_85 = arith.constant 0 : index
      %154 = vector.load %arg25[%c0_84, %c0_85] : memref<1x64xf32, #tpu.memory_space<vmem>>, vector<1x64xf32>
      %cst_86 = arith.constant dense<0.000000e+00> : vector<16xf32>
      %155 = vector.multi_reduction <add>, %152, %cst_86 [1] : vector<16x64xf32> to vector<16xf32>
      %156 = vector.shape_cast %155 : vector<16xf32> to vector<16x1xf32>
      %cst_87 = arith.constant 6.400000e+01 : f32
      %157 = vector.broadcast %cst_87 : f32 to vector<16x1xf32>
      %158 = arith.divf %156, %157 : vector<16x1xf32>
      %159 = vector.broadcast %158 : vector<16x1xf32> to vector<16x64xf32>
      %160 = arith.subf %152, %159 : vector<16x64xf32>
      %161 = arith.mulf %160, %160 : vector<16x64xf32>
      %cst_88 = arith.constant dense<0.000000e+00> : vector<16xf32>
      %162 = vector.multi_reduction <add>, %161, %cst_88 [1] : vector<16x64xf32> to vector<16xf32>
      %163 = vector.shape_cast %162 : vector<16xf32> to vector<16x1xf32>
      %cst_89 = arith.constant 6.400000e+01 : f32
      %164 = vector.broadcast %cst_89 : f32 to vector<16x1xf32>
      %165 = arith.divf %163, %164 : vector<16x1xf32>
      %166 = vector.broadcast %158 : vector<16x1xf32> to vector<16x64xf32>
      %167 = arith.subf %152, %166 : vector<16x64xf32>
      %cst_90 = arith.constant 9.99999974E-6 : f32
      %168 = vector.broadcast %cst_90 : f32 to vector<16x1xf32>
      %169 = arith.addf %165, %168 : vector<16x1xf32>
      %170 = math.rsqrt %169 : vector<16x1xf32>
      %171 = vector.broadcast %170 : vector<16x1xf32> to vector<16x64xf32>
      %172 = arith.mulf %167, %171 : vector<16x64xf32>
      %173 = vector.broadcast %153 : vector<1x64xf32> to vector<16x64xf32>
      %174 = arith.mulf %172, %173 : vector<16x64xf32>
      %175 = vector.broadcast %154 : vector<1x64xf32> to vector<16x64xf32>
      %176 = arith.addf %174, %175 : vector<16x64xf32>
      %cst_91 = arith.constant 5.000000e-01 : f32
      %177 = vector.broadcast %cst_91 : f32 to vector<16x64xf32>
      %178 = arith.mulf %177, %176 : vector<16x64xf32>
      %cst_92 = arith.constant 4.471500e-02 : f32
      %179 = vector.broadcast %cst_92 : f32 to vector<16x64xf32>
      %180 = arith.mulf %179, %176 : vector<16x64xf32>
      %181 = arith.mulf %180, %176 : vector<16x64xf32>
      %182 = arith.mulf %181, %176 : vector<16x64xf32>
      %183 = arith.addf %176, %182 : vector<16x64xf32>
      %cst_93 = arith.constant 0.797884583 : f32
      %184 = vector.broadcast %cst_93 : f32 to vector<16x64xf32>
      %185 = arith.mulf %184, %183 : vector<16x64xf32>
      %186 = math.tanh %185 : vector<16x64xf32>
      %cst_94 = arith.constant 1.000000e+00 : f32
      %187 = vector.broadcast %cst_94 : f32 to vector<16x64xf32>
      %188 = arith.addf %187, %186 : vector<16x64xf32>
      %189 = arith.mulf %178, %188 : vector<16x64xf32>
      %190 = arith.truncf %189 : vector<16x64xf32> to vector<16x64xbf16>
      %c0_95 = arith.constant 0 : index
      %c0_96 = arith.constant 0 : index
      %191 = vector.load %arg26[%c0_95, %c0_96] : memref<64x128xbf16, #tpu.memory_space<vmem>>, vector<64x128xbf16>
      %cst_97 = arith.constant dense<0.000000e+00> : vector<16x128xf32>
      %192 = tpu.matmul %190, %191, %cst_97 {dimension_numbers = #tpu.dot_dimension_numbers<[1], [0], [0], [1], [0, 0, 1, 1], [], []>} : vector<16x64xbf16>, vector<64x128xbf16>, vector<16x128xf32> -> vector<16x128xf32>
      %c0_98 = arith.constant 0 : index
      %c0_99 = arith.constant 0 : index
      %193 = vector.load %arg27[%c0_98, %c0_99] : memref<1x128xf32, #tpu.memory_space<vmem>>, vector<1x128xf32>
      %194 = vector.broadcast %193 : vector<1x128xf32> to vector<16x128xf32>
      %195 = arith.addf %192, %194 : vector<16x128xf32>
      %c0_100 = arith.constant 0 : index
      %c0_101 = arith.constant 0 : index
      %c0_102 = arith.constant 0 : index
      %196 = vector.load %arg28[%c0_100, %c0_101, %c0_102] : memref<1x16x128xf32, #tpu.memory_space<vmem>>, vector<1x16x128xf32>
      %197 = vector.shape_cast %196 : vector<1x16x128xf32> to vector<16x128xf32>
      %198 = vector.shape_cast %195 : vector<16x128xf32> to vector<1x16x128xf32>
      tpu.vector_store %arg28[%c0_100, %c0_101, %c0_102], %198 {strides = array<i32>} : memref<1x16x128xf32, #tpu.memory_space<vmem>>, vector<1x16x128xf32>,
    } else {
    }
    return
  }
  func.func @transform_0(%arg0: i32, %arg1: i32) -> (i32, i32, i32) {
    %c0_i32 = arith.constant 0 : i32
    %c0_i32_0 = arith.constant 0 : i32
    %c0_i32_1 = arith.constant 0 : i32
    return %arg0, %c0_i32, %c0_i32_0 : i32, i32, i32
  }
  func.func @transform_1(%arg0: i32, %arg1: i32) -> (i32, i32) {
    %c0_i32 = arith.constant 0 : i32
    %c0_i32_0 = arith.constant 0 : i32
    %c0_i32_1 = arith.constant 0 : i32
    return %c0_i32, %c0_i32_0 : i32, i32
  }
  func.func @transform_2(%arg0: i32, %arg1: i32) -> (i32, i32) {
    %c0_i32 = arith.constant 0 : i32
    %c0_i32_0 = arith.constant 0 : i32
    %c0_i32_1 = arith.constant 0 : i32
    return %c0_i32, %c0_i32_0 : i32, i32
  }
  func.func @transform_3(%arg0: i32, %arg1: i32) -> (i32, i32) {
    %c0_i32 = arith.constant 0 : i32
    %c0_i32_0 = arith.constant 0 : i32
    %c0_i32_1 = arith.constant 0 : i32
    return %c0_i32, %c0_i32_0 : i32, i32
  }
  func.func @transform_4(%arg0: i32, %arg1: i32) -> (i32, i32, i32) {
    %c0_i32 = arith.constant 0 : i32
    %c0_i32_0 = arith.constant 0 : i32
    %c0_i32_1 = arith.constant 0 : i32
    return %arg1, %c0_i32, %c0_i32_0 : i32, i32, i32
  }
  func.func @transform_5(%arg0: i32, %arg1: i32) -> (i32, i32, i32) {
    %c0_i32 = arith.constant 0 : i32
    %c0_i32_0 = arith.constant 0 : i32
    %c0_i32_1 = arith.constant 0 : i32
    return %arg1, %c0_i32, %c0_i32_0 : i32, i32, i32
  }
  func.func @transform_6(%arg0: i32, %arg1: i32) -> (i32, i32, i32) {
    %c0_i32 = arith.constant 0 : i32
    %c0_i32_0 = arith.constant 0 : i32
    %c0_i32_1 = arith.constant 0 : i32
    return %arg1, %c0_i32, %c0_i32_0 : i32, i32, i32
  }
  func.func @transform_7(%arg0: i32, %arg1: i32) -> (i32, i32, i32) {
    %c0_i32 = arith.constant 0 : i32
    %c0_i32_0 = arith.constant 0 : i32
    %c0_i32_1 = arith.constant 0 : i32
    return %arg1, %c0_i32, %c0_i32_0 : i32, i32, i32
  }
  func.func @transform_8(%arg0: i32, %arg1: i32) -> (i32, i32, i32) {
    %c0_i32 = arith.constant 0 : i32
    %c0_i32_0 = arith.constant 0 : i32
    %c0_i32_1 = arith.constant 0 : i32
    return %arg1, %c0_i32, %c0_i32_0 : i32, i32, i32
  }
  func.func @transform_9(%arg0: i32, %arg1: i32) -> (i32, i32, i32) {
    %c0_i32 = arith.constant 0 : i32
    %c0_i32_0 = arith.constant 0 : i32
    %c0_i32_1 = arith.constant 0 : i32
    return %arg1, %c0_i32, %c0_i32_0 : i32, i32, i32
  }
  func.func @transform_10(%arg0: i32, %arg1: i32) -> (i32, i32, i32) {
    %c0_i32 = arith.constant 0 : i32
    %c0_i32_0 = arith.constant 0 : i32
    %c0_i32_1 = arith.constant 0 : i32
    return %arg1, %c0_i32, %c0_i32_0 : i32, i32, i32
  }
  func.func @transform_11(%arg0: i32, %arg1: i32) -> (i32, i32, i32) {
    %c0_i32 = arith.constant 0 : i32
    %c0_i32_0 = arith.constant 0 : i32
    %c0_i32_1 = arith.constant 0 : i32
    return %arg1, %c0_i32, %c0_i32_0 : i32, i32, i32
  }
  func.func @transform_12(%arg0: i32, %arg1: i32) -> (i32, i32, i32) {
    %c0_i32 = arith.constant 0 : i32
    %c0_i32_0 = arith.constant 0 : i32
    %c0_i32_1 = arith.constant 0 : i32
    return %arg1, %c0_i32, %c0_i32_0 : i32, i32, i32
  }
  func.func @transform_13(%arg0: i32, %arg1: i32) -> (i32, i32, i32) {
    %c0_i32 = arith.constant 0 : i32
    %c0_i32_0 = arith.constant 0 : i32
    %c0_i32_1 = arith.constant 0 : i32
    return %arg1, %c0_i32, %c0_i32_0 : i32, i32, i32
  }
  func.func @transform_14(%arg0: i32, %arg1: i32) -> (i32, i32, i32) {
    %c0_i32 = arith.constant 0 : i32
    %c0_i32_0 = arith.constant 0 : i32
    %c0_i32_1 = arith.constant 0 : i32
    return %arg1, %c0_i32, %c0_i32_0 : i32, i32, i32
  }
  func.func @transform_15(%arg0: i32, %arg1: i32) -> (i32, i32, i32) {
    %c0_i32 = arith.constant 0 : i32
    %c0_i32_0 = arith.constant 0 : i32
    %c0_i32_1 = arith.constant 0 : i32
    return %arg1, %c0_i32, %c0_i32_0 : i32, i32, i32
  }
  func.func @transform_16(%arg0: i32, %arg1: i32) -> (i32, i32, i32) {
    %c0_i32 = arith.constant 0 : i32
    %c0_i32_0 = arith.constant 0 : i32
    %c0_i32_1 = arith.constant 0 : i32
    return %arg1, %c0_i32, %c0_i32_0 : i32, i32, i32
  }
  func.func @transform_17(%arg0: i32, %arg1: i32) -> (i32, i32, i32) {
    %c0_i32 = arith.constant 0 : i32
    %c0_i32_0 = arith.constant 0 : i32
    %c0_i32_1 = arith.constant 0 : i32
    return %arg1, %c0_i32, %c0_i32_0 : i32, i32, i32
  }
  func.func @transform_18(%arg0: i32, %arg1: i32) -> (i32, i32, i32) {
    %c0_i32 = arith.constant 0 : i32
    %c0_i32_0 = arith.constant 0 : i32
    %c0_i32_1 = arith.constant 0 : i32
    return %arg1, %c0_i32, %c0_i32_0 : i32, i32, i32
  }
  func.func @transform_19(%arg0: i32, %arg1: i32) -> (i32, i32, i32) {
    %c0_i32 = arith.constant 0 : i32
    %c0_i32_0 = arith.constant 0 : i32
    %c0_i32_1 = arith.constant 0 : i32
    return %arg1, %c0_i32, %c0_i32_0 : i32, i32, i32
  }
  func.func @transform_20(%arg0: i32, %arg1: i32) -> (i32, i32) {
    %c0_i32 = arith.constant 0 : i32
    %c0_i32_0 = arith.constant 0 : i32
    %c0_i32_1 = arith.constant 0 : i32
    return %c0_i32, %c0_i32_0 : i32, i32
  }
  func.func @transform_21(%arg0: i32, %arg1: i32) -> (i32, i32) {
    %c0_i32 = arith.constant 0 : i32
    %c0_i32_0 = arith.constant 0 : i32
    %c0_i32_1 = arith.constant 0 : i32
    return %c0_i32, %c0_i32_0 : i32, i32
  }
  func.func @transform_22(%arg0: i32, %arg1: i32) -> (i32, i32) {
    %c0_i32 = arith.constant 0 : i32
    %c0_i32_0 = arith.constant 0 : i32
    %c0_i32_1 = arith.constant 0 : i32
    return %c0_i32, %c0_i32_0 : i32, i32
  }
  func.func @transform_23(%arg0: i32, %arg1: i32) -> (i32, i32) {
    %c0_i32 = arith.constant 0 : i32
    %c0_i32_0 = arith.constant 0 : i32
    %c0_i32_1 = arith.constant 0 : i32
    return %c0_i32, %c0_i32_0 : i32, i32
  }
  func.func @transform_24(%arg0: i32, %arg1: i32) -> (i32, i32) {
    %c0_i32 = arith.constant 0 : i32
    %c0_i32_0 = arith.constant 0 : i32
    %c0_i32_1 = arith.constant 0 : i32
    return %c0_i32, %c0_i32_0 : i32, i32
  }
  func.func @transform_25(%arg0: i32, %arg1: i32) -> (i32, i32) {
    %c0_i32 = arith.constant 0 : i32
    %c0_i32_0 = arith.constant 0 : i32
    %c0_i32_1 = arith.constant 0 : i32
    return %c0_i32, %c0_i32_0 : i32, i32
  }
  func.func @transform_26(%arg0: i32, %arg1: i32) -> (i32, i32, i32) {
    %c0_i32 = arith.constant 0 : i32
    %c0_i32_0 = arith.constant 0 : i32
    %c0_i32_1 = arith.constant 0 : i32
    return %arg0, %c0_i32, %c0_i32_0 : i32, i32, i32
  }
}

</mosaic_0001>

<bundles_post_ra>
// kernel: tpu_custom_call.1
= control target key start
LH: loop header
LB: loop body
LE: loop exit
PB: predicated region body
PF: predicated region fallthrough
CT: control target
= control target key end

     0   :  { %s7526_s0 = inlined_call_operand.vmem [shape: f32[2,16,1], index: 0, kind: input, shape index: {}]   ;;  %s7527_s1 = inlined_call_operand.hbm [shape: bf16[1,128], index: 1, kind: input, shape index: {}]   ;;  %s7528_s2 = inlined_call_operand.hbm [shape: f32[1,128], index: 2, kind: input, shape index: {}]   ;;  %s7529_s3 = inlined_call_operand.hbm [shape: f32[16,128], index: 3, kind: input, shape index: {}]   ;;  %s7530_s4 = inlined_call_operand.hbm [shape: f32[2,1,128], index: 4, kind: input, shape index: {}]   ;;  %s7531_s5 = inlined_call_operand.hbm [shape: f32[2,1,128], index: 5, kind: input, shape index: {}]   ;;  %s7532_s6 = inlined_call_operand.vmem [shape: bf16[2,128,128], index: 6, kind: input, shape index: {}]   ;;  %s7533_s7 = inlined_call_operand.hbm [shape: f32[2,1,128], index: 7, kind: input, shape index: {}]   ;;  %s7534_s8 = inlined_call_operand.hbm [shape: bf16[2,128,128], index: 8, kind: input, shape index: {}]   ;;  %s7535_s9 = inlined_call_operand.vmem [shape: f32[2,1,128], index: 9, kind: input, shape index: {}]   ;;  %s7536_s10 = inlined_call_operand.hbm [shape: bf16[2,128,128], index: 10, kind: input, shape index: {}]   ;;  %s7537_s11 = inlined_call_operand.hbm [shape: f32[2,1,128], index: 11, kind: input, shape index: {}]   ;;  %s7538_s12 = inlined_call_operand.hbm [shape: bf16[2,128,128], index: 12, kind: input, shape index: {}]   ;;  %s7539_s13 = inlined_call_operand.hbm [shape: f32[2,1,128], index: 13, kind: input, shape index: {}]   ;;  %s7540_s14 = inlined_call_operand.hbm [shape: f32[2,1,128], index: 14, kind: input, shape index: {}]   ;;  %s7541_s15 = inlined_call_operand.hbm [shape: f32[2,1,128], index: 15, kind: input, shape index: {}]   ;;  %s7542_s16 = inlined_call_operand.hbm [shape: bf16[2,128,256], index: 16, kind: input, shape index: {}]   ;;  %s7543_s17 = inlined_call_operand.hbm [shape: f32[2,1,256], index: 17, kind: input, shape index: {}]   ;;  %s7544_s18 = inlined_call_operand.hbm [shape: bf16[2,256,128], index: 18, kind: input, shape index: {}]   ;;  %s7545_s19 = inlined_call_operand.vmem [shape: f32[2,1,128], index: 19, kind: input, shape index: {}]   ;;  %s7546_s20 = inlined_call_operand.vmem [shape: bf16[128,64], index: 20, kind: input, shape index: {}]   ;;  %s7547_s21 = inlined_call_operand.vmem [shape: f32[1,64], index: 21, kind: input, shape index: {}]   ;;  %s7548_s22 = inlined_call_operand.vmem [shape: f32[1,64], index: 22, kind: input, shape index: {}]   ;;  %s7549_s23 = inlined_call_operand.vmem [shape: f32[1,64], index: 23, kind: input, shape index: {}]   ;;  %s7550_s24 = inlined_call_operand.vmem [shape: bf16[64,128], index: 24, kind: input, shape index: {}]   ;;  %s7551_s25 = inlined_call_operand.vmem [shape: f32[1,128], index: 25, kind: input, shape index: {}]   ;;  %s7552_s26 = inlined_call_operand.hbm [shape: f32[2,16,128], index: 26, kind: output, shape index: {}]  }
   0x1   :  { %7622 = sst [smem:[#allocation58_spill]] %s7526_s0 }
   0x2   :  { %7623 = sst [smem:[#allocation59_spill]] %s7527_s1 }
   0x3   :  { %7624 = sst [smem:[#allocation60_spill]] %s7528_s2 }
   0x4   :  { %7625 = sst [smem:[#allocation61_spill]] %s7529_s3 }
   0x5   :  { %7626 = sst [smem:[#allocation62_spill]] %s7530_s4 }
   0x6   :  { %7627 = sst [smem:[#allocation63_spill]] %s7531_s5 }
   0x7   :  { %7628 = sst [smem:[#allocation64_spill]] %s7532_s6 }
   0x8   :  { %7629 = sst [smem:[#allocation65_spill]] %s7533_s7 }
   0x9   :  { %7630 = sst [smem:[#allocation66_spill]] %s7534_s8 }
   0xa   :  { %7631 = sst [smem:[#allocation67_spill]] %s7535_s9 }
   0xb   :  { %7632 = sst [smem:[#allocation68_spill]] %s7536_s10 }
   0xc   :  { %7633 = sst [smem:[#allocation69_spill]] %s7537_s11 }
   0xd   :  { %7634 = sst [smem:[#allocation70_spill]] %s7538_s12 }
   0xe   :  { %7635 = sst [smem:[#allocation71_spill]] %s7539_s13 }
   0xf   :  { %7636 = sst [smem:[#allocation72_spill]] %s7540_s14 }
  0x10   :  { %7637 = sst [smem:[#allocation73_spill]] %s7541_s15 }
  0x11   :  { %7638 = sst [smem:[#allocation74_spill]] %s7542_s16 }
  0x12   :  { %7639 = sst [smem:[#allocation75_spill]] %s7543_s17 }
  0x13   :  { %7640 = sst [smem:[#allocation76_spill]] %s7544_s18 }
  0x14   :  { %7641 = sst [smem:[#allocation77_spill]] %s7545_s19 }
  0x15   :  { %7642 = sst [smem:[#allocation78_spill]] %s7546_s20 }
  0x16   :  { %7643 = sst [smem:[#allocation79_spill]] %s7547_s21 }
  0x17   :  { %7644 = sst [smem:[#allocation80_spill]] %s7548_s22 }
  0x18   :  { %7645 = sst [smem:[#allocation81_spill]] %s7549_s23 }
  0x19   :  { %7646 = sst [smem:[#allocation82_spill]] %s7550_s24 }
  0x1a   :  { %7647 = sst [smem:[#allocation83_spill]] %s7551_s25 }
  0x1b   :  { %7648 = sst [smem:[#allocation84_spill]] %s7552_s26 }
  0x1c   :  { %31 = vsyncpa [#allocation4], 0 }
  0x1d   :  { %32 = vsyncpa [#allocation7], 0 }
  0x1e   :  { %33 = vsyncpa [#allocation10], 0 }
  0x1f   :  { %35 = vsyncpa [#allocation10 + $0x1], 0 }
  0x20   :  { %36 = vsyncpa [#allocation13], 0 }
  0x21   :  { %38 = vsyncpa [#allocation13 + $0x1], 0 }
  0x22   :  { %39 = vsyncpa [#allocation16], 0 }
  0x23   :  { %41 = vsyncpa [#allocation16 + $0x1], 0 }
  0x24   :  { %42 = vsyncpa [#allocation19], 0 }
  0x25   :  { %44 = vsyncpa [#allocation19 + $0x1], 0 }
  0x26   :  { %45 = vsyncpa [#allocation22], 0 }
  0x27   :  { %47 = vsyncpa [#allocation22 + $0x1], 0 }
  0x28   :  { %48 = vsyncpa [#allocation25], 0 }
  0x29   :  { %50 = vsyncpa [#allocation25 + $0x1], 0 }
  0x2a   :  { %51 = vsyncpa [#allocation28], 0 }
  0x2b   :  { %53 = vsyncpa [#allocation28 + $0x1], 0 }
  0x2c   :  { %54 = vsyncpa [#allocation5], 0 }
  0x2d   :  { %56 = vsyncpa [#allocation5 + $0x1], 0  ;;  %s6218_s27 = smov 0   ;;  %s6220_s3 = smov 0  }
  0x2e   :  { %s6222_s7 = smov 0   ;;  %s6224_s28 = smov 0  }
  0x2f   :  { %s6226_s8 = smov 0   ;;  %s6228_s4 = smov 0  }
  0x30   :  { %s6230_s29 = smov 0   ;;  %s6232_s0 = smov 0  }
  0x31   :  { %s6234_s9 = smov 0   ;;  %s6236_s30 = smov 0  }
  0x32   :  { %s6238_s2 = smov 0  }
  0x33 LB: > { %7649 = sst [smem:[#allocation40_spill]] %s6007_s27  ;;  %s6272_s5 = sadd.s32 4294967295, %s6047_s2   ;;  %s6047_s2 = sphi %s6238_s2, %s62_s2   ;;  %s6043_s30 = sphi %s6236_s30, %s7769_s30   ;;  %s6039_s9 = sphi %s6234_s9, %s7771_s9   ;;  %s6035_s0 = sphi %s6232_s0, %s7767_s0   ;;  %s6031_s29 = sphi %s6230_s29, %s7770_s29   ;;  %s6027_s4 = sphi %s6228_s4, %s7766_s4   ;;  %s6023_s8 = sphi %s6226_s8, %s7765_s8   ;;  %s6019_s28 = sphi %s6224_s28, %s7764_s28   ;;  %s6015_s7 = sphi %s6222_s7, %s7763_s7   ;;  %s6011_s3 = sphi %s6220_s3, %s7762_s3   ;;  %s6007_s27 = sphi %s6218_s27, %s7761_s27  }
  0x34   : > { %7650 = sst [smem:[#allocation41_spill]] %s6011_s3  ;;  %s4626_s10 = sadd.s32 4294967294, %s6047_s2  }
  0x35   : > { %7651 = sst [smem:[#allocation42_spill]] %s6015_s7  ;;  %s71_s6 = sadd.s32 1, %s6039_s9 }
  0x36   : > { %7652 = sst [smem:[#allocation43_spill]] %s6023_s8  ;;  %s74_s1 = sadd.s32 1, %s6043_s30 }
  0x37   : > { %7653 = sst [smem:[#allocation44_spill]] %s6027_s4  ;;  %p72_p0 = scmp.ge.s32.totalorder %s71_s6, 2 }
  0x38   : > { %7654 = sst [smem:[#allocation45_spill]] %s6031_s29  ;;  %s170_s26 = sadd.s32 1, %s6027_s4 }
  0x39   : > { %7655 = sst [smem:[#allocation46_spill]] %s6035_s0  ;;  %p177_p1 = scmp.ne.s32.totalorder %s6027_s4, %s6023_s8 }
  0x3a   : > { %7656 = sst [smem:[#allocation47_spill]] %s6043_s30  ;;  %p178_p2 = scmp.eq.s32.totalorder %s6047_s2, 0 }
  0x3b   : > { %7657 = sst [smem:[#allocation48_spill]] %s6047_s2  ;;  %s7773_s6 = smov (%p72_p0, %s71_s6), 0 }
  0x3c   : > { %7658 = sst [smem:[#allocation49_spill]] %s6272_s5  ;;  %s7775_s1 = smov (!%p72_p0, %s74_s1), %s6043_s30 }
  0x3d   : > { %7659 = sst [smem:[#allocation50_spill]] %s7773_s6  ;;  %s167_s25 = ssub.s32 %s6039_s9, %s7773_s6 }
  0x3e   : > { %p6286_p3 = por %p178_p2, %p177_p1  ;;  %p76_p4 = scmp.ge.s32.totalorder %s7775_s1, 2 }
  0x3f   : > { %p168_p5 = scmp.eq.s32.totalorder %s167_s25, 0  ;;  %p183_p6 = scmp.ne.s32.totalorder %s6023_s8, %s6019_s28 }
  0x40   : > { %p7575_p7 = scmp.eq.s32.totalorder %s6272_s5, 0  ;;  %s7777_s1 = smov (%p76_p4, %s7775_s1), 0 }
  0x41   : > { %7661 = sst [smem:[#allocation51_spill]] %s7777_s1  ;;  %s709_s24 = ssub.s32 %s6043_s30, %s7777_s1 }
  0x42   : > { %s6295_s22 = scalar_select %p168_p5, %s6027_s4, %s170_s26  }
  0x43   : > { %p6299_p8 = por %p7575_p7, %p183_p6  ;;  %p710_p9 = scmp.eq.s32.totalorder %s709_s24, 0 }
  0x44   : > { %7662 = sst [smem:[#allocation52_spill]] %s6295_s22  ;;  %s712_s21 = sadd.s32 1, %s6015_s7 }
  0x45   : > { %s7663_s6 = scalar_select %p6299_p8, 1, 0 }
  0x46   : > { %p722_p10 = scmp.ne.s32.totalorder %s6015_s7, %s6011_s3  ;;  %p723_p11 = scmp.eq.s32.totalorder %s6272_s5, 3 }
  0x47   : > { %7664 = sst [smem:[#allocation53_spill]] %s7663_s6  ;;  %p728_p13 = scmp.ne.s32.totalorder %s6011_s3, %s6007_s27 }
  0x48   : > { %s6310_s25 = scalar_select %p710_p9, %s6015_s7, %s712_s21  }
  0x49   : > { %p6312_p12 = por %p723_p11, %p722_p10  ;;  %p729_p0 = scmp.eq.s32.totalorder %s4626_s10, 3 }
  0x4a   : > { %7665 = sst [smem:[#allocation54_spill]] %s6310_s25  ;;  %p4627_p1 = scmp.ge.s32.totalorder %s6047_s2, 1 }
  0x4b   : > { %s7666_s26 = scalar_select %p6312_p12, 1, 0 }
  0x4c   : > { %p736_p2 = scmp.lt.s32.totalorder %s6047_s2, 5  ;;  %p6320_p4 = por %p729_p0, %p728_p13 }
  0x4d   : > { %7667 = sst [smem:[#allocation55_spill]] %s7666_s26  ;;  %s6049_s21 = smov [#allocation6]  }
  0x4e   : > { %s7668_s24 = scalar_select %p6320_p4, 1, 0 }
  0x4f   : > { %p6324_p5 = pnand %p4627_p1, %p736_p2  ;;  %s760_s1 = sshll.u32 %s6049_s21, 4  ;;  %s761_s1 = int_to_ptr.vmem [resolvable:$true] %s760_s1 }
  0x50   : > { %7669 = sst [smem:[#allocation56_spill]] %s7668_s24  ;;  %p5148_p9 = scmp.lt.s32.totalorder %s6047_s2, 4 }
  0x51   : > { %s7670_s28 = scalar_select %p6324_p5, 1, 0 }
  0x52   : > { %p5091_p6 = pneg %p6324_p5  ;;  %s6332_s30 = sand.u32 1, %s6027_s4  }
  0x53   : > { %7671 = sst [smem:[#allocation57_spill]] %s7670_s28  ;;  %s6335_s10 = sand.u32 1, %s6047_s2  }
  0x54   : > { %p6339_p10 = pnand %p5091_p6, %p7575_p7  ;;  %p6345_p11 = pnand %p5148_p9, %p6286_p3 }
  0x55   : > { %s7674_s24 = sld [smem:[#allocation60_spill]] }
  0x56   : > { %s7672_s22 = scalar_select %p6339_p10, 1, 0 }
  0x57   : > { %s7673_s25 = scalar_select %p6345_p11, 1, 0 }
  0x58   : > { %p6357_p0 = pneg %p6339_p10 }
  0x5a   : > { %s7675_s2 = scalar_select %p6357_p0, 1, 0 }
  0x5b   : > { %s5419_s27 = scalar_lea.hbm %s7674_s24, 16 }
  0x5c   : > { %p5420_p13 = scmp.ne.s32.totalorder %s7674_s24, %s5419_s27  ;;  %p5426_p2 = scmp.lt.u32.totalorder %s5419_s27, %s7674_s24 }
  0x5e   : > { %p5422_p1 = pnand %p6357_p0, %p5420_p13 }
  0x60   : > { %p5423_p3 = pneg %p5422_p1 }
  0x62   : > { %p5428_p6 = pnand %p5426_p2, %p5423_p3 }
  0x64   : > { %5431 = shalt.err (!%p5428_p6)
}
  0x65   : > { %s5432_s7 = scalar_lea.vmem %s761_s1, 16  ;;  %s5439_s4 = scalar_lea.vmem %s761_s1, 32 }
  0x66   : > { %p5433_p9 = scmp.ne.s32.totalorder %s761_s1, %s5432_s7  ;;  %p5440_p12 = scmp.lt.s32.totalorder %s761_s1, %s761_s1 }
  0x67   : > { %p5441_p8 = scmp.lt.s32.totalorder %s5439_s4, %s5432_s7 }
  0x68   : > { %p5435_p7 = pnand %p5433_p9, %p6357_p0 }
  0x69   : > { %p5442_p5 = por %p5441_p8, %p5440_p12 }
  0x6a   : > { %p5436_p4 = pneg %p5435_p7 }
  0x6c   : > { %p5443_p11 = pnand %p5442_p5, %p5436_p4 }
  0x6e   : > { %5446 = shalt.err (!%p5443_p11)
}
  0x6f   : > { %5097 = dma.hbm_to_vmem [thread:$0]  (!%p6339_p10), %s7674_s24, 16, %s761_s1, [#allocation7]  }
  0x70   : > { %s6374_s20 = sshll.u32 %s6039_s9, 4  ;;  %s813_s27 = scalar_lea.vmem [#allocation9], %s6332_s30 }
  0x71   : > { %s820_s23 = sshll.u32 %s813_s27, 4  ;;  %s7676_s4 = sld [smem:[#allocation62_spill]]  ;;  %s6383_s23 = int_to_ptr.vmem [resolvable:$true] %s820_s23 }
  0x72   : > { %p7678_p8 = scmp.ne.s32.totalorder %s7673_s25, 0 }
  0x74   : > { %p6390_p12 = pneg %p7678_p8 }
  0x76   : > { %s7679_s1 = scalar_select %p6390_p12, 1, 0 }
  0x77   : > { %s7677_s6 = smov %s7676_s4  ;;  %s6381_s29 = scalar_lea.hbm %s7676_s4, %s6374_s20 }
  0x78   : > { %s5447_s21 = scalar_lea.hbm %s6381_s29, 16  ;;  %s5452_s7 = scalar_lea.hbm %s7677_s6, 32 }
  0x79   : > { %p5448_p7 = scmp.ne.s32.totalorder %s6381_s29, %s5447_s21  ;;  %p5453_p11 = scmp.lt.u32.totalorder %s6381_s29, %s7677_s6 }
  0x7a   : > { %p5454_p13 = scmp.lt.u32.totalorder %s5452_s7, %s5447_s21  ;;  %p5456_p3 = scmp.lt.u32.totalorder %s5447_s21, %s6381_s29 }
  0x7b   : > { %p5450_p4 = pnand %p6390_p12, %p5448_p7 }
  0x7c   : > { %p5455_p1 = por %p5454_p13, %p5453_p11 }
  0x7d   : > { %p5451_p5 = pneg %p5450_p4 }
  0x7e   : > { %p5457_p2 = por %p5456_p3, %p5455_p1 }
  0x80   : > { %p5458_p6 = pnand %p5457_p2, %p5451_p5 }
  0x82   : > { %5461 = shalt.err (!%p5458_p6)
}
  0x83   : > { %s5462_s26 = scalar_lea.vmem %s6383_s23, 16  ;;  %s6050_s19 = smov [#allocation9]  }
  0x84   : > { %p5463_p9 = scmp.ne.s32.totalorder %s6383_s23, %s5462_s26  ;;  %s5467_s27 = sshll.u32 %s6050_s19, 4  ;;  %s5468_s27 = int_to_ptr.vmem [resolvable:$false] %s5467_s27 }
  0x85   : > { %s5469_s24 = scalar_lea.vmem %s5468_s27, 32  ;;  %p5470_p10 = scmp.lt.s32.totalorder %s6383_s23, %s5468_s27 }
  0x86   : > { %p5465_p7 = pnand %p5463_p9, %p6390_p12  ;;  %p5471_p0 = scmp.lt.s32.totalorder %s5469_s24, %s5462_s26 }
  0x88   : > { %p5466_p4 = pneg %p5465_p7  ;;  %p5472_p11 = por %p5471_p0, %p5470_p10 }
  0x8a   : > { %p5473_p13 = pnand %p5472_p11, %p5466_p4 }
  0x8c   : > { %5476 = shalt.err (!%p5473_p13)
}
  0x8d   : > { %s7680_s21 = scalar_lea.sflag [#allocation10], %s6335_s10  ;;  %s7681_s19 = sld [smem:[#allocation65_spill]] }
  0x8e   : > { %5104 = dma.hbm_to_vmem [thread:$0]  (!%p7678_p8), %s6381_s29, 16, %s6383_s23, %s7680_s21  }
  0x8f   : > { %s855_s26 = scalar_lea.vmem [#allocation12], %s6332_s30  ;;  %s6425_s6 = sshll.u32 %s6332_s30, 6 }
  0x90   : > { %s862_s24 = sshll.u32 %s855_s26, 4  ;;  %s7594_s0 = scalar_lea.sflag [#allocation13], %s6335_s10  ;;  %s6422_s24 = int_to_ptr.vmem [resolvable:$true] %s862_s24 }
  0x93   : > { %s6419_s27 = scalar_lea.hbm %s7681_s19, %s6374_s20  ;;  %s5482_s21 = scalar_lea.hbm %s7681_s19, 32 }
  0x94   : > { %s5477_s3 = scalar_lea.hbm %s6419_s27, 16  ;;  %p5483_p1 = scmp.lt.u32.totalorder %s6419_s27, %s7681_s19 }
  0x95   : > { %p5478_p10 = scmp.ne.s32.totalorder %s6419_s27, %s5477_s3  ;;  %p5484_p3 = scmp.lt.u32.totalorder %s5482_s21, %s5477_s3 }
  0x96   : > { %p5486_p6 = scmp.lt.u32.totalorder %s5477_s3, %s6419_s27 }
  0x97   : > { %p5480_p0 = pnand %p5478_p10, %p6390_p12  ;;  %p5485_p2 = por %p5484_p3, %p5483_p1 }
  0x99   : > { %p5481_p5 = pneg %p5480_p0  ;;  %p5487_p9 = por %p5486_p6, %p5485_p2 }
  0x9b   : > { %p5488_p7 = pnand %p5487_p9, %p5481_p5 }
  0x9d   : > { %5491 = shalt.err (!%p5488_p7)
}
  0x9e   : > { %s5492_s26 = scalar_lea.vmem %s6422_s24, 16  ;;  %s6051_s29 = smov [#allocation12]  }
  0x9f   : > { %p5493_p4 = scmp.ne.s32.totalorder %s6422_s24, %s5492_s26  ;;  %s5497_s23 = sshll.u32 %s6051_s29, 4  ;;  %s5498_s23 = int_to_ptr.vmem [resolvable:$false] %s5497_s23 }
  0xa0   : > { %s5499_s7 = scalar_lea.vmem %s5498_s23, 32  ;;  %p5500_p10 = scmp.lt.s32.totalorder %s6422_s24, %s5498_s23 }
  0xa1   : > { %p5495_p11 = pnand %p5493_p4, %p6390_p12  ;;  %p5501_p0 = scmp.lt.s32.totalorder %s5499_s7, %s5492_s26 }
  0xa3   : > { %p5496_p13 = pneg %p5495_p11  ;;  %p5502_p1 = por %p5501_p0, %p5500_p10 }
  0xa5   : > { %p5503_p3 = pnand %p5502_p1, %p5496_p13 }
  0xa7   : > { %5506 = shalt.err (!%p5503_p3)
}
  0xa8   : > { %5110 = dma.hbm_to_vmem [thread:$0]  (!%p7678_p8), %s6419_s27, 16, %s6422_s24, %s7594_s0  }
  0xa9   : > { %s6452_s3 = sshll.u32 %s6039_s9, 10  ;;  %s7682_s26 = sld [smem:[#allocation68_spill]] }
  0xaa   : > { %s900_s23 = scalar_lea.vmem [#allocation15], %s6425_s6  ;;  %s7598_s19 = scalar_lea.sflag [#allocation16], %s6335_s10 }
  0xab   : > { %s907_s7 = sshll.u32 %s900_s23, 4  ;;  %s6461_s7 = int_to_ptr.vmem [resolvable:$true] %s907_s7 }
  0xaf   : > { %s6458_s29 = scalar_lea.hbm %s7682_s26, %s6452_s3  ;;  %s5512_s21 = scalar_lea.hbm %s7682_s26, 2048 }
  0xb0   : > { %s5507_s8 = scalar_lea.hbm %s6458_s29, 1024  ;;  %p5513_p9 = scmp.lt.u32.totalorder %s6458_s29, %s7682_s26 }
  0xb1   : > { %p5508_p5 = scmp.ne.s32.totalorder %s6458_s29, %s5507_s8  ;;  %p5514_p7 = scmp.lt.u32.totalorder %s5512_s21, %s5507_s8 }
  0xb2   : > { %p5516_p11 = scmp.lt.u32.totalorder %s5507_s8, %s6458_s29 }
  0xb3   : > { %p5510_p2 = pnand %p5508_p5, %p6390_p12  ;;  %p5515_p4 = por %p5514_p7, %p5513_p9 }
  0xb5   : > { %p5511_p6 = pneg %p5510_p2  ;;  %p5517_p13 = por %p5516_p11, %p5515_p4 }
  0xb7   : > { %p5518_p10 = pnand %p5517_p13, %p5511_p6 }
  0xb9   : > { %5521 = shalt.err (!%p5518_p10)
}
  0xba   : > { %s5522_s23 = scalar_lea.vmem %s6461_s7, 1024  ;;  %s6052_s27 = smov [#allocation15]  }
  0xbb   : > { %p5523_p0 = scmp.ne.s32.totalorder %s6461_s7, %s5522_s23  ;;  %s5527_s24 = sshll.u32 %s6052_s27, 4  ;;  %s5528_s24 = int_to_ptr.vmem [resolvable:$false] %s5527_s24 }
  0xbc   : > { %s5529_s0 = scalar_lea.vmem %s5528_s24, 2048  ;;  %p5530_p5 = scmp.lt.s32.totalorder %s6461_s7, %s5528_s24 }
  0xbd   : > { %p5525_p1 = pnand %p5523_p0, %p6390_p12  ;;  %p5531_p2 = scmp.lt.s32.totalorder %s5529_s0, %s5522_s23 }
  0xbf   : > { %p5526_p3 = pneg %p5525_p1  ;;  %p5532_p9 = por %p5531_p2, %p5530_p5 }
  0xc1   : > { %p5533_p7 = pnand %p5532_p9, %p5526_p3 }
  0xc3   : > { %5536 = shalt.err (!%p5533_p7)
}
  0xc4   : > { %s7600_s8 = smov 64   ;;  %s7606_s21 = smov 4  }
  0xc5   : > { %5116 = dma.hbm_to_vmem [thread:$0]  (!%p7678_p8), %s6458_s29, 1024, %s6461_s7, %s7598_s19, %s7600_s8, %s7600_s8, %s7606_s21  }
  0xc6   : > { %s7683_s12 = sld [smem:[#allocation70_spill]]  ;;  %s938_s24 = scalar_lea.vmem [#allocation18], %s6425_s6 }
  0xc7   : > { %s945_s0 = sshll.u32 %s938_s24, 4  ;;  %s7599_s26 = scalar_lea.sflag [#allocation19], %s6335_s10  ;;  %s6497_s0 = int_to_ptr.vmem [resolvable:$true] %s945_s0 }
  0xcc   : > { %s6494_s27 = scalar_lea.hbm %s7683_s12, %s6452_s3  ;;  %s5542_s4 = scalar_lea.hbm %s7683_s12, 2048 }
  0xcd   : > { %s5537_s5 = scalar_lea.hbm %s6494_s27, 1024  ;;  %p5543_p13 = scmp.lt.u32.totalorder %s6494_s27, %s7683_s12 }
  0xce   : > { %p5538_p6 = scmp.ne.s32.totalorder %s6494_s27, %s5537_s5  ;;  %p5544_p10 = scmp.lt.u32.totalorder %s5542_s4, %s5537_s5 }
  0xcf   : > { %p5546_p1 = scmp.lt.u32.totalorder %s5537_s5, %s6494_s27 }
  0xd0   : > { %p5540_p4 = pnand %p5538_p6, %p6390_p12  ;;  %p5545_p0 = por %p5544_p10, %p5543_p13 }
  0xd2   : > { %p5541_p11 = pneg %p5540_p4  ;;  %p5547_p3 = por %p5546_p1, %p5545_p0 }
  0xd4   : > { %p5548_p5 = pnand %p5547_p3, %p5541_p11 }
  0xd6   : > { %5551 = shalt.err (!%p5548_p5)
}
  0xd7   : > { %s5552_s24 = scalar_lea.vmem %s6497_s0, 1024  ;;  %s6055_s29 = smov [#allocation18]  }
  0xd8   : > { %p5553_p2 = scmp.ne.s32.totalorder %s6497_s0, %s5552_s24  ;;  %s5557_s7 = sshll.u32 %s6055_s29, 4  ;;  %s5558_s7 = int_to_ptr.vmem [resolvable:$false] %s5557_s7 }
  0xd9   : > { %s5559_s19 = scalar_lea.vmem %s5558_s7, 2048  ;;  %p5560_p6 = scmp.lt.s32.totalorder %s6497_s0, %s5558_s7 }
  0xda   : > { %p5555_p9 = pnand %p5553_p2, %p6390_p12  ;;  %p5561_p4 = scmp.lt.s32.totalorder %s5559_s19, %s5552_s24 }
  0xdc   : > { %p5556_p7 = pneg %p5555_p9  ;;  %p5562_p13 = por %p5561_p4, %p5560_p6 }
  0xde   : > { %p5563_p10 = pnand %p5562_p13, %p5556_p7 }
  0xe0   : > { %5566 = shalt.err (!%p5563_p10)
}
  0xe1   : > { %5122 = dma.hbm_to_vmem [thread:$0]  (!%p7678_p8), %s6494_s27, 1024, %s6497_s0, %s7599_s26, %s7600_s8, %s7600_s8, %s7606_s21  }
  0xe2   : > { %s7684_s14 = sld [smem:[#allocation72_spill]]  ;;  %s975_s24 = scalar_lea.vmem [#allocation21], %s6332_s30 }
  0xe3   : > { %s982_s29 = sshll.u32 %s975_s24, 4  ;;  %s7605_s7 = scalar_lea.sflag [#allocation22], %s6335_s10  ;;  %s983_s29 = int_to_ptr.vmem [resolvable:$true] %s982_s29 }
  0xe8   : > { %s6530_s23 = scalar_lea.hbm %s7684_s14, %s6374_s20  ;;  %s5572_s0 = scalar_lea.hbm %s7684_s14, 32 }
  0xe9   : > { %s5567_s19 = scalar_lea.hbm %s6530_s23, 16  ;;  %p5573_p3 = scmp.lt.u32.totalorder %s6530_s23, %s7684_s14 }
  0xea   : > { %p5568_p11 = scmp.ne.s32.totalorder %s6530_s23, %s5567_s19  ;;  %p5574_p5 = scmp.lt.u32.totalorder %s5572_s0, %s5567_s19 }
  0xeb   : > { %p5576_p9 = scmp.lt.u32.totalorder %s5567_s19, %s6530_s23 }
  0xec   : > { %p5570_p0 = pnand %p5568_p11, %p6390_p12  ;;  %p5575_p2 = por %p5574_p5, %p5573_p3 }
  0xee   : > { %p5571_p1 = pneg %p5570_p0  ;;  %p5577_p7 = por %p5576_p9, %p5575_p2 }
  0xf0   : > { %p5578_p6 = pnand %p5577_p7, %p5571_p1 }
  0xf2   : > { %5581 = shalt.err (!%p5578_p6)
}
  0xf3   : > { %s5582_s24 = scalar_lea.vmem %s983_s29, 16  ;;  %s6056_s26 = smov [#allocation21]  }
  0xf4   : > { %p5583_p4 = scmp.ne.s32.totalorder %s983_s29, %s5582_s24  ;;  %s5587_s8 = sshll.u32 %s6056_s26, 4  ;;  %s5588_s8 = int_to_ptr.vmem [resolvable:$false] %s5587_s8 }
  0xf5   : > { %s5589_s12 = scalar_lea.vmem %s5588_s8, 32  ;;  %p5590_p11 = scmp.lt.s32.totalorder %s983_s29, %s5588_s8 }
  0xf6   : > { %p5585_p13 = pnand %p5583_p4, %p6390_p12  ;;  %p5591_p0 = scmp.lt.s32.totalorder %s5589_s12, %s5582_s24 }
  0xf8   : > { %p5586_p10 = pneg %p5585_p13  ;;  %p5592_p8 = por %p5591_p0, %p5590_p11 }
  0xfa   : > { %p5593_p3 = pnand %p5592_p8, %p5586_p10 }
  0xfc   : > { %5596 = shalt.err (!%p5593_p3)
}
  0xfd   : > { %p7685_p5 = scmp.ne.s32.totalorder %s7673_s25, 0  ;;  %s7604_s26 = sshll.u32 %s6332_s30, 7 }
  0xfe   : > { %s7603_s19 = sshll.u32 %s6039_s9, 11  ;;  %s7686_s16 = sld [smem:[#allocation74_spill]] }
  0xff   : > { %5128 = dma.hbm_to_vmem [thread:$0]  (!%p7685_p5), %s6530_s23, 16, %s983_s29, %s7605_s7  }
 0x100   : > { %s1010_s5 = scalar_lea.vmem [#allocation24], %s7604_s26  ;;  %s1007_s24 = scalar_lea.sflag [#allocation25], %s6335_s10 }
 0x101   : > { %s1017_s4 = sshll.u32 %s1010_s5, 4  ;;  %s6564_s4 = int_to_ptr.vmem [resolvable:$true] %s1017_s4 }
 0x104   : > { %s6560_s0 = scalar_lea.hbm %s7686_s16, %s7603_s19  ;;  %s5602_s8 = scalar_lea.hbm %s7686_s16, 4096 }
 0x105   : > { %s5597_s12 = scalar_lea.hbm %s6560_s0, 2048  ;;  %p5603_p9 = scmp.lt.u32.totalorder %s6560_s0, %s7686_s16 }
 0x106   : > { %p5598_p8 = scmp.ne.s32.totalorder %s6560_s0, %s5597_s12  ;;  %p5604_p7 = scmp.lt.u32.totalorder %s5602_s8, %s5597_s12 }
 0x107   : > { %p5606_p4 = scmp.lt.u32.totalorder %s5597_s12, %s6560_s0 }
 0x108   : > { %p5600_p1 = pnand %p5598_p8, %p6390_p12  ;;  %p5605_p6 = por %p5604_p7, %p5603_p9 }
 0x10a   : > { %p5601_p2 = pneg %p5600_p1  ;;  %p5607_p13 = por %p5606_p4, %p5605_p6 }
 0x10c   : > { %p5608_p10 = pnand %p5607_p13, %p5601_p2 }
 0x10e   : > { %5611 = shalt.err (!%p5608_p10)
}
 0x10f   : > { %s5612_s5 = scalar_lea.vmem %s6564_s4, 2048  ;;  %s6057_s23 = smov [#allocation24]  }
 0x110   : > { %p5613_p11 = scmp.ne.s32.totalorder %s6564_s4, %s5612_s5  ;;  %s5617_s29 = sshll.u32 %s6057_s23, 4  ;;  %s5618_s29 = int_to_ptr.vmem [resolvable:$false] %s5617_s29 }
 0x111   : > { %s5619_s19 = scalar_lea.vmem %s5618_s29, 4096  ;;  %p5620_p8 = scmp.lt.s32.totalorder %s6564_s4, %s5618_s29 }
 0x112   : > { %p5615_p0 = pnand %p5613_p11, %p6390_p12  ;;  %p5621_p1 = scmp.lt.s32.totalorder %s5619_s19, %s5612_s5 }
 0x114   : > { %p5616_p3 = pneg %p5615_p0  ;;  %p5622_p9 = por %p5621_p1, %p5620_p8 }
 0x116   : > { %p5623_p7 = pnand %p5622_p9, %p5616_p3 }
 0x118   : > { %5626 = shalt.err (!%p5623_p7)
}
 0x119   : > { %s6058_s12 = smov 128   ;;  %s6059_s8 = smov 8  }
 0x11a   : > { %5134 = dma.hbm_to_vmem [thread:$0]  (!%p7685_p5), %s6560_s0, 2048, %s6564_s4, %s1007_s24, %s6058_s12, %s6058_s12, %s6059_s8  }
 0x11b   : > { %s6060_s27 = smov [#allocation3]   ;;  %s6061_s5 = smov [#allocation8]  }
 0x11c   : > { %s749_s23 = sshll.u32 %s6060_s27, 4  ;;  %s770_s29 = sshll.u32 %s6061_s5, 4  ;;  %s750_s23 = int_to_ptr.vmem [resolvable:$true] %s749_s23  ;;  %s771_s29 = int_to_ptr.vmem [resolvable:$true] %s770_s29 }
 0x11d   : > { %s7687_s7 = sld [smem:[#allocation59_spill]]  ;;  %p7689_p6 = scmp.ne.s32.totalorder %s7675_s2, 0 }
 0x123   : > { %s7688_s21 = smov %s7687_s7  ;;  %s5627_s14 = scalar_lea.hbm %s7687_s7, 16 }
 0x124   : > { %p5628_p2 = scmp.ne.s32.totalorder %s7688_s21, %s5627_s14  ;;  %p5634_p10 = scmp.lt.u32.totalorder %s5627_s14, %s7688_s21 }
 0x126   : > { %p5630_p4 = pnand %p5628_p2, %p7689_p6 }
 0x128   : > { %p5631_p13 = pneg %p5630_p4 }
 0x12a   : > { %p5636_p11 = pnand %p5634_p10, %p5631_p13 }
 0x12c   : > { %5639 = shalt.err (!%p5636_p11)
}
 0x12d   : > { %s5640_s0 = scalar_lea.vmem %s750_s23, 16  ;;  %s5647_s7 = scalar_lea.vmem %s750_s23, 32 }
 0x12e   : > { %p5641_p0 = scmp.ne.s32.totalorder %s750_s23, %s5640_s0  ;;  %p5648_p1 = scmp.lt.s32.totalorder %s750_s23, %s750_s23 }
 0x12f   : > { %p5649_p9 = scmp.lt.s32.totalorder %s5647_s7, %s5640_s0 }
 0x130   : > { %p5643_p3 = pnand %p5641_p0, %p7689_p6 }
 0x131   : > { %p5650_p7 = por %p5649_p9, %p5648_p1 }
 0x132   : > { %p5644_p8 = pneg %p5643_p3 }
 0x134   : > { %p5651_p5 = pnand %p5650_p7, %p5644_p8 }
 0x136   : > { %5654 = shalt.err (!%p5651_p5)
}
 0x137   : > { %p7690_p2 = scmp.ne.s32.totalorder %s7672_s22, 0  ;;  %s7691_s18 = sld [smem:[#allocation61_spill]] }
 0x139   : > { %5094 = dma.hbm_to_vmem [thread:$0]  (!%p7690_p2), %s7688_s21, 16, %s750_s23, [#allocation4]  }
 0x13d   : > { %s5655_s26 = scalar_lea.hbm %s7691_s18, 256 }
 0x13e   : > { %p5656_p4 = scmp.ne.s32.totalorder %s7691_s18, %s5655_s26  ;;  %p5662_p5 = scmp.lt.u32.totalorder %s5655_s26, %s7691_s18 }
 0x140   : > { %p5658_p13 = pnand %p5656_p4, %p7689_p6 }
 0x142   : > { %p5659_p10 = pneg %p5658_p13 }
 0x144   : > { %p5664_p11 = pnand %p5662_p5, %p5659_p10 }
 0x146   : > { %5667 = shalt.err (!%p5664_p11)
}
 0x147   : > { %s5668_s0 = scalar_lea.vmem %s771_s29, 256  ;;  %p5676_p1 = scmp.lt.s32.totalorder %s771_s29, %s771_s29 }
 0x148   : > { %p5669_p0 = scmp.ne.s32.totalorder %s771_s29, %s5668_s0  ;;  %p5677_p9 = scmp.lt.s32.totalorder %s5668_s0, %s5668_s0 }
 0x14a   : > { %p5671_p3 = pnand %p5669_p0, %p7689_p6  ;;  %p5678_p7 = por %p5677_p9, %p5676_p1 }
 0x14c   : > { %p5672_p8 = pneg %p5671_p3 }
 0x14e   : > { %p5679_p12 = pnand %p5678_p7, %p5672_p8 }
 0x150   : > { %5682 = shalt.err (!%p5679_p12)
}
 0x151   : > { %5100 = dma.hbm_to_vmem [thread:$0]  (!%p7690_p2), %s7691_s18, 256, %s771_s29, [#allocation7], %s6058_s12, %s6058_s12, %s6059_s8  }
 0x152   : > { %s7692_s28 = sld [smem:[#allocation63_spill]]  ;;  %s830_s22 = scalar_lea.vmem [#allocation11], %s6332_s30 }
 0x153   : > { %s837_s26 = sshll.u32 %s830_s22, 4  ;;  %p7694_p6 = scmp.ne.s32.totalorder %s7679_s1, 0  ;;  %s838_s26 = int_to_ptr.vmem [resolvable:$true] %s837_s26 }
 0x158   : > { %s7693_s14 = smov %s7692_s28  ;;  %s6636_s17 = scalar_lea.hbm %s7692_s28, %s6374_s20 }
 0x159   : > { %s5683_s4 = scalar_lea.hbm %s6636_s17, 16  ;;  %s5688_s12 = scalar_lea.hbm %s7693_s14, 32 }
 0x15a   : > { %p5684_p12 = scmp.ne.s32.totalorder %s6636_s17, %s5683_s4  ;;  %p5689_p2 = scmp.lt.u32.totalorder %s6636_s17, %s7693_s14 }
 0x15b   : > { %p5690_p10 = scmp.lt.u32.totalorder %s5688_s12, %s5683_s4  ;;  %p5692_p11 = scmp.lt.u32.totalorder %s5683_s4, %s6636_s17 }
 0x15c   : > { %p5686_p4 = pnand %p5684_p12, %p7694_p6 }
 0x15d   : > { %p5691_p5 = por %p5690_p10, %p5689_p2 }
 0x15e   : > { %p5687_p13 = pneg %p5686_p4 }
 0x15f   : > { %p5693_p0 = por %p5692_p11, %p5691_p5 }
 0x161   : > { %p5694_p3 = pnand %p5693_p0, %p5687_p13 }
 0x163   : > { %5697 = shalt.err (!%p5694_p3)
}
 0x164   : > { %s5698_s19 = scalar_lea.vmem %s838_s26, 16  ;;  %s6062_s0 = smov [#allocation11]  }
 0x165   : > { %p5699_p8 = scmp.ne.s32.totalorder %s838_s26, %s5698_s19  ;;  %s5703_s23 = sshll.u32 %s6062_s0, 4  ;;  %s5704_s23 = int_to_ptr.vmem [resolvable:$false] %s5703_s23 }
 0x166   : > { %s5705_s7 = scalar_lea.vmem %s5704_s23, 32  ;;  %p5706_p7 = scmp.lt.s32.totalorder %s838_s26, %s5704_s23 }
 0x167   : > { %p5701_p1 = pnand %p5699_p8, %p7694_p6  ;;  %p5707_p12 = scmp.lt.s32.totalorder %s5705_s7, %s5698_s19 }
 0x169   : > { %p5702_p9 = pneg %p5701_p1  ;;  %p5708_p4 = por %p5707_p12, %p5706_p7 }
 0x16b   : > { %p5709_p2 = pnand %p5708_p4, %p5702_p9 }
 0x16d   : > { %5712 = shalt.err (!%p5709_p2)
}
 0x16e   : > { %p7695_p10 = scmp.ne.s32.totalorder %s7673_s25, 0  ;;  %s7696_s2 = scalar_lea.sflag [#allocation10], %s6335_s10 }
 0x16f   : > { %s7697_s22 = sld [smem:[#allocation66_spill]]  ;;  %s873_s27 = scalar_lea.vmem [#allocation14], %s6425_s6 }
 0x170   : > { %5107 = dma.hbm_to_vmem [thread:$0]  (!%p7695_p10), %s6636_s17, 16, %s838_s26, %s7696_s2  }
 0x171   : > { %s880_s5 = sshll.u32 %s873_s27, 4  ;;  %s6665_s5 = int_to_ptr.vmem [resolvable:$true] %s880_s5 }
 0x175   : > { %s6662_s4 = scalar_lea.hbm %s7697_s22, %s6452_s3  ;;  %s5718_s26 = scalar_lea.hbm %s7697_s22, 2048 }
 0x176   : > { %s5713_s12 = scalar_lea.hbm %s6662_s4, 1024  ;;  %p5719_p0 = scmp.lt.u32.totalorder %s6662_s4, %s7697_s22 }
 0x177   : > { %p5714_p13 = scmp.ne.s32.totalorder %s6662_s4, %s5713_s12  ;;  %p5720_p3 = scmp.lt.u32.totalorder %s5718_s26, %s5713_s12 }
 0x178   : > { %p5722_p1 = scmp.lt.u32.totalorder %s5713_s12, %s6662_s4 }
 0x179   : > { %p5716_p5 = pnand %p5714_p13, %p7694_p6  ;;  %p5721_p8 = por %p5720_p3, %p5719_p0 }
 0x17b   : > { %p5717_p11 = pneg %p5716_p5  ;;  %p5723_p9 = por %p5722_p1, %p5721_p8 }
 0x17d   : > { %p5724_p7 = pnand %p5723_p9, %p5717_p11 }
 0x17f   : > { %5727 = shalt.err (!%p5724_p7)
}
 0x180   : > { %s5728_s6 = scalar_lea.vmem %s6665_s5, 1024  ;;  %s6063_s19 = smov [#allocation14]  }
 0x181   : > { %p5729_p12 = scmp.ne.s32.totalorder %s6665_s5, %s5728_s6  ;;  %s5733_s0 = sshll.u32 %s6063_s19, 4  ;;  %s5734_s0 = int_to_ptr.vmem [resolvable:$false] %s5733_s0 }
 0x182   : > { %s5735_s23 = scalar_lea.vmem %s5734_s0, 2048  ;;  %p5736_p13 = scmp.lt.s32.totalorder %s6665_s5, %s5734_s0 }
 0x183   : > { %p5731_p4 = pnand %p5729_p12, %p7694_p6  ;;  %p5737_p5 = scmp.lt.s32.totalorder %s5735_s23, %s5728_s6 }
 0x185   : > { %p5732_p2 = pneg %p5731_p4  ;;  %p5738_p0 = por %p5737_p5, %p5736_p13 }
 0x187   : > { %p5739_p3 = pnand %p5738_p0, %p5732_p2 }
 0x189   : > { %5742 = shalt.err (!%p5739_p3)
}
 0x18a   : > { %s7698_s7 = smov 4   ;;  %s7699_s2 = smov 64  }
 0x18b   : > { %s7700_s16 = scalar_lea.sflag [#allocation13], %s6335_s10  ;;  %s7701_s11 = sld [smem:[#allocation69_spill]] }
 0x18c   : > { %5113 = dma.hbm_to_vmem [thread:$0]  (!%p7695_p10), %s6662_s4, 1024, %s6665_s5, %s7700_s16, %s7699_s2, %s7699_s2, %s7698_s7  }
 0x18d   : > { %s920_s8 = scalar_lea.vmem [#allocation17], %s6332_s30 }
 0x18e   : > { %s927_s17 = sshll.u32 %s920_s8, 4  ;;  %s928_s17 = int_to_ptr.vmem [resolvable:$true] %s927_s17 }
 0x191   : > { %s6697_s12 = scalar_lea.hbm %s7701_s11, %s6374_s20  ;;  %s5748_s4 = scalar_lea.hbm %s7701_s11, 32 }
 0x192   : > { %s5743_s26 = scalar_lea.hbm %s6697_s12, 16  ;;  %p5749_p9 = scmp.lt.u32.totalorder %s6697_s12, %s7701_s11 }
 0x193   : > { %p5744_p11 = scmp.ne.s32.totalorder %s6697_s12, %s5743_s26  ;;  %p5750_p7 = scmp.lt.u32.totalorder %s5748_s4, %s5743_s26 }
 0x194   : > { %p5752_p4 = scmp.lt.u32.totalorder %s5743_s26, %s6697_s12 }
 0x195   : > { %p5746_p8 = pnand %p5744_p11, %p7694_p6  ;;  %p5751_p12 = por %p5750_p7, %p5749_p9 }
 0x197   : > { %p5747_p1 = pneg %p5746_p8  ;;  %p5753_p2 = por %p5752_p4, %p5751_p12 }
 0x199   : > { %p5754_p13 = pnand %p5753_p2, %p5747_p1 }
 0x19b   : > { %5757 = shalt.err (!%p5754_p13)
}
 0x19c   : > { %s5758_s19 = scalar_lea.vmem %s928_s17, 16  ;;  %s6064_s0 = smov [#allocation17]  }
 0x19d   : > { %p5759_p5 = scmp.ne.s32.totalorder %s928_s17, %s5758_s19  ;;  %s5763_s23 = sshll.u32 %s6064_s0, 4  ;;  %s5764_s23 = int_to_ptr.vmem [resolvable:$false] %s5763_s23 }
 0x19e   : > { %s5765_s16 = scalar_lea.vmem %s5764_s23, 32  ;;  %p5766_p11 = scmp.lt.s32.totalorder %s928_s17, %s5764_s23 }
 0x19f   : > { %p5761_p0 = pnand %p5759_p5, %p7694_p6  ;;  %p5767_p8 = scmp.lt.s32.totalorder %s5765_s16, %s5758_s19 }
 0x1a1   : > { %p5762_p3 = pneg %p5761_p0  ;;  %p5768_p10 = por %p5767_p8, %p5766_p11 }
 0x1a3   : > { %p5769_p7 = pnand %p5768_p10, %p5762_p3 }
 0x1a5   : > { %5772 = shalt.err (!%p5769_p7)
}
 0x1a6   : > { %p7702_p9 = scmp.ne.s32.totalorder %s7673_s25, 0  ;;  %s7703_s28 = scalar_lea.sflag [#allocation16], %s6335_s10 }
 0x1a7   : > { %s7704_s13 = sld [smem:[#allocation71_spill]]  ;;  %s958_s29 = scalar_lea.vmem [#allocation20], %s6332_s30 }
 0x1a8   : > { %5119 = dma.hbm_to_vmem [thread:$0]  (!%p7702_p9), %s6697_s12, 16, %s928_s17, %s7703_s28  }
 0x1a9   : > { %s965_s3 = sshll.u32 %s958_s29, 4  ;;  %s966_s3 = int_to_ptr.vmem [resolvable:$true] %s965_s3 }
 0x1ad   : > { %s6723_s26 = scalar_lea.hbm %s7704_s13, %s6374_s20  ;;  %s5778_s12 = scalar_lea.hbm %s7704_s13, 32 }
 0x1ae   : > { %s5773_s4 = scalar_lea.hbm %s6723_s26, 16  ;;  %p5779_p4 = scmp.lt.u32.totalorder %s6723_s26, %s7704_s13 }
 0x1af   : > { %p5774_p10 = scmp.ne.s32.totalorder %s6723_s26, %s5773_s4  ;;  %p5780_p2 = scmp.lt.u32.totalorder %s5778_s12, %s5773_s4 }
 0x1b0   : > { %p5782_p5 = scmp.lt.u32.totalorder %s5773_s4, %s6723_s26 }
 0x1b1   : > { %p5776_p1 = pnand %p5774_p10, %p7694_p6  ;;  %p5781_p13 = por %p5780_p2, %p5779_p4 }
 0x1b3   : > { %p5777_p12 = pneg %p5776_p1  ;;  %p5783_p0 = por %p5782_p5, %p5781_p13 }
 0x1b5   : > { %p5784_p3 = pnand %p5783_p0, %p5777_p12 }
 0x1b7   : > { %5787 = shalt.err (!%p5784_p3)
}
 0x1b8   : > { %s5788_s0 = scalar_lea.vmem %s966_s3, 16  ;;  %s6065_s23 = smov [#allocation20]  }
 0x1b9   : > { %p5789_p11 = scmp.ne.s32.totalorder %s966_s3, %s5788_s0  ;;  %s5793_s16 = sshll.u32 %s6065_s23, 4  ;;  %s5794_s16 = int_to_ptr.vmem [resolvable:$false] %s5793_s16 }
 0x1ba   : > { %s5795_s28 = scalar_lea.vmem %s5794_s16, 32  ;;  %p5796_p10 = scmp.lt.s32.totalorder %s966_s3, %s5794_s16 }
 0x1bb   : > { %p5791_p8 = pnand %p5789_p11, %p7694_p6  ;;  %p5797_p1 = scmp.lt.s32.totalorder %s5795_s28, %s5788_s0 }
 0x1bd   : > { %p5792_p7 = pneg %p5791_p8  ;;  %p5798_p9 = por %p5797_p1, %p5796_p10 }
 0x1bf   : > { %p5799_p2 = pnand %p5798_p9, %p5792_p7 }
 0x1c1   : > { %5802 = shalt.err (!%p5799_p2)
}
 0x1c2   : > { %p7705_p4 = scmp.ne.s32.totalorder %s7673_s25, 0  ;;  %s7706_s27 = scalar_lea.sflag [#allocation19], %s6335_s10 }
 0x1c3   : > { %s7707_s15 = sld [smem:[#allocation73_spill]]  ;;  %s992_s5 = scalar_lea.vmem [#allocation23], %s6332_s30 }
 0x1c4   : > { %5125 = dma.hbm_to_vmem [thread:$0]  (!%p7705_p4), %s6723_s26, 16, %s966_s3, %s7706_s27  }
 0x1c5   : > { %s999_s6 = sshll.u32 %s992_s5, 4  ;;  %s4651_s12 = sshll.u32 %s6332_s30, 1  ;;  %s1000_s6 = int_to_ptr.vmem [resolvable:$true] %s999_s6 }
 0x1c9   : > { %s6749_s4 = scalar_lea.hbm %s7707_s15, %s6374_s20  ;;  %s5808_s3 = scalar_lea.hbm %s7707_s15, 32 }
 0x1ca   : > { %s5803_s17 = scalar_lea.hbm %s6749_s4, 16  ;;  %p5809_p5 = scmp.lt.u32.totalorder %s6749_s4, %s7707_s15 }
 0x1cb   : > { %p5804_p9 = scmp.ne.s32.totalorder %s6749_s4, %s5803_s17  ;;  %p5810_p0 = scmp.lt.u32.totalorder %s5808_s3, %s5803_s17 }
 0x1cc   : > { %p5812_p11 = scmp.lt.u32.totalorder %s5803_s17, %s6749_s4 }
 0x1cd   : > { %p5806_p12 = pnand %p5804_p9, %p7694_p6  ;;  %p5811_p3 = por %p5810_p0, %p5809_p5 }
 0x1cf   : > { %p5807_p13 = pneg %p5806_p12  ;;  %p5813_p8 = por %p5812_p11, %p5811_p3 }
 0x1d1   : > { %p5814_p7 = pnand %p5813_p8, %p5807_p13 }
 0x1d3   : > { %5817 = shalt.err (!%p5814_p7)
}
 0x1d4   : > { %s5818_s23 = scalar_lea.vmem %s1000_s6, 16  ;;  %s6066_s16 = smov [#allocation23]  }
 0x1d5   : > { %p5819_p10 = scmp.ne.s32.totalorder %s1000_s6, %s5818_s23  ;;  %s5823_s28 = sshll.u32 %s6066_s16, 4  ;;  %s5824_s28 = int_to_ptr.vmem [resolvable:$false] %s5823_s28 }
 0x1d6   : > { %s5825_s27 = scalar_lea.vmem %s5824_s28, 32  ;;  %p5826_p9 = scmp.lt.s32.totalorder %s1000_s6, %s5824_s28 }
 0x1d7   : > { %p5821_p1 = pnand %p5819_p10, %p7694_p6  ;;  %p5827_p12 = scmp.lt.s32.totalorder %s5825_s27, %s5818_s23 }
 0x1d9   : > { %p5822_p2 = pneg %p5821_p1  ;;  %p5828_p4 = por %p5827_p12, %p5826_p9 }
 0x1db   : > { %p5829_p0 = pnand %p5828_p4, %p5822_p2 }
 0x1dd   : > { %5832 = shalt.err (!%p5829_p0)
}
 0x1de   : > { %p7708_p5 = scmp.ne.s32.totalorder %s7673_s25, 0  ;;  %s7709_s8 = scalar_lea.sflag [#allocation22], %s6335_s10 }
 0x1df   : > { %s4798_s29 = sshll.u32 %s6039_s9, 5  ;;  %s7710_s19 = sld [smem:[#allocation75_spill]] }
 0x1e0   : > { %5131 = dma.hbm_to_vmem [thread:$0]  (!%p7708_p5), %s6749_s4, 16, %s1000_s6, %s7709_s8  }
 0x1e1   : > { %s1031_s3 = scalar_lea.vmem [#allocation26], %s4651_s12 }
 0x1e2   : > { %s1039_s0 = sshll.u32 %s1031_s3, 4  ;;  %s1040_s0 = int_to_ptr.vmem [resolvable:$true] %s1039_s0 }
 0x1e5   : > { %s6776_s26 = scalar_lea.hbm %s7710_s19, %s4798_s29  ;;  %s5838_s23 = scalar_lea.hbm %s7710_s19, 64 }
 0x1e6   : > { %s5833_s20 = scalar_lea.hbm %s6776_s26, 32  ;;  %p5839_p11 = scmp.lt.u32.totalorder %s6776_s26, %s7710_s19 }
 0x1e7   : > { %p5834_p4 = scmp.ne.s32.totalorder %s6776_s26, %s5833_s20  ;;  %p5840_p8 = scmp.lt.u32.totalorder %s5838_s23, %s5833_s20 }
 0x1e8   : > { %p5842_p10 = scmp.lt.u32.totalorder %s5833_s20, %s6776_s26 }
 0x1e9   : > { %p5836_p13 = pnand %p5834_p4, %p7694_p6  ;;  %p5841_p7 = por %p5840_p8, %p5839_p11 }
 0x1eb   : > { %p5837_p3 = pneg %p5836_p13  ;;  %p5843_p1 = por %p5842_p10, %p5841_p7 }
 0x1ed   : > { %p5844_p2 = pnand %p5843_p1, %p5837_p3 }
 0x1ef   : > { %5847 = shalt.err (!%p5844_p2)
}
 0x1f0   : > { %s5848_s12 = scalar_lea.vmem %s1040_s0, 32  ;;  %s6067_s27 = smov [#allocation26]  }
 0x1f1   : > { %p5849_p9 = scmp.ne.s32.totalorder %s1040_s0, %s5848_s12  ;;  %s5853_s8 = sshll.u32 %s6067_s27, 4  ;;  %s5854_s8 = int_to_ptr.vmem [resolvable:$false] %s5853_s8 }
 0x1f2   : > { %s5855_s29 = scalar_lea.vmem %s5854_s8, 64  ;;  %p5856_p4 = scmp.lt.s32.totalorder %s1040_s0, %s5854_s8 }
 0x1f3   : > { %p5851_p12 = pnand %p5849_p9, %p7694_p6  ;;  %p5857_p13 = scmp.lt.s32.totalorder %s5855_s29, %s5848_s12 }
 0x1f5   : > { %p5852_p0 = pneg %p5851_p12  ;;  %p5858_p5 = por %p5857_p13, %p5856_p4 }
 0x1f7   : > { %p5859_p8 = pnand %p5858_p5, %p5852_p0 }
 0x1f9   : > { %5862 = shalt.err (!%p5859_p8)
}
 0x1fa   : > { %p7711_p11 = scmp.ne.s32.totalorder %s7673_s25, 0  ;;  %s7712_s5 = sshll.u32 %s6039_s9, 11 }
 0x1fb   : > { %s7713_s20 = sld [smem:[#allocation76_spill]]  ;;  %s7714_s6 = sshll.u32 %s6332_s30, 7 }
 0x1fc   : > { %5137 = dma.hbm_to_vmem [thread:$0]  (!%p7711_p11), %s6776_s26, 32, %s1040_s0, %s1007_s24  }
 0x1fd   : > { %s1050_s23 = scalar_lea.vmem [#allocation27], %s7714_s6  ;;  %s1047_s10 = scalar_lea.sflag [#allocation28], %s6332_s30 }
 0x1fe   : > { %s1057_s16 = sshll.u32 %s1050_s23, 4  ;;  %s6808_s16 = int_to_ptr.vmem [resolvable:$true] %s1057_s16 }
 0x201   : > { %s6804_s4 = scalar_lea.hbm %s7713_s20, %s7712_s5  ;;  %s5868_s0 = scalar_lea.hbm %s7713_s20, 4096 }
 0x202   : > { %s5863_s28 = scalar_lea.hbm %s6804_s4, 2048  ;;  %p5869_p10 = scmp.lt.u32.totalorder %s6804_s4, %s7713_s20 }
 0x203   : > { %p5864_p5 = scmp.ne.s32.totalorder %s6804_s4, %s5863_s28  ;;  %p5870_p1 = scmp.lt.u32.totalorder %s5868_s0, %s5863_s28 }
 0x204   : > { %p5872_p9 = scmp.lt.u32.totalorder %s5863_s28, %s6804_s4 }
 0x205   : > { %p5866_p3 = pnand %p5864_p5, %p7694_p6  ;;  %p5871_p2 = por %p5870_p1, %p5869_p10 }
 0x207   : > { %p5867_p7 = pneg %p5866_p3  ;;  %p5873_p12 = por %p5872_p9, %p5871_p2 }
 0x209   : > { %p5874_p0 = pnand %p5873_p12, %p5867_p7 }
 0x20b   : > { %5877 = shalt.err (!%p5874_p0)
}
 0x20c   : > { %s5878_s8 = scalar_lea.vmem %s6808_s16, 2048  ;;  %s6068_s29 = smov [#allocation27]  }
 0x20d   : > { %p5879_p4 = scmp.ne.s32.totalorder %s6808_s16, %s5878_s8  ;;  %s5883_s5 = sshll.u32 %s6068_s29, 4  ;;  %s5884_s5 = int_to_ptr.vmem [resolvable:$false] %s5883_s5 }
 0x20e   : > { %s5885_s17 = scalar_lea.vmem %s5884_s5, 4096  ;;  %p5886_p5 = scmp.lt.s32.totalorder %s6808_s16, %s5884_s5 }
 0x20f   : > { %p5881_p13 = pnand %p5879_p4, %p7694_p6  ;;  %p5887_p3 = scmp.lt.s32.totalorder %s5885_s17, %s5878_s8 }
 0x211   : > { %p5882_p8 = pneg %p5881_p13  ;;  %p5888_p10 = por %p5887_p3, %p5886_p5 }
 0x213   : > { %p5889_p1 = pnand %p5888_p10, %p5882_p8 }
 0x215   : > { %5892 = shalt.err (!%p5889_p1)
}
 0x216   : > { %5140 = dma.hbm_to_vmem [thread:$0]  (!%p7711_p11), %s6804_s4, 2048, %s6808_s16, %s1047_s10, %s7699_s2, %s7699_s2, %s7698_s7  }
 0x217   : > { %s7715_s1 = sld [smem:[#allocation57_spill]] }
 0x21d   : > { %p7716_p6 = scmp.ne.s32.totalorder %s7715_s1, 0 }
 0x21e   : > { %s7717_s3 = sld [smem:[#allocation49_spill]] (!%p7716_p6) }
 0x21f   : > { %1075 = sbr.rel (%p7716_p6) target bundleno = 4214 (0x1076), region = 124 }
 0x224   : > { %p7718_p7 = scmp.eq.s32.totalorder (!%p7716_p6), %s7717_s3, 0 }
 0x226   : > { %5966 = dma.done.wait (%p7718_p7), [#allocation4], 16   ;;  %p7719_p2 = pmov %p7718_p7 }
 0x228   : > { %5968 = vsyncadd (%p7719_p2), [#allocation4], 4294967280  ;;  %p7720_p9 = pmov %p7719_p2 }
 0x229   : > { %p7721_p12 = pmov %p7719_p2 }
 0x22a   : > { %5970 = dma.done.wait (%p7720_p9), [#allocation7], 272  }
 0x22b   : > { %5972 = vsyncadd (%p7721_p12), [#allocation7], 4294967024  ;;  %s7722_s30 = sld [smem:[#allocation43_spill]]  ;;  %s7723_s25 = sld [smem:[#allocation53_spill]] }
 0x22c   : > { %s6848_s6 = sand.u32 1, %s7717_s3  }
 0x22d   : > { %s1090_s2 = scalar_lea.sflag [#allocation10], %s6848_s6 }
 0x231   : > { %s6851_s7 = sand.u32 1, %s7722_s30   ;;  %p7724_p11 = scmp.ne.s32.totalorder %s7723_s25, 0 }
 0x233   : > { %5974 = dma.done.wait (%p7724_p11), %s1090_s2, 32  }
 0x234   : > { %5976 = vsyncadd (%p7724_p11), %s1090_s2, 4294967264  ;;  %s1106_s16 = scalar_lea.sflag [#allocation13], %s6848_s6 }
 0x235   : > { %5978 = dma.done.wait (%p7724_p11), %s1106_s16, 1040  }
 0x236   : > { %5980 = vsyncadd (%p7724_p11), %s1106_s16, 4294966256  ;;  %s4661_s28 = sshll.u32 %s6851_s7, 6  ;;  %s1123_s26 = scalar_lea.sflag [#allocation16], %s6848_s6 }
 0x237   : > { %s6867_s24 = scalar_lea.vmem [#allocation14], %s4661_s28  ;;  %s6870_s0 = scalar_lea.vmem [#allocation15], %s4661_s28 }
 0x238   : > { %5982 = dma.done.wait (%p7724_p11), %s1123_s26, 1040  }
 0x239   : > { %5984 = vsyncadd (%p7724_p11), %s1123_s26, 4294966256  ;;  %s1140_s27 = scalar_lea.sflag [#allocation19], %s6848_s6  ;;  %s6878_s8 = scalar_lea.vmem [#allocation18], %s4661_s28 }
 0x23a   : > { %5986 = dma.done.wait (%p7724_p11), %s1140_s27, 1040  }
 0x23b   : > { %5988 = vsyncadd (%p7724_p11), %s1140_s27, 4294966256  ;;  %s1157_s5 = scalar_lea.sflag [#allocation22], %s6848_s6 }
 0x23c   : > { %5990 = dma.done.wait (%p7724_p11), %s1157_s5, 32  }
 0x23d   : > { %5992 = vsyncadd (%p7724_p11), %s1157_s5, 4294967264  ;;  %s4664_s1 = sshll.u32 %s6851_s7, 7  ;;  %s1173_s30 = scalar_lea.sflag [#allocation25], %s6848_s6 }
 0x23e   : > { %s6894_s2 = scalar_lea.vmem [#allocation24], %s4664_s1 }
 0x23f   : > { %5994 = dma.done.wait (%p7724_p11), %s1173_s30, 2080  }
 0x240   : > { %5996 = vsyncadd (%p7724_p11), %s1173_s30, 4294965216  ;;  %s4665_s16 = sshll.u32 %s6851_s7, 1  ;;  %s1191_s26 = scalar_lea.sflag [#allocation28], %s6851_s7 }
 0x241   : > { %s6901_s28 = scalar_lea.vmem [#allocation26], %s4665_s16  ;;  %s6904_s27 = scalar_lea.vmem [#allocation27], %s4664_s1 }
 0x242   : > { %5998 = dma.done.wait (%p7724_p11), %s1191_s26, 2048  }
 0x243   : > { %6000 = vsyncadd (%p7724_p11), %s1191_s26, 4294965248  ;;  %s7725_s6 = sld [smem:[#allocation41_spill]]  ;;  %s7726_s5 = sld [smem:[#allocation46_spill]] }
 0x244   : > { %s7727_s3 = sld [smem:[#allocation45_spill]]  ;;  %s7728_s29 = sld [smem:[#allocation58_spill]] }
 0x245   : > { %s7729_s11 = sld [smem:[#allocation64_spill]]  ;;  %s7730_s14 = sld [smem:[#allocation67_spill]] }
 0x246   : > { %s7731_s20 = sld [smem:[#allocation77_spill]] }
 0x249   : > { %s7615_s30 = sand.u32 1, %s7725_s6   ;;  %p1332_p0 = scmp.lt.s32.totalorder %s7726_s5, 1 }
 0x24a   : > { %s4667_s17 = sshll.u32 %s7615_s30, 4  ;;  %p1337_p4 = scmp.lt.s32.totalorder %s7727_s3, 1 }
 0x24b   : > { %s7779_s5 = smov (!%p1332_p0, %s7726_s5), 1  ;;  %s6936_s22 = scalar_lea.vmem [#allocation29], %s4667_s17 }
 0x24c   : > { %s6917_s16 = scalar_select %p1337_p4, %s7727_s3, 1 }
 0x24d   : > { %s4800_s1 = sshll.u32 %s7779_s5, 4  ;;  %p4672_p13 = scmp.ne.s32.totalorder %s7727_s3, 0 }
 0x24e   : > { %s1336_s12 = scalar_lea.vmem %s7728_s29, %s4800_s1  ;;  %s4801_s10 = sshll.u32 %s6917_s16, 6  ;;  %v6069_v1 = vmov (!%p4672_p13), 0   ;;  %v1378_v3 = vlaneseq (!%p4672_p13)  ;;  %v1366_v5 = vld [vmem:[#allocation3] sm:$0x1] (!%p4672_p13)  ;;  %v1355_v8 = vld [vmem:[#allocation8] sm:$0xff] (!%p4672_p13)  ;;  %v1356_v13 = vld [vmem:[#allocation8 + $0x8] sm:$0xff] (!%p4672_p13) }
 0x24f   : > { %s6926_s13 = scalar_lea.vmem %s7729_s11, %s4801_s10  ;;  %s1344_s15 = scalar_lea.vmem %s7730_s14, %s6917_s16  ;;  %v1353_v0 = vld [vmem:[%s1336_s12] sm:$0xff] (!%p4672_p13)  ;;  %5261 = vset.pattern.permute.xlu0 (!%p4672_p13), %v6069_v1  ;;  %v1354_v2 = vld [vmem:[%s1336_s12 + $0x8] sm:$0xff] (!%p4672_p13)  ;;  %v1367_v6 = vunpack.c.l.bf16 (!%p4672_p13), %v1366_v5 }
 0x250   : > { %s1347_s21 = scalar_lea.vmem %s7731_s20, %s6917_s16  ;;  %1352 = sbr.rel (%p4672_p13) target bundleno = 729 (0x2d9), region = 192  ;;  %1370 = vperm.xlu0 (!%p4672_p13), %5261, %v1353_v0   ;;  %v1379_v4 = vshrl.u32 (!%p4672_p13), %v1378_v3, 7  ;;  %v4673_v9 = vld [vmem:[#allocation6] ss:$0 sm:$0xff] (!%p4672_p13) }
 0x251   : > { %v1364_v11 = vadd.f32 (!%p4672_p13), %v4673_v9, %v1355_v8  ;;  %v1365_v16 = vadd.f32 (!%p4672_p13), %v4673_v9, %v1356_v13 }
 0x252   : > { %v1380_v7 = vsub.s32 (!%p4672_p13), 0, %v1379_v4 }
 0x254   : > { %1375 = vperm.xlu0 (!%p4672_p13), %5261, %v1354_v2   ;;  %v1381_v10 = vrot.slane (!%p4672_p13), %v1367_v6, %v1380_v7 }
 0x2cf   : > { %v1371_v12 = vpop.permute.xlu0 %1370 }
 0x2d0   : > { %v1382_v14 = vmul.f32 %v1381_v10, %v1371_v12 }
 0x2d2   : > { %v1384_v15 = vadd.f32 %v1382_v14, %v1364_v11 }
 0x2d3   : > { %v1376_v17 = vpop.permute.xlu0 %1375 }
 0x2d4   : > { %1386 = vst [vmem:[#allocation2] sm:$0xff] %v1384_v15  ;;  %v1383_v18 = vmul.f32 %v1381_v10, %v1376_v17 }
 0x2d6   : > { %v1385_v19 = vadd.f32 %v1383_v18, %v1365_v16 }
 0x2d8   : > { %1387 = vst [vmem:[#allocation2 + $0x8] sm:$0xff] %v1385_v19 }
 0x2d9 PF: > { %v5277_v22 = vld [vmem:[%s6926_s13] sm:$0xff]   ;;  %v5279_v24 = vld [vmem:[%s6926_s13 + $0x8] sm:$0xff]   ;;  %v6070_v25 = vmov 0.0   ;;  %v5281_v35 = vld [vmem:[%s6926_s13 + $0x10] sm:$0xff]   ;;  %vm6071_vm0 = vmmov 0   ;;  %s7732_s11 = scalar_lea.vmem [#allocation9], %s6851_s7 }
 0x2da   : > { %v5278_v23 = vld [vmem:[%s6867_s24] sm:$0xff]   ;;  %4891 = vmatprep.subr.bf16.mxu0 %v6070_v25  ;;  %4911 = vmatprep.subr.bf16.mxu1 %v6070_v25  ;;  %v5280_v34 = vld [vmem:[%s6867_s24 + $0x8] sm:$0xff]   ;;  %v5282_v36 = vld [vmem:[%s6867_s24 + $0x10] sm:$0xff]   ;;  %s6072_s20 = smov 64   ;;  %s6073_s4 = smov 96   ;;  %vm2656_vm1 = vcmask 261120  }
 0x2db   : > { %v1388_v20 = vld [vmem:[#allocation2] sm:$0xff]  ;;  %4892 = vmatpush3.bf16.msra.mxu0 %v5277_v22  ;;  %4912 = vmatpush3.bf16.msra.mxu1 %v5278_v23  ;;  %v5283_v37 = vld [vmem:[%s6926_s13 + $0x18] sm:$0xff]   ;;  %v5285_v39 = vld [vmem:[%s6926_s13 + $0x20] sm:$0xff]   ;;  %s7735_s23 = scalar_lea.vmem [#allocation12], %s6851_s7  ;;  %vm2853_vm2 = vcmask 130048   ;;  %s7736_s10 = scalar_lea.vmem [#allocation17], %s6851_s7 }
 0x2dc   : > { %1392 = vadd.xlane.f32.xlu0 %v1388_v20  ;;  %4893 = vmatprep.subr.bf16.mxu0 %v6070_v25  ;;  %v5284_v38 = vld [vmem:[%s6867_s24 + $0x18] sm:$0xff]   ;;  %v5286_v40 = vld [vmem:[%s6867_s24 + $0x20] sm:$0xff]   ;;  %v5287_v41 = vld [vmem:[%s6926_s13 + $0x28] sm:$0xff]   ;;  %vm3420_vm3 = vcmask 523264   ;;  %vm3423_vm4 = vcmask 785408   ;;  %s7739_s12 = scalar_lea.vmem [#allocation23], %s6851_s7 }
 0x2dd   : > { %4913 = vmatprep.subr.bf16.mxu1 %v6070_v25  ;;  %4907 = vmatprep.mubr.msk.bf16.mxu0 %vm6071_vm0, %v6070_v25  ;;  %v5288_v42 = vld [vmem:[%s6867_s24 + $0x28] sm:$0xff]   ;;  %v5289_v43 = vld [vmem:[%s6926_s13 + $0x30] sm:$0xff]   ;;  %v5291_v45 = vld [vmem:[%s6926_s13 + $0x38] sm:$0xff]   ;;  %s7733_s13 = scalar_lea.vmem [#allocation11], %s6851_s7  ;;  %s7741_s17 = sld [smem:[#allocation45_spill]] }
 0x2de   : > { %4927 = vmatprep.mubr.msk.bf16.mxu1 %vm6071_vm0, %v6070_v25  ;;  %v5290_v44 = vld [vmem:[%s6867_s24 + $0x30] sm:$0xff]   ;;  %v5292_v46 = vld [vmem:[%s6867_s24 + $0x38] sm:$0xff]   ;;  %v4674_v55 = vld [vmem:[%s7732_s11] ss:$0 sm:$0xff]  ;;  %s7737_s24 = scalar_lea.vmem [#allocation20], %s6851_s7 }
 0x2df   : > { %v1389_v21 = vld [vmem:[#allocation2 + $0x8] sm:$0xff]  ;;  %4894 = vmatpush3.bf16.msra.mxu0 %v5279_v24  ;;  %4914 = vmatpush3.bf16.msra.mxu1 %v5280_v34  ;;  %v4675_v59 = vld [vmem:[%s7733_s13] ss:$0 sm:$0xff]  ;;  %v5294_v1 = vld [vmem:[%s6870_s0 + $0x8] sm:$0xff]  }
 0x2e0   : > { %1394 = vadd.xlane.f32.xlu0 %v1389_v21  ;;  %4895 = vmatprep.subr.bf16.mxu0 %v6070_v25  ;;  %v5293_v63 = vld [vmem:[%s6870_s0] sm:$0xff]   ;;  %v5295_v2 = vld [vmem:[%s6870_s0 + $0x10] sm:$0xff]   ;;  %v5296_v3 = vld [vmem:[%s6870_s0 + $0x18] sm:$0xff]  }
 0x2e1   : > { %4915 = vmatprep.subr.bf16.mxu1 %v6070_v25  ;;  %v5297_v4 = vld [vmem:[%s6870_s0 + $0x20] sm:$0xff]   ;;  %v5298_v5 = vld [vmem:[%s6870_s0 + $0x28] sm:$0xff]   ;;  %v5299_v6 = vld [vmem:[%s6870_s0 + $0x30] sm:$0xff]  }
 0x2e2   : > { %v5300_v7 = vld [vmem:[%s6870_s0 + $0x38] sm:$0xff]   ;;  %v4685_v8 = vld [vmem:[%s1344_s15] ss:$0 sm:$0xff]  ;;  %s6074_s15 = smov 32   ;;  %s7738_s0 = scalar_lea.vmem [#allocation21], %s6851_s7 }
 0x2e3   : > { %4896 = vmatpush3.bf16.msra.mxu0 %v5281_v35  ;;  %4916 = vmatpush3.bf16.msra.mxu1 %v5282_v36  ;;  %v4676_v19 = vld [vmem:[%s7735_s23] ss:$0 sm:$0xff]  ;;  %p4771_p8 = scmp.ne.s32.totalorder %s7741_s17, 1 }
 0x2e4   : > { %4897 = vmatprep.subr.bf16.mxu0 %v6070_v25  ;;  %4917 = vmatprep.subr.bf16.mxu1 %v6070_v25  ;;  %vm6079_vm5 = vmmov (!%p4771_p8), 0   ;;  %s7748_s1 = sld [smem:[#allocation81_spill]] (!%p4771_p8)  ;;  %s7749_s6 = sld [smem:[#allocation83_spill]] (!%p4771_p8) }
 0x2e7   : > { %4898 = vmatpush3.bf16.msra.mxu0 %v5283_v37  ;;  %4918 = vmatpush3.bf16.msra.mxu1 %v5284_v38 }
 0x2e8   : > { %4899 = vmatprep.subr.bf16.mxu0 %v6070_v25  ;;  %4919 = vmatprep.subr.bf16.mxu1 %v6070_v25 }
 0x2eb   : > { %4900 = vmatpush3.bf16.msra.mxu0 %v5285_v39  ;;  %4920 = vmatpush3.bf16.msra.mxu1 %v5286_v40 }
 0x2ec   : > { %4901 = vmatprep.subr.bf16.mxu0 %v6070_v25  ;;  %4921 = vmatprep.subr.bf16.mxu1 %v6070_v25 }
 0x2ef   : > { %4902 = vmatpush3.bf16.msra.mxu0 %v5287_v41  ;;  %4922 = vmatpush3.bf16.msra.mxu1 %v5288_v42 }
 0x2f0   : > { %4903 = vmatprep.subr.bf16.mxu0 %v6070_v25  ;;  %4923 = vmatprep.subr.bf16.mxu1 %v6070_v25 }
 0x2f3   : > { %4904 = vmatpush3.bf16.msra.mxu0 %v5289_v43  ;;  %4924 = vmatpush3.bf16.msra.mxu1 %v5290_v44 }
 0x2f4   : > { %4905 = vmatprep.subr.bf16.mxu0 %v6070_v25  ;;  %4925 = vmatprep.subr.bf16.mxu1 %v6070_v25 }
 0x2f7   : > { %4906 = vmatpush3.bf16.msra.mxu0 %v5291_v45  ;;  %4926 = vmatpush3.bf16.msra.mxu1 %v5292_v46 }
 0x2f8   : > { %4931 = vmatprep.subr.bf16.mxu0 %v6070_v25  ;;  %4951 = vmatprep.subr.bf16.mxu1 %v6070_v25 }
 0x369   : > { %v1393_v26 = vpop.xlane.xlu0 %1392 }
 0x36a   : > { %v1397_v27 = vmul.f32 0.0078125, %v1393_v26 }
 0x36c   : > { %v1399_v28 = vsub.f32 %v1388_v20, %v1397_v27  ;;  %v6075_v27 = vmov 1983009808  }
 0x36d   : > { %v1395_v29 = vpop.xlane.xlu0 %1394 }
 0x36e   : > { %v1398_v30 = vmul.f32 0.0078125, %v1395_v29  ;;  %v1401_v31 = vmul.f32 %v1399_v28, %v1399_v28  ;;  %v1793_v29 = vlaneseq }
 0x370   : > { %v1400_v32 = vsub.f32 %v1389_v21, %v1398_v30  ;;  %1403 = vadd.xlane.f32.xlu1 %v1401_v31  ;;  %v6076_v30 = vmov 1934713408  }
 0x371   : > { %v1823_v31 = vunpack.c.l.s4 %v6076_v30 }
 0x372   : > { %v1402_v33 = vmul.f32 %v1400_v32, %v1400_v32 }
 0x373   : > { %v1824_v36 = vunpack.c.0.s8 %v1823_v31 }
 0x374   : > { %1405 = vadd.xlane.f32.xlu1 %v1402_v33  ;;  %v7041_v33 = vshrl.u32 %v1793_v29, 7 }
 0x376   : > { %v7047_v44 = vsub.s32 %v1824_v36, %v7041_v33 }
 0x3fd   : > { %v1404_v47 = vpop.xlane.xlu1 %1403 }
 0x3fe   : > { %v1407_v48 = vmul.f32 0.0078125, %v1404_v47 }
 0x400   : > { %v1409_v49 = vadd.f32 1e-05, %v1407_v48 }
 0x401   : > { %v1406_v50 = vpop.xlane.xlu1 %1405 }
 0x402   : > { %5349 = vrsqrt.f32 %v1409_v49  ;;  %v1408_v51 = vmul.f32 0.0078125, %v1406_v50 }
 0x404   : > { %v1410_v52 = vadd.f32 1e-05, %v1408_v51 }
 0x406   : > { %5351 = vrsqrt.f32 %v1410_v52 }
 0x40c   : > { %v5350_v53 = vpop.eup %5349 }
 0x40d   : > { %v1413_v54 = vmul.f32 %v5350_v53, %v1399_v28  ;;  %v1791_v28 = vunpack.c.l.s4 %v6075_v27 }
 0x40f   : > { %v1421_v58 = vmul.f32 %v4674_v55, %v1413_v54 }
 0x410   : > { %v5352_v56 = vpop.eup %5351 }
 0x411   : > { %v1414_v57 = vmul.f32 %v5352_v56, %v1400_v32  ;;  %v1429_v61 = vadd.f32 %v4675_v59, %v1421_v58  ;;  %v1792_v32 = vunpack.c.0.s8 %v1791_v28 }
 0x413   : > { %v1422_v60 = vmul.f32 %v4674_v55, %v1414_v57  ;;  %v7044_v37 = vsub.s32 %v1792_v32, %v7041_v33 }
 0x415   : > { %v1430_v62 = vadd.f32 %v4675_v59, %v1422_v60 }
 0x417   : > { %v1431_v0 = vpack.c.bf16 %v1430_v62, %v1429_v61 }
 0x419   : > { %4908 = vmatmul.mubr.bf16.vlgmr.msra.gmra.mrb[0].mxu0 %v1431_v0  ;;  %4928 = vmatmul.mubr.bf16.vlgmr.msra.gmra.mrb[0].mxu1 %v1431_v0 }
 0x41a   : > { %4932 = vmatpush3.bf16.msra.mxu0 %v5293_v63  ;;  %4947 = vmatprep.mubr.msk.bf16.mxu0 %vm6071_vm0, %v6070_v25 }
 0x41b   : > { %4933 = vmatprep.subr.bf16.mxu0 %v6070_v25  ;;  %4953 = vmatprep.mubr.msk.bf16.mxu1 %vm6071_vm0, %v6070_v25 }
 0x41e   : > { %4934 = vmatpush3.bf16.msra.mxu0 %v5294_v1 }
 0x41f   : > { %4935 = vmatprep.subr.bf16.mxu0 %v6070_v25 }
 0x422   : > { %4936 = vmatpush3.bf16.msra.mxu0 %v5295_v2 }
 0x423   : > { %4937 = vmatprep.subr.bf16.mxu0 %v6070_v25 }
 0x426   : > { %4938 = vmatpush3.bf16.msra.mxu0 %v5296_v3 }
 0x427   : > { %4939 = vmatprep.subr.bf16.mxu0 %v6070_v25 }
 0x42a   : > { %4940 = vmatpush3.bf16.msra.mxu0 %v5297_v4 }
 0x42b   : > { %4941 = vmatprep.subr.bf16.mxu0 %v6070_v25 }
 0x42e   : > { %4942 = vmatpush3.bf16.msra.mxu0 %v5298_v5 }
 0x42f   : > { %4943 = vmatprep.subr.bf16.mxu0 %v6070_v25 }
 0x432   : > { %4944 = vmatpush3.bf16.msra.mxu0 %v5299_v6 }
 0x433   : > { %4945 = vmatprep.subr.bf16.mxu0 %v6070_v25 }
 0x436   : > { %4946 = vmatpush3.bf16.msra.mxu0 %v5300_v7 }
 0x437   : > { %4999 = vmatprep.subr.bf16.mxu0 %v6070_v25 }
 0x439   : > { %4948 = vmatmul.mubr.bf16.vlgmr.msra.gmra.mrb[4].mxu0 %v1431_v0 }
 0x43a   : > { %5015 = vmatprep.mubr.msk.bf16.mxu0 %vm6071_vm0, %v6070_v25 }
 0x4ec   : > { %v1537_v9 = vpop.f32.mrb[0].mxu0  ;;  %v1649_v10 = vpop.f32.mrb[0].mxu1 }
 0x4ed   : > { %v1650_v11 = vadd.f32 %v4685_v8, %v1649_v10  ;;  %v4909_v12 = vpop.f32.mrb[1].mxu0  ;;  %v4929_v13 = vpop.f32.mrb[1].mxu1  ;;  %v7017_v20 = vadd.f32 %v4676_v19, %v1537_v9 }
 0x4ee   : > { %v1540_v14 = vpop.f32.mrb[2].mxu0  ;;  %v1652_v15 = vpop.f32.mrb[2].mxu1 }
 0x4ef   : > { %2072 = vrot.lane.b32.xlu1 %v1650_v11, %s6072_s20  ;;  %2066 = vrot.lane.b32.xlu0 %v1650_v11, %s6073_s4  ;;  %v4910_v16 = vpop.f32.mrb[3].mxu0  ;;  %v4930_v17 = vpop.f32.mrb[3].mxu1  ;;  %v7010_v18 = vadd.f32 %v4685_v8, %v1652_v15  ;;  %v7027_v21 = vadd.f32 %v4676_v19, %v1540_v14 }
 0x4f3   : > { %2078 = vrot.lane.b32.xlu0 %v1650_v11, %s6074_s15  ;;  %2068 = vrot.lane.b32.xlu1 %v7010_v18, %s6073_s4 }
 0x4f7   : > { %2074 = vrot.lane.b32.xlu1 %v7010_v18, %s6072_s20  ;;  %1770 = vrot.lane.b32.xlu0 %v7017_v20, %s6073_s4 }
 0x4fb   : > { %2080 = vrot.lane.b32.xlu1 %v7010_v18, %s6074_s15  ;;  %1776 = vrot.lane.b32.xlu0 %v7017_v20, %s6072_s20 }
 0x4ff   : > { %1782 = vrot.lane.b32.xlu0 %v7017_v20, %s6074_s15  ;;  %1772 = vrot.lane.b32.xlu1 %v7027_v21, %s6073_s4 }
 0x503   : > { %1778 = vrot.lane.b32.xlu1 %v7027_v21, %s6072_s20 }
 0x507   : > { %1784 = vrot.lane.b32.xlu1 %v7027_v21, %s6074_s15 }
 0x50c   : > { %v7037_v22 = vpop.f32.mrb[4].mxu0 }
 0x50d   : > { %v4949_v23 = vpop.f32.mrb[5].mxu0 }
 0x50e   : > { %v7039_v24 = vpop.f32.mrb[6].mxu0 }
 0x50f   : > { %v4950_v26 = vpop.f32.mrb[7].mxu0 }
 0x561   : > { %v2073_v34 = vpop.permute.xlu1 %2072  ;;  %v2067_v35 = vpop.permute.xlu0 %2066 }
 0x562   : > { %v2084_v38 = vcombine.low %v1650_v11, %v2073_v34  ;;  %v2085_v39 = vcombine.high %v1650_v11, %v2073_v34 }
 0x564   : > { %v2092_v45 = vrot.slane %v2084_v38, %v7044_v37  ;;  %v2099_v46 = vrot.slane %v2085_v39, %v7044_v37 }
 0x565   : > { %v2079_v40 = vpop.permute.xlu0 %2078  ;;  %v2069_v41 = vpop.permute.xlu1 %2068 }
 0x566   : > { %v2100_v42 = vcombine.low %v2067_v35, %v2079_v40  ;;  %v2101_v43 = vcombine.high %v2067_v35, %v2079_v40 }
 0x568   : > { %v2108_v47 = vrot.slane %v2100_v42, %v7044_v37  ;;  %v2115_v48 = vrot.slane %v2101_v43, %v7044_v37 }
 0x569   : > { %v2075_v49 = vpop.permute.xlu1 %2074  ;;  %v1771_v50 = vpop.permute.xlu0 %1770 }
 0x56a   : > { %v2116_v51 = vcombine.low %v2092_v45, %v2108_v47  ;;  %v2117_v52 = vcombine.high %v2092_v45, %v2108_v47  ;;  %v2132_v53 = vcombine.low %v2099_v46, %v2115_v48  ;;  %v2133_v54 = vcombine.high %v2099_v46, %v2115_v48 }
 0x56b   : > { %v2152_v55 = vcombine.low %v7010_v18, %v2075_v49  ;;  %v2153_v56 = vcombine.high %v7010_v18, %v2075_v49 }
 0x56c   : > { %v2124_v57 = vrot.slane %v2116_v51, %v7047_v44  ;;  %v2131_v58 = vrot.slane %v2117_v52, %v7047_v44  ;;  %v2140_v59 = vrot.slane %v2132_v53, %v7047_v44  ;;  %v2147_v60 = vrot.slane %v2133_v54, %v7047_v44 }
 0x56d   : > { %v2081_v61 = vpop.permute.xlu1 %2080  ;;  %v1777_v62 = vpop.permute.xlu0 %1776  ;;  %v2160_v5 = vrot.slane %v2152_v55, %v7044_v37  ;;  %v2167_v6 = vrot.slane %v2153_v56, %v7044_v37 }
 0x56e   : > { %v2220_v63 = vcombine.low %v2124_v57, %v2131_v58  ;;  %v4707_v0 = vcombine.high %v2124_v57, %v2131_v58  ;;  %v2236_v1 = vcombine.low %v2140_v59, %v2147_v60  ;;  %v4708_v2 = vcombine.high %v2140_v59, %v2147_v60 }
 0x56f   : > { %v2168_v3 = vcombine.low %v2069_v41, %v2081_v61  ;;  %v2169_v4 = vcombine.high %v2069_v41, %v2081_v61  ;;  %v1788_v7 = vcombine.low %v7017_v20, %v1777_v62  ;;  %v1789_v8 = vcombine.high %v7017_v20, %v1777_v62 }
 0x570   : > { %v7064_v9 = vrot.slane %v2220_v63, %v7044_v37  ;;  %v7067_v10 = vrot.slane %v4707_v0, %v7044_v37  ;;  %v7072_v15 = vrot.slane %v2236_v1, %v7044_v37  ;;  %v7075_v16 = vrot.slane %v4708_v2, %v7044_v37 }
 0x571   : > { %v2176_v11 = vrot.slane %v2168_v3, %v7044_v37  ;;  %v2183_v12 = vrot.slane %v2169_v4, %v7044_v37  ;;  %v1783_v13 = vpop.permute.xlu0 %1782  ;;  %v1773_v14 = vpop.permute.xlu1 %1772  ;;  %v1796_v27 = vrot.slane %v1788_v7, %v7044_v37  ;;  %v1803_v28 = vrot.slane %v1789_v8, %v7044_v37 }
 0x572   : > { %v1804_v17 = vcombine.low %v1771_v50, %v1783_v13  ;;  %v1805_v18 = vcombine.high %v1771_v50, %v1783_v13  ;;  %v2252_v48 = vcombine.low %v7064_v9, %v7067_v10  ;;  %v2268_v49 = vcombine.low %v7072_v15, %v7075_v16 }
 0x573   : > { %v2184_v19 = vcombine.low %v2160_v5, %v2176_v11  ;;  %v2185_v20 = vcombine.high %v2160_v5, %v2176_v11  ;;  %v2200_v23 = vcombine.low %v2167_v6, %v2183_v12  ;;  %v2201_v26 = vcombine.high %v2167_v6, %v2183_v12 }
 0x574   : > { %v1812_v29 = vrot.slane %v1804_v17, %v7044_v37  ;;  %v1819_v30 = vrot.slane %v1805_v18, %v7044_v37 }
 0x575   : > { %v2192_v31 = vrot.slane %v2184_v19, %v7047_v44  ;;  %v2199_v32 = vrot.slane %v2185_v20, %v7047_v44  ;;  %v2208_v34 = vrot.slane %v2200_v23, %v7047_v44  ;;  %v2215_v35 = vrot.slane %v2201_v26, %v7047_v44  ;;  %v1779_v36 = vpop.permute.xlu1 %1778 }
 0x576   : > { %v1820_v38 = vcombine.low %v1796_v27, %v1812_v29  ;;  %v1821_v39 = vcombine.high %v1796_v27, %v1812_v29  ;;  %v1836_v40 = vcombine.low %v1803_v28, %v1819_v30  ;;  %v1837_v41 = vcombine.high %v1803_v28, %v1819_v30 }
 0x577   : > { %v2288_v50 = vcombine.low %v2192_v31, %v2199_v32  ;;  %v4709_v51 = vcombine.high %v2192_v31, %v2199_v32  ;;  %v2304_v52 = vcombine.low %v2208_v34, %v2215_v35  ;;  %v4710_v53 = vcombine.high %v2208_v34, %v2215_v35 }
 0x578   : > { %v1828_v42 = vrot.slane %v1820_v38, %v7047_v44  ;;  %v1835_v43 = vrot.slane %v1821_v39, %v7047_v44  ;;  %v1844_v45 = vrot.slane %v1836_v40, %v7047_v44  ;;  %v1851_v46 = vrot.slane %v1837_v41, %v7047_v44 }
 0x579   : > { %v1785_v47 = vpop.permute.xlu1 %1784  ;;  %v1856_v54 = vcombine.low %v7027_v21, %v1779_v36  ;;  %v1857_v55 = vcombine.high %v7027_v21, %v1779_v36  ;;  %v2295_v2 = vrot.slane %v2288_v50, %v7044_v37  ;;  %v2303_v3 = vrot.slane %v4709_v51, %v7044_v37 }
 0x57a   : > { %v1872_v56 = vcombine.low %v1773_v14, %v1785_v47  ;;  %v1873_v57 = vcombine.high %v1773_v14, %v1785_v47  ;;  %v1924_v58 = vcombine.low %v1828_v42, %v1835_v43  ;;  %v4703_v59 = vcombine.high %v1828_v42, %v1835_v43 }
 0x57b   : > { %v1940_v60 = vcombine.low %v1844_v45, %v1851_v46  ;;  %v4704_v61 = vcombine.high %v1844_v45, %v1851_v46  ;;  %v1864_v62 = vrot.slane %v1856_v54, %v7044_v37  ;;  %v1871_v63 = vrot.slane %v1857_v55, %v7044_v37 }
 0x57c   : > { %v1880_v0 = vrot.slane %v1872_v56, %v7044_v37  ;;  %v1887_v1 = vrot.slane %v1873_v57, %v7044_v37  ;;  %v2311_v21 = vrot.slane %v2304_v52, %v7044_v37  ;;  %v2319_v4 = vrot.slane %v4710_v53, %v7044_v37 }
 0x57d   : > { %v7104_v11 = vrot.slane %v1924_v58, %v7044_v37  ;;  %v7107_v12 = vrot.slane %v4703_v59, %v7044_v37  ;;  %v7110_v13 = vrot.slane %v1940_v60, %v7044_v37  ;;  %v7113_v14 = vrot.slane %v4704_v61, %v7044_v37 }
 0x57e   : > { %v1888_v5 = vcombine.low %v1864_v62, %v1880_v0  ;;  %v1889_v6 = vcombine.high %v1864_v62, %v1880_v0  ;;  %v1904_v7 = vcombine.low %v1871_v63, %v1887_v1  ;;  %v1905_v8 = vcombine.high %v1871_v63, %v1887_v1 }
 0x57f   : > { %v2260_v23 = vrot.slane %v2252_v48, %v7047_v44  ;;  %v2276_v26 = vrot.slane %v2268_v49, %v7047_v44  ;;  %v2320_v27 = vcombine.low %v2295_v2, %v2303_v3  ;;  %v2336_v28 = vcombine.low %v2311_v21, %v2319_v4 }
 0x580   : > { %v1896_v17 = vrot.slane %v1888_v5, %v7047_v44  ;;  %v1903_v18 = vrot.slane %v1889_v6, %v7047_v44  ;;  %v1912_v19 = vrot.slane %v1904_v7, %v7047_v44  ;;  %v1919_v20 = vrot.slane %v1905_v8, %v7047_v44 }
 0x581   : > { %v1956_v34 = vcombine.low %v7104_v11, %v7107_v12  ;;  %v1972_v35 = vcombine.low %v7110_v13, %v7113_v14  ;;  %v2328_v36 = vrot.slane %v2320_v27, %v7047_v44  ;;  %v2344_v38 = vrot.slane %v2336_v28, %v7047_v44 }
 0x582   : > { %v1992_v29 = vcombine.low %v1896_v17, %v1903_v18  ;;  %v4705_v30 = vcombine.high %v1896_v17, %v1903_v18  ;;  %v2008_v31 = vcombine.low %v1912_v19, %v1919_v20  ;;  %v4706_v32 = vcombine.high %v1912_v19, %v1919_v20 }
 0x583   : > { %v2284_v43 = vcombine.low %v2260_v23, %v2276_v26  ;;  %v2352_v45 = vcombine.low %v2328_v36, %v2344_v38  ;;  %v1964_v48 = vrot.slane %v1956_v34, %v7047_v44  ;;  %v1980_v49 = vrot.slane %v1972_v35, %v7047_v44 }
 0x584   : > { %v1999_v39 = vrot.slane %v1992_v29, %v7044_v37  ;;  %v2007_v40 = vrot.slane %v4705_v30, %v7044_v37  ;;  %v2015_v41 = vrot.slane %v2008_v31, %v7044_v37  ;;  %v2023_v42 = vrot.slane %v4706_v32, %v7044_v37 }
 0x585   : > { %v2356_v50 = vpack.c.bf16 %v2352_v45, %v2284_v43  ;;  %v2353_v54 = vcombine.high %v2328_v36, %v2344_v38  ;;  %v2321_v55 = vcombine.high %v2295_v2, %v2303_v3  ;;  %v2337_v57 = vcombine.high %v2311_v21, %v2319_v4 }
 0x586   : > { %v2024_v46 = vcombine.low %v1999_v39, %v2007_v40  ;;  %v2040_v47 = vcombine.low %v2015_v41, %v2023_v42  ;;  %v1988_v58 = vcombine.low %v1964_v48, %v1980_v49  ;;  %v2285_v59 = vcombine.high %v2260_v23, %v2276_v26 }
 0x587   : > { %v2661_v53 = vsel %vm2656_vm1, %v2356_v50, 0  ;;  %v2253_v60 = vcombine.high %v7064_v9, %v7067_v10  ;;  %v2269_v61 = vcombine.high %v7072_v15, %v7075_v16  ;;  %v2335_v0 = vrot.slane %v2321_v55, %v7047_v44 }
 0x588   : > { %v2032_v51 = vrot.slane %v2024_v46, %v7047_v44  ;;  %v2048_v52 = vrot.slane %v2040_v47, %v7047_v44  ;;  %4952 = vmatpush3.bf16.xpose.msra.mxu1 %v2661_v53  ;;  %v2357_v63 = vpack.c.bf16 %v2353_v54, %v2285_v59  ;;  %v2351_v1 = vrot.slane %v2337_v57, %v7047_v44 }
 0x589   : > { %4957 = vmatprep.subr.bf16.mxu1 %v6070_v25  ;;  %v2267_v2 = vrot.slane %v2253_v60, %v7047_v44  ;;  %v2283_v3 = vrot.slane %v2269_v61, %v7047_v44  ;;  %v2025_v9 = vcombine.high %v1999_v39, %v2007_v40  ;;  %v2041_v10 = vcombine.high %v2015_v41, %v2023_v42 }
 0x58a   : > { %v2056_v56 = vcombine.low %v2032_v51, %v2048_v52  ;;  %v2708_v21 = vsel %vm2656_vm1, %v2357_v63, 0  ;;  %v2354_v4 = vcombine.low %v2335_v0, %v2351_v1  ;;  %v2057_v15 = vcombine.high %v2032_v51, %v2048_v52 }
 0x58b   : > { %v2286_v16 = vcombine.low %v2267_v2, %v2283_v3  ;;  %v1957_v5 = vcombine.high %v7104_v11, %v7107_v12  ;;  %v1973_v6 = vcombine.high %v7110_v13, %v7113_v14  ;;  %v1989_v7 = vcombine.high %v1964_v48, %v1980_v49 }
 0x58c   : > { %v2060_v62 = vpack.c.bf16 %v2056_v56, %v1988_v58  ;;  %v2039_v17 = vrot.slane %v2025_v9, %v7047_v44  ;;  %v2055_v18 = vrot.slane %v2041_v10, %v7047_v44  ;;  %v2355_v27 = vcombine.high %v2335_v0, %v2351_v1 }
 0x58d   : > { %v2358_v8 = vpack.c.bf16 %v2354_v4, %v2286_v16  ;;  %v2061_v19 = vpack.c.bf16 %v2057_v15, %v1989_v7  ;;  %v1971_v20 = vrot.slane %v1957_v5, %v7047_v44  ;;  %v1987_v23 = vrot.slane %v1973_v6, %v7047_v44 }
 0x58e   : > { %v2058_v11 = vcombine.low %v2039_v17, %v2055_v18  ;;  %v2287_v12 = vcombine.high %v2267_v2, %v2283_v3  ;;  %v2059_v30 = vcombine.high %v2039_v17, %v2055_v18  ;;  %v4694_v2 = vld [vmem:[%s7736_s10] ss:$0 sm:$0xff] }
 0x58f   : > { %4954 = vmatmul.mubr.msk.bf16.vlgmr.msra.gmra.mrb[4].mxu1 %vm2656_vm1, %v2060_v62  ;;  %v2755_v26 = vsel %vm2656_vm1, %v2358_v8, 0  ;;  %v1990_v13 = vcombine.low %v1971_v20, %v1987_v23  ;;  %v1991_v31 = vcombine.high %v1971_v20, %v1987_v23  ;;  %v7181_v3 = vadd.f32 %v4694_v2, %v7039_v24 }
 0x590   : > { %4958 = vmatpush3.bf16.xpose.msra.mxu1 %v2708_v21  ;;  %4959 = vmatprep.mubr.msk.bf16.mxu1 %vm6071_vm0, %v6070_v25  ;;  %v2359_v14 = vpack.c.bf16 %v2355_v27, %v2287_v12  ;;  %v7186_v21 = vadd.f32 %v4694_v2, %v7037_v22 }
 0x591   : > { %4963 = vmatprep.subr.bf16.mxu1 %v6070_v25  ;;  %v2062_v28 = vpack.c.bf16 %v2058_v11, %v1990_v13  ;;  %v2063_v32 = vpack.c.bf16 %v2059_v30, %v1991_v31 }
 0x592   : > { %v2802_v29 = vsel %vm2656_vm1, %v2359_v14, 0 }
 0x597   : > { %4960 = vmatmul.mubr.msk.bf16.vlgmr.msra.gmra.mrb[8].mxu1 %vm2656_vm1, %v2061_v19 }
 0x598   : > { %4964 = vmatpush3.bf16.xpose.msra.mxu1 %v2755_v26  ;;  %4965 = vmatprep.mubr.msk.bf16.mxu1 %vm6071_vm0, %v6070_v25 }
 0x599   : > { %4969 = vmatprep.subr.bf16.mxu1 %v6070_v25 }
 0x59f   : > { %4966 = vmatmul.mubr.msk.bf16.vlgmr.msra.gmra.mrb[12].mxu1 %vm2656_vm1, %v2062_v28 }
 0x5a0   : > { %4970 = vmatpush3.bf16.xpose.msra.mxu1 %v2802_v29  ;;  %4971 = vmatprep.mubr.msk.bf16.mxu1 %vm6071_vm0, %v6070_v25 }
 0x5a1   : > { %4975 = vmatprep.subr.bf16.mxu1 %v6070_v25 }
 0x5a7   : > { %4972 = vmatmul.mubr.msk.bf16.vlgmr.msra.gmra.mrb[16].mxu1 %vm2656_vm1, %v2063_v32 }
 0x5a8   : > { %4977 = vmatprep.mubr.msk.bf16.mxu1 %vm6071_vm0, %v6070_v25 }
 0x662   : > { %v2697_v34 = vpop.f32.mrb[4].mxu1 }
 0x663   : > { %v2845_v35 = vmul.f32 0.17677669, %v2697_v34  ;;  %v4955_v36 = vpop.f32.mrb[5].mxu1 }
 0x664   : > { %v2700_v38 = vpop.f32.mrb[6].mxu1 }
 0x665   : > { %v2846_v39 = vmul.f32 0.17677669, %v2700_v38  ;;  %v4956_v40 = vpop.f32.mrb[7].mxu1  ;;  %v2854_v41 = vsel %vm2853_vm2, %v2845_v35, -inf }
 0x666   : > { %2855 = vmax.xlane.f32.xlu0 %v2854_v41 }
 0x667   : > { %v2857_v42 = vsel %vm2853_vm2, %v2846_v39, -inf }
 0x668   : > { %2858 = vmax.xlane.f32.xlu1 %v2857_v42 }
 0x66a   : > { %v2744_v43 = vpop.f32.mrb[8].mxu1 }
 0x66b   : > { %v2847_v45 = vmul.f32 0.17677669, %v2744_v43  ;;  %v4961_v46 = vpop.f32.mrb[9].mxu1 }
 0x66c   : > { %v2747_v47 = vpop.f32.mrb[10].mxu1 }
 0x66d   : > { %v2848_v48 = vmul.f32 0.17677669, %v2747_v47  ;;  %v4962_v49 = vpop.f32.mrb[11].mxu1  ;;  %v2860_v50 = vsel %vm2853_vm2, %v2847_v45, -inf }
 0x66e   : > { %2861 = vmax.xlane.f32.xlu0 %v2860_v50 }
 0x66f   : > { %v2863_v51 = vsel %vm2853_vm2, %v2848_v48, -inf }
 0x672   : > { %2864 = vmax.xlane.f32.xlu0 %v2863_v51  ;;  %v2791_v52 = vpop.f32.mrb[12].mxu1 }
 0x673   : > { %v2849_v53 = vmul.f32 0.17677669, %v2791_v52  ;;  %v4967_v54 = vpop.f32.mrb[13].mxu1 }
 0x674   : > { %v2794_v55 = vpop.f32.mrb[14].mxu1 }
 0x675   : > { %v2850_v56 = vmul.f32 0.17677669, %v2794_v55  ;;  %v4968_v57 = vpop.f32.mrb[15].mxu1  ;;  %v2866_v58 = vsel %vm2853_vm2, %v2849_v53, -inf }
 0x676   : > { %2867 = vmax.xlane.f32.xlu0 %v2866_v58 }
 0x677   : > { %v2869_v59 = vsel %vm2853_vm2, %v2850_v56, -inf }
 0x678   : > { %2870 = vmax.xlane.f32.xlu1 %v2869_v59 }
 0x67a   : > { %v2838_v60 = vpop.f32.mrb[16].mxu1 }
 0x67b   : > { %v2851_v61 = vmul.f32 0.17677669, %v2838_v60  ;;  %v4973_v62 = vpop.f32.mrb[17].mxu1 }
 0x67c   : > { %v2841_v63 = vpop.f32.mrb[18].mxu1 }
 0x67d   : > { %v4974_v0 = vpop.f32.mrb[19].mxu1  ;;  %v2872_v1 = vsel %vm2853_vm2, %v2851_v61, -inf  ;;  %v2852_v4 = vmul.f32 0.17677669, %v2841_v63 }
 0x67e   : > { %2873 = vmax.xlane.f32.xlu0 %v2872_v1 }
 0x67f   : > { %v2875_v9 = vsel %vm2853_vm2, %v2852_v4, -inf }
 0x689   : > { %2364 = vrot.lane.b32.xlu1 %v7181_v3, %s6073_s4 }
 0x68d   : > { %2368 = vrot.lane.b32.xlu1 %v7186_v21, %s6072_s20 }
 0x694   : > { %2362 = vrot.lane.b32.xlu0 %v7186_v21, %s6073_s4 }
 0x6b1   : > { %2876 = vmax.xlane.f32.xlu1 %v2875_v9 }
 0x6c2   : > { %2370 = vrot.lane.b32.xlu1 %v7181_v3, %s6072_s20 }
 0x6f3   : > { %v2856_v24 = vpop.xlane.xlu0 %2855 }
 0x6f4   : > { %v2878_v10 = vsub.f32 %v2845_v35, %v2856_v24 }
 0x6f5   : > { %v2859_v15 = vpop.xlane.xlu1 %2858 }
 0x6f6   : > { %v2886_v16 = vmul.f32 1.442695, %v2878_v10  ;;  %v2879_v5 = vsub.f32 %v2846_v39, %v2859_v15 }
 0x6f8   : > { %5353 = vpow2.f32 %v2886_v16  ;;  %v2888_v22 = vmul.f32 1.442695, %v2879_v5 }
 0x6fa   : > { %5355 = vpow2.f32 %v2888_v22 }
 0x6fb   : > { %v2862_v18 = vpop.xlane.xlu0 %2861 }
 0x6fc   : > { %v2880_v20 = vsub.f32 %v2847_v45, %v2862_v18 }
 0x6fe   : > { %v2890_v27 = vmul.f32 1.442695, %v2880_v20 }
 0x6ff   : > { %v2865_v19 = vpop.xlane.xlu0 %2864 }
 0x700   : > { %v2881_v26 = vsub.f32 %v2848_v48, %v2865_v19  ;;  %5357 = vpow2.f32 %v2890_v27 }
 0x702   : > { %v7195_v6 = vpop.eup %5353  ;;  %v2892_v13 = vmul.f32 1.442695, %v2881_v26 }
 0x703   : > { %v2902_v7 = vsel %vm2853_vm2, %v7195_v6, 0.0  ;;  %v2868_v23 = vpop.xlane.xlu0 %2867 }
 0x704   : > { %v7199_v8 = vpop.eup %5355  ;;  %2903 = vadd.xlane.f32.xlu0 %v2902_v7  ;;  %v2882_v11 = vsub.f32 %v2849_v53, %v2868_v23  ;;  %5359 = vpow2.f32 %v2892_v13 }
 0x705   : > { %v2905_v17 = vsel %vm2853_vm2, %v7199_v8, 0.0  ;;  %v2871_v12 = vpop.xlane.xlu1 %2870 }
 0x706   : > { %2906 = vadd.xlane.f32.xlu1 %v2905_v17  ;;  %v2894_v14 = vmul.f32 1.442695, %v2882_v11  ;;  %v2883_v28 = vsub.f32 %v2850_v56, %v2871_v12 }
 0x708   : > { %5361 = vpow2.f32 %v2894_v14  ;;  %v2896_v30 = vmul.f32 1.442695, %v2883_v28 }
 0x709   : > { %v2365_v34 = vpop.permute.xlu1 %2364 }
 0x70a   : > { %5363 = vpow2.f32 %v2896_v30  ;;  %v7207_v35 = vpop.eup %5357 }
 0x70b   : > { %v2874_v29 = vpop.xlane.xlu0 %2873  ;;  %v2908_v38 = vsel %vm2853_vm2, %v7207_v35, 0.0 }
 0x70c   : > { %v2884_v31 = vsub.f32 %v2851_v61, %v2874_v29 }
 0x70d   : > { %v2369_v40 = vpop.permute.xlu1 %2368 }
 0x70e   : > { %v2898_v32 = vmul.f32 1.442695, %v2884_v31  ;;  %v7209_v36 = vpop.eup %5359  ;;  %v2380_v56 = vcombine.low %v7186_v21, %v2369_v40  ;;  %v2381_v57 = vcombine.high %v7186_v21, %v2369_v40 }
 0x70f   : > { %v2911_v41 = vsel %vm2853_vm2, %v7209_v36, 0.0  ;;  %v2363_v53 = vpop.permute.xlu0 %2362 }
 0x710   : > { %5365 = vpow2.f32 %v2898_v32  ;;  %v2388_v62 = vrot.slane %v2380_v56, %v7044_v37  ;;  %v2395_v63 = vrot.slane %v2381_v57, %v7044_v37 }
 0x712   : > { %v7213_v39 = vpop.eup %5361 }
 0x713   : > { %v2914_v42 = vsel %vm2853_vm2, %v7213_v39, 0.0 }
 0x714   : > { %v7219_v43 = vpop.eup %5363 }
 0x715   : > { %v2917_v47 = vsel %vm2853_vm2, %v7219_v43, 0.0 }
 0x717   : > { %2376 = vrot.lane.b32.xlu1 %v7181_v3, %s6074_s15 }
 0x71a   : > { %2374 = vrot.lane.b32.xlu0 %v7186_v21, %s6074_s15  ;;  %v7223_v48 = vpop.eup %5365 }
 0x71b   : > { %v2920_v50 = vsel %vm2853_vm2, %v7223_v48, 0.0 }
 0x739   : > { %2909 = vadd.xlane.f32.xlu0 %v2908_v38 }
 0x73b   : > { %2912 = vadd.xlane.f32.xlu1 %v2911_v41 }
 0x73d   : > { %2915 = vadd.xlane.f32.xlu0 %v2914_v42 }
 0x73e   : > { %v2877_v45 = vpop.xlane.xlu1 %2876 }
 0x73f   : > { %v2885_v46 = vsub.f32 %v2852_v4, %v2877_v45 }
 0x741   : > { %v2900_v49 = vmul.f32 1.442695, %v2885_v46  ;;  %2918 = vadd.xlane.f32.xlu0 %v2917_v47 }
 0x742   : > { %v2371_v54 = vpop.permute.xlu1 %2370 }
 0x743   : > { %5367 = vpow2.f32 %v2900_v49  ;;  %v2448_v0 = vcombine.low %v7181_v3, %v2371_v54  ;;  %v2449_v1 = vcombine.high %v7181_v3, %v2371_v54 }
 0x745   : > { %2921 = vadd.xlane.f32.xlu0 %v2920_v50  ;;  %v2456_v22 = vrot.slane %v2448_v0, %v7044_v37  ;;  %v2463_v7 = vrot.slane %v2449_v1, %v7044_v37 }
 0x74d   : > { %v7227_v51 = vpop.eup %5367 }
 0x74e   : > { %v2923_v52 = vsel %vm2853_vm2, %v7227_v51, 0.0 }
 0x74f   : > { %2924 = vadd.xlane.f32.xlu1 %v2923_v52 }
 0x791   : > { %v2904_v55 = vpop.xlane.xlu0 %2903 }
 0x792   : > { %5369 = vrcp.f32 %v2904_v55 }
 0x793   : > { %v2907_v58 = vpop.xlane.xlu1 %2906 }
 0x794   : > { %5371 = vrcp.f32 %v2907_v58 }
 0x795   : > { %v2375_v59 = vpop.permute.xlu0 %2374 }
 0x796   : > { %v2396_v60 = vcombine.low %v2363_v53, %v2375_v59  ;;  %v2397_v61 = vcombine.high %v2363_v53, %v2375_v59 }
 0x797   : > { %v2377_v2 = vpop.permute.xlu1 %2376 }
 0x798   : > { %v2404_v4 = vrot.slane %v2396_v60, %v7044_v37  ;;  %v2411_v9 = vrot.slane %v2397_v61, %v7044_v37  ;;  %v2464_v24 = vcombine.low %v2365_v34, %v2377_v2  ;;  %v2465_v10 = vcombine.high %v2365_v34, %v2377_v2 }
 0x79a   : > { %v2412_v21 = vcombine.low %v2388_v62, %v2404_v4  ;;  %v2413_v15 = vcombine.high %v2388_v62, %v2404_v4  ;;  %v2428_v16 = vcombine.low %v2395_v63, %v2411_v9  ;;  %v2429_v5 = vcombine.high %v2395_v63, %v2411_v9 }
 0x79b   : > { %v2472_v17 = vrot.slane %v2464_v24, %v7044_v37  ;;  %v2479_v18 = vrot.slane %v2465_v10, %v7044_v37 }
 0x79c   : > { %v2420_v3 = vrot.slane %v2412_v21, %v7047_v44  ;;  %v2427_v19 = vrot.slane %v2413_v15, %v7047_v44  ;;  %v2436_v20 = vrot.slane %v2428_v16, %v7047_v44  ;;  %v2443_v23 = vrot.slane %v2429_v5, %v7047_v44  ;;  %v5370_v58 = vpop.eup %5369 }
 0x79d   : > { %v2480_v26 = vcombine.low %v2456_v22, %v2472_v17  ;;  %v2481_v27 = vcombine.high %v2456_v22, %v2472_v17  ;;  %v2496_v11 = vcombine.low %v2463_v7, %v2479_v18  ;;  %v2497_v31 = vcombine.high %v2463_v7, %v2479_v18 }
 0x79e   : > { %v2516_v12 = vcombine.low %v2420_v3, %v2427_v19  ;;  %v4711_v13 = vcombine.high %v2420_v3, %v2427_v19  ;;  %v2532_v14 = vcombine.low %v2436_v20, %v2443_v23  ;;  %v4712_v28 = vcombine.high %v2436_v20, %v2443_v23  ;;  %v5372_v63 = vpop.eup %5371 }
 0x79f   : > { %v2488_v29 = vrot.slane %v2480_v26, %v7047_v44  ;;  %v2495_v30 = vrot.slane %v2481_v27, %v7047_v44  ;;  %v2504_v41 = vrot.slane %v2496_v11, %v7047_v44  ;;  %v2511_v42 = vrot.slane %v2497_v31, %v7047_v44 }
 0x7a0   : > { %v2523_v32 = vrot.slane %v2516_v12, %v7044_v37  ;;  %v2531_v34 = vrot.slane %v4711_v13, %v7044_v37  ;;  %v2539_v38 = vrot.slane %v2532_v14, %v7044_v37  ;;  %v2547_v40 = vrot.slane %v4712_v28, %v7044_v37 }
 0x7a1   : > { %v2584_v45 = vcombine.low %v2488_v29, %v2495_v30  ;;  %v4713_v46 = vcombine.high %v2488_v29, %v2495_v30  ;;  %v2600_v53 = vcombine.low %v2504_v41, %v2511_v42  ;;  %v4714_v54 = vcombine.high %v2504_v41, %v2511_v42 }
 0x7a2   : > { %v2548_v47 = vcombine.low %v2523_v32, %v2531_v34  ;;  %v2564_v49 = vcombine.low %v2539_v38, %v2547_v40  ;;  %v2935_v4 = vmul.f32 %v5372_v63, %v7199_v8  ;;  %v2934_v10 = vmul.f32 %v5370_v58, %v7195_v6 }
 0x7a3   : > { %v2591_v50 = vrot.slane %v2584_v45, %v7044_v37  ;;  %v2599_v52 = vrot.slane %v4713_v46, %v7044_v37  ;;  %v2607_v55 = vrot.slane %v2600_v53, %v7044_v37  ;;  %v2615_v56 = vrot.slane %v4714_v54, %v7044_v37  ;;  %v5303_v53 = vld [vmem:[%s6878_s8 + $0x10] sm:$0xff]   ;;  %v5304_v54 = vld [vmem:[%s6878_s8 + $0x18] sm:$0xff]  }
 0x7a4   : > { %v2556_v59 = vrot.slane %v2548_v47, %v7047_v44  ;;  %v2572_v60 = vrot.slane %v2564_v49, %v7047_v44  ;;  %v2942_v15 = vpack.c.bf16 %v2935_v4, %v2934_v10  ;;  %v2549_v17 = vcombine.high %v2523_v32, %v2531_v34 }
 0x7a5   : > { %v2616_v57 = vcombine.low %v2591_v50, %v2599_v52  ;;  %v2632_v62 = vcombine.low %v2607_v55, %v2615_v56  ;;  %v2617_v6 = vcombine.high %v2591_v50, %v2599_v52  ;;  %v2633_v7 = vcombine.high %v2607_v55, %v2615_v56  ;;  %v5301_v50 = vld [vmem:[%s6878_s8] sm:$0xff]   ;;  %v5302_v52 = vld [vmem:[%s6878_s8 + $0x8] sm:$0xff]  }
 0x7a6   : > { %v2580_v1 = vcombine.low %v2556_v59, %v2572_v60  ;;  %v2581_v21 = vcombine.high %v2556_v59, %v2572_v60  ;;  %v2565_v18 = vcombine.high %v2539_v38, %v2547_v40  ;;  %v2563_v26 = vrot.slane %v2549_v17, %v7047_v44  ;;  %5000 = vmatpush3.bf16.msra.mxu0 %v5301_v50 }
 0x7a7   : > { %v2624_v61 = vrot.slane %v2616_v57, %v7047_v44  ;;  %v2640_v0 = vrot.slane %v2632_v62, %v7047_v44  ;;  %v2631_v19 = vrot.slane %v2617_v6, %v7047_v44  ;;  %v2647_v20 = vrot.slane %v2633_v7, %v7047_v44  ;;  %5001 = vmatprep.subr.bf16.mxu0 %v6070_v25 }
 0x7a8   : > { %v2579_v27 = vrot.slane %v2565_v18, %v7047_v44 }
 0x7a9   : > { %v2648_v2 = vcombine.low %v2624_v61, %v2640_v0  ;;  %v2649_v24 = vcombine.high %v2624_v61, %v2640_v0  ;;  %v2650_v12 = vcombine.low %v2631_v19, %v2647_v20 }
 0x7aa   : > { %v2582_v28 = vcombine.low %v2563_v26, %v2579_v27  ;;  %v2583_v41 = vcombine.high %v2563_v26, %v2579_v27  ;;  %5002 = vmatpush3.bf16.msra.mxu0 %v5302_v52 }
 0x7ab   : > { %v2652_v9 = vpack.c.bf16 %v2648_v2, %v2580_v1  ;;  %v2653_v16 = vpack.c.bf16 %v2649_v24, %v2581_v21  ;;  %5003 = vmatprep.subr.bf16.mxu0 %v6070_v25 }
 0x7ac   : > { %v2654_v30 = vpack.c.bf16 %v2650_v12, %v2582_v28 }
 0x7ad   : > { %4976 = vmatpush3.bf16.msra.mxu1 %v2652_v9 }
 0x7ae   : > { %4981 = vmatprep.subr.bf16.mxu1 %v6070_v25  ;;  %5004 = vmatpush3.bf16.msra.mxu0 %v5303_v53 }
 0x7af   : > { %5005 = vmatprep.subr.bf16.mxu0 %v6070_v25 }
 0x7b0   : > { %4978 = vmatmul.mubr.msk.bf16.vlgmr.msra.gmra.mrb[20].mxu1 %vm2853_vm2, %v2942_v15 }
 0x7b1   : > { %4982 = vmatpush3.bf16.msra.mxu1 %v2653_v16  ;;  %4983 = vmatprep.mubr.msk.bf16.mxu1 %vm6071_vm0, %v6070_v25 }
 0x7b2   : > { %4987 = vmatprep.subr.bf16.mxu1 %v6070_v25  ;;  %5006 = vmatpush3.bf16.msra.mxu0 %v5304_v54 }
 0x7b3   : > { %5007 = vmatprep.subr.bf16.mxu0 %v6070_v25 }
 0x7c6   : > { %v2910_v5 = vpop.xlane.xlu0 %2909 }
 0x7c7   : > { %5373 = vrcp.f32 %v2910_v5 }
 0x7c8   : > { %v2913_v8 = vpop.xlane.xlu1 %2912 }
 0x7c9   : > { %5375 = vrcp.f32 %v2913_v8 }
 0x7ca   : > { %v2916_v22 = vpop.xlane.xlu0 %2915 }
 0x7cb   : > { %5377 = vrcp.f32 %v2916_v22 }
 0x7ce   : > { %v2919_v3 = vpop.xlane.xlu0 %2918 }
 0x7cf   : > { %5379 = vrcp.f32 %v2919_v3 }
 0x7d1   : > { %v5374_v23 = vpop.eup %5373 }
 0x7d2   : > { %v2936_v13 = vmul.f32 %v5374_v23, %v7207_v35  ;;  %v2922_v32 = vpop.xlane.xlu0 %2921  ;;  %v2651_v35 = vcombine.high %v2631_v19, %v2647_v20 }
 0x7d3   : > { %v5376_v11 = vpop.eup %5375  ;;  %5381 = vrcp.f32 %v2922_v32 }
 0x7d4   : > { %v2937_v14 = vmul.f32 %v5376_v11, %v7209_v36  ;;  %v2655_v45 = vpack.c.bf16 %v2651_v35, %v2583_v41 }
 0x7d5   : > { %v5378_v31 = vpop.eup %5377 }
 0x7d6   : > { %v2943_v29 = vpack.c.bf16 %v2937_v14, %v2936_v13  ;;  %v2938_v36 = vmul.f32 %v5378_v31, %v7213_v39 }
 0x7d8   : > { %4984 = vmatmul.mubr.msk.bf16.vlgmr.msra.gmra.mrb[24].mxu1 %vm2853_vm2, %v2943_v29 }
 0x7d9   : > { %v5380_v34 = vpop.eup %5379  ;;  %4988 = vmatpush3.bf16.msra.mxu1 %v2654_v30  ;;  %4989 = vmatprep.mubr.msk.bf16.mxu1 %vm6071_vm0, %v6070_v25 }
 0x7da   : > { %v2939_v38 = vmul.f32 %v5380_v34, %v7219_v43  ;;  %4993 = vmatprep.subr.bf16.mxu1 %v6070_v25 }
 0x7dc   : > { %v2925_v40 = vpop.xlane.xlu1 %2924  ;;  %v2944_v42 = vpack.c.bf16 %v2939_v38, %v2938_v36 }
 0x7dd   : > { %5383 = vrcp.f32 %v2925_v40  ;;  %v5382_v43 = vpop.eup %5381 }
 0x7de   : > { %v2940_v47 = vmul.f32 %v5382_v43, %v7223_v48  ;;  %v5305_v48 = vld [vmem:[%s6878_s8 + $0x20] sm:$0xff]  }
 0x7df   : > { %5008 = vmatpush3.bf16.msra.mxu0 %v5305_v48 }
 0x7e0   : > { %4990 = vmatmul.mubr.msk.bf16.vlgmr.msra.gmra.mrb[28].mxu1 %vm2853_vm2, %v2944_v42  ;;  %5009 = vmatprep.subr.bf16.mxu0 %v6070_v25 }
 0x7e1   : > { %4994 = vmatpush3.bf16.msra.mxu1 %v2655_v45  ;;  %4995 = vmatprep.mubr.msk.bf16.mxu1 %vm6071_vm0, %v6070_v25 }
 0x7e7   : > { %v5384_v46 = vpop.eup %5383 }
 0x7e8   : > { %v2941_v39 = vmul.f32 %v5384_v46, %v7227_v51  ;;  %v5306_v51 = vld [vmem:[%s6878_s8 + $0x28] sm:$0xff]  }
 0x7e9   : > { %5010 = vmatpush3.bf16.msra.mxu0 %v5306_v51 }
 0x7ea   : > { %v2945_v49 = vpack.c.bf16 %v2941_v39, %v2940_v47  ;;  %5011 = vmatprep.subr.bf16.mxu0 %v6070_v25 }
 0x7ec   : > { %4996 = vmatmul.mubr.msk.bf16.vlgmr.msra.gmra.mrb[32].mxu1 %vm2853_vm2, %v2945_v49 }
 0x883   : > { %v2983_v55 = vpop.f32.mrb[20].mxu1 }
 0x884   : > { %v4979_v56 = vpop.f32.mrb[21].mxu1 }
 0x885   : > { %v2986_v57 = vpop.f32.mrb[22].mxu1 }
 0x886   : > { %v4980_v58 = vpop.f32.mrb[23].mxu1 }
 0x8ab   : > { %v3027_v59 = vpop.f32.mrb[24].mxu1 }
 0x8ac   : > { %v4985_v60 = vpop.f32.mrb[25].mxu1 }
 0x8ad   : > { %v3030_v61 = vpop.f32.mrb[26].mxu1 }
 0x8ae   : > { %v4986_v62 = vpop.f32.mrb[27].mxu1 }
 0x8b3   : > { %v3071_v63 = vpop.f32.mrb[28].mxu1 }
 0x8b4   : > { %v3122_v0 = vcombine.low %v2983_v55, %v3071_v63  ;;  %v3123_v1 = vcombine.high %v2983_v55, %v3071_v63  ;;  %v4991_v2 = vpop.f32.mrb[29].mxu1 }
 0x8b5   : > { %v3074_v4 = vpop.f32.mrb[30].mxu1 }
 0x8b6   : > { %v3190_v9 = vcombine.low %v2986_v57, %v3074_v4  ;;  %v3191_v24 = vcombine.high %v2986_v57, %v3074_v4  ;;  %v4992_v10 = vpop.f32.mrb[31].mxu1  ;;  %v3130_v8 = vrot.slane %v3122_v0, %v7044_v37  ;;  %v3137_v22 = vrot.slane %v3123_v1, %v7044_v37 }
 0x8b8   : > { %v3198_v11 = vrot.slane %v3190_v9, %v7044_v37  ;;  %v3205_v12 = vrot.slane %v3191_v24, %v7044_v37 }
 0x8bf   : > { %v3115_v21 = vpop.f32.mrb[32].mxu1 }
 0x8c0   : > { %v3138_v15 = vcombine.low %v3027_v59, %v3115_v21  ;;  %v3139_v16 = vcombine.high %v3027_v59, %v3115_v21  ;;  %v4997_v5 = vpop.f32.mrb[33].mxu1  ;;  %v5307_v59 = vld [vmem:[%s6878_s8 + $0x30] sm:$0xff]  }
 0x8c1   : > { %v3118_v6 = vpop.f32.mrb[34].mxu1  ;;  %5012 = vmatpush3.bf16.msra.mxu0 %v5307_v59 }
 0x8c2   : > { %v3146_v7 = vrot.slane %v3138_v15, %v7044_v37  ;;  %v3153_v17 = vrot.slane %v3139_v16, %v7044_v37  ;;  %v3206_v18 = vcombine.low %v3030_v61, %v3118_v6  ;;  %v3207_v3 = vcombine.high %v3030_v61, %v3118_v6  ;;  %v4998_v19 = vpop.f32.mrb[35].mxu1  ;;  %5013 = vmatprep.subr.bf16.mxu0 %v6070_v25 }
 0x8c4   : > { %v3154_v20 = vcombine.low %v3130_v8, %v3146_v7  ;;  %v3155_v23 = vcombine.high %v3130_v8, %v3146_v7  ;;  %v3170_v26 = vcombine.low %v3137_v22, %v3153_v17  ;;  %v3171_v27 = vcombine.high %v3137_v22, %v3153_v17  ;;  %v5308_v17 = vld [vmem:[%s6878_s8 + $0x38] sm:$0xff]  }
 0x8c5   : > { %v3214_v13 = vrot.slane %v3206_v18, %v7044_v37  ;;  %v3221_v14 = vrot.slane %v3207_v3, %v7044_v37  ;;  %5014 = vmatpush3.bf16.msra.mxu0 %v5308_v17 }
 0x8c6   : > { %v3162_v28 = vrot.slane %v3154_v20, %v7047_v44  ;;  %v3169_v29 = vrot.slane %v3155_v23, %v7047_v44  ;;  %v3178_v30 = vrot.slane %v3170_v26, %v7047_v44  ;;  %v3185_v31 = vrot.slane %v3171_v27, %v7047_v44 }
 0x8c7   : > { %v3222_v32 = vcombine.low %v3198_v11, %v3214_v13  ;;  %v3223_v34 = vcombine.high %v3198_v11, %v3214_v13  ;;  %v3238_v38 = vcombine.low %v3205_v12, %v3221_v14  ;;  %v3239_v35 = vcombine.high %v3205_v12, %v3221_v14 }
 0x8c8   : > { %v3258_v36 = vcombine.low %v3162_v28, %v3169_v29  ;;  %v4723_v40 = vcombine.high %v3162_v28, %v3169_v29  ;;  %v3274_v41 = vcombine.low %v3178_v30, %v3185_v31  ;;  %v4724_v42 = vcombine.high %v3178_v30, %v3185_v31 }
 0x8c9   : > { %v3230_v45 = vrot.slane %v3222_v32, %v7047_v44  ;;  %v3237_v43 = vrot.slane %v3223_v34, %v7047_v44  ;;  %v3246_v46 = vrot.slane %v3238_v38, %v7047_v44  ;;  %v3253_v47 = vrot.slane %v3239_v35, %v7047_v44 }
 0x8ca   : > { %v3265_v39 = vrot.slane %v3258_v36, %v7044_v37  ;;  %v3273_v49 = vrot.slane %v4723_v40, %v7044_v37  ;;  %v3281_v50 = vrot.slane %v3274_v41, %v7044_v37  ;;  %v3289_v52 = vrot.slane %v4724_v42, %v7044_v37  ;;  %v4727_v41 = vld [vmem:[%s7737_s24] ss:$0 sm:$0xff] }
 0x8cb   : > { %v3326_v53 = vcombine.low %v3230_v45, %v3237_v43  ;;  %v4725_v54 = vcombine.high %v3230_v45, %v3237_v43  ;;  %v3342_v48 = vcombine.low %v3246_v46, %v3253_v47  ;;  %v4726_v51 = vcombine.high %v3246_v46, %v3253_v47  ;;  %v5397_v47 = vld [vmem:[#allocation2] sm:$0xff] }
 0x8cc   : > { %v3291_v55 = vcombine.high %v3265_v39, %v3273_v49  ;;  %v3307_v56 = vcombine.high %v3281_v50, %v3289_v52  ;;  %v3290_v57 = vcombine.low %v3265_v39, %v3273_v49  ;;  %v3306_v58 = vcombine.low %v3281_v50, %v3289_v52  ;;  %v5398_v52 = vld [vmem:[#allocation2 + $0x8] sm:$0xff] }
 0x8cd   : > { %v3333_v60 = vrot.slane %v3326_v53, %v7044_v37  ;;  %v3341_v61 = vrot.slane %v4725_v54, %v7044_v37  ;;  %v3349_v62 = vrot.slane %v3342_v48, %v7044_v37  ;;  %v3357_v63 = vrot.slane %v4726_v51, %v7044_v37  ;;  %v5309_v54 = vld [vmem:[%s6894_s2] ss:$8 sps:$4 sm:$0xff]   ;;  %v5311_v48 = vld [vmem:[%s6894_s2 + $0x4] ss:$8 sps:$4 sm:$0xff]   ;;  %v5314_v51 = vld [vmem:[%s6894_s2 + $0x14] ss:$8 sps:$4 sm:$0xff]  }
 0x8ce   : > { %v3305_v0 = vrot.slane %v3291_v55, %v7047_v44  ;;  %v3321_v1 = vrot.slane %v3307_v56, %v7047_v44  ;;  %v3298_v2 = vrot.slane %v3290_v57, %v7047_v44  ;;  %v3314_v4 = vrot.slane %v3306_v58, %v7047_v44  ;;  %3690 = vmatprep.subr.bf16.mxu1 %v5311_v48  ;;  %v5312_v55 = vld [vmem:[%s6894_s2 + $0x10] ss:$8 sps:$4 sm:$0xff]  }
 0x8cf   : > { %v3359_v9 = vcombine.high %v3333_v60, %v3341_v61  ;;  %v3375_v24 = vcombine.high %v3349_v62, %v3357_v63  ;;  %v3358_v10 = vcombine.low %v3333_v60, %v3341_v61  ;;  %v3374_v21 = vcombine.low %v3349_v62, %v3357_v63  ;;  %3691 = vmatpush1.bf16.msra.mxu1 %v5309_v54 }
 0x8d0   : > { %v3324_v15 = vcombine.low %v3305_v0, %v3321_v1  ;;  %v3322_v16 = vcombine.low %v3298_v2, %v3314_v4  ;;  %v3323_v5 = vcombine.high %v3298_v2, %v3314_v4  ;;  %v3325_v37 = vcombine.high %v3305_v0, %v3321_v1  ;;  %3692 = vmatprep.subr.bf16.mxu1 %v5314_v51  ;;  %v5315_v0 = vld [vmem:[%s6894_s2 + $0x20] ss:$8 sps:$4 sm:$0xff]   ;;  %v5317_v1 = vld [vmem:[%s6894_s2 + $0x24] ss:$8 sps:$4 sm:$0xff]   ;;  %v5318_v2 = vld [vmem:[%s6894_s2 + $0x30] ss:$8 sps:$4 sm:$0xff]  }
 0x8d1   : > { %v3373_v8 = vrot.slane %v3359_v9, %v7047_v44  ;;  %v3389_v22 = vrot.slane %v3375_v24, %v7047_v44  ;;  %v3366_v6 = vrot.slane %v3358_v10, %v7047_v44  ;;  %v3382_v7 = vrot.slane %v3374_v21, %v7047_v44  ;;  %v5320_v4 = vld [vmem:[%s6894_s2 + $0x34] ss:$8 sps:$4 sm:$0xff]   ;;  %v5323_v9 = vld [vmem:[%s6894_s2 + $0x44] ss:$8 sps:$4 sm:$0xff]   ;;  %v5321_v24 = vld [vmem:[%s6894_s2 + $0x40] ss:$8 sps:$4 sm:$0xff]  }
 0x8d2   : > { %v5326_v10 = vld [vmem:[%s6894_s2 + $0x54] ss:$8 sps:$4 sm:$0xff]   ;;  %v6077_v21 = vmov 0  }
 0x8d3   : > { %v3392_v18 = vcombine.low %v3373_v8, %v3389_v22  ;;  %v3391_v3 = vcombine.high %v3366_v6, %v3382_v7  ;;  %v3390_v19 = vcombine.low %v3366_v6, %v3382_v7  ;;  %v3393_v20 = vcombine.high %v3373_v8, %v3389_v22  ;;  %3693 = vmatpush1.bf16.msra.mxu1 %v5312_v55  ;;  %v5330_v8 = vld [vmem:[%s6894_s2 + $0x70] ss:$8 sps:$4 sm:$0xff]  }
 0x8d4   : > { %3694 = vmatprep.subr.bf16.mxu1 %v5317_v1  ;;  %3722 = vmatprep.mubr.bf16.mxu1 %v6077_v21 }
 0x8d5   : > { %v5267_v23 = vpack.i.bf16 %v3392_v18, %v3324_v15  ;;  %v5262_v25 = vpack.i.bf16 %v3391_v3, %v3323_v5  ;;  %v5272_v26 = vpack.i.bf16 %v3393_v20, %v3325_v37  ;;  %v5324_v15 = vld [vmem:[%s6894_s2 + $0x50] ss:$8 sps:$4 sm:$0xff]   ;;  %v5327_v5 = vld [vmem:[%s6894_s2 + $0x60] ss:$8 sps:$4 sm:$0xff]   ;;  %v5332_v37 = vld [vmem:[%s6894_s2 + $0x74] ss:$8 sps:$4 sm:$0xff]  }
 0x8d7   : > { %5268 = vrot.lane.b32.xlu1 %v5267_v23, %s6072_s20  ;;  %5263 = vrot.lane.b32.xlu0 %v5262_v25, %s6074_s15  ;;  %v4736_v23 = vld [vmem:[%s7738_s0] ss:$0 sm:$0xff]  ;;  %s7744_s15 = sld [smem:[#allocation79_spill]] (!%p4771_p8)  ;;  %s7745_s0 = sld [smem:[#allocation82_spill]] (!%p4771_p8) }
 0x8d8   : > { %3695 = vmatpush1.bf16.msra.mxu1 %v5315_v0 }
 0x8d9   : > { %3696 = vmatprep.subr.bf16.mxu1 %v5320_v4 }
 0x8db   : > { %5273 = vrot.lane.b32.xlu1 %v5272_v26, %s6073_s4 }
 0x8dc   : > { %3697 = vmatpush1.bf16.msra.mxu1 %v5318_v2 }
 0x8dd   : > { %3698 = vmatprep.subr.bf16.mxu1 %v5323_v9 }
 0x8e0   : > { %3699 = vmatpush1.bf16.msra.mxu1 %v5321_v24 }
 0x8e1   : > { %3700 = vmatprep.subr.bf16.mxu1 %v5326_v10 }
 0x8e4   : > { %3701 = vmatpush1.bf16.msra.mxu1 %v5324_v15 }
 0x949   : > { %v5269_v27 = vpop.permute.xlu1 %5268  ;;  %v5264_v11 = vpop.permute.xlu0 %5263 }
 0x94a   : > { %v5266_v12 = vunpack.i.h.bf16 %v5264_v11  ;;  %v5265_v13 = vunpack.i.l.bf16 %v5264_v11  ;;  %v5271_v44 = vunpack.i.h.bf16 %v5269_v27  ;;  %v5270_v14 = vunpack.i.l.bf16 %v5269_v27  ;;  %v4737_v11 = vld [vmem:[%s7739_s12] ss:$0 sm:$0xff]  ;;  %s7746_s12 = smov (!%p4771_p8), %s7745_s0 }
 0x94c   : > { %v3418_v28 = vsel %vm2656_vm1, %v3322_v16, %v5265_v13  ;;  %v3419_v29 = vsel %vm2656_vm1, %v3390_v19, %v5266_v12  ;;  %v5329_v16 = vld [vmem:[%s6894_s2 + $0x64] ss:$8 sps:$4 sm:$0xff]  }
 0x94d   : > { %v5274_v30 = vpop.permute.xlu1 %5273  ;;  %v3421_v34 = vsel %vm3420_vm3, %v3418_v28, %v5270_v14  ;;  %v3422_v38 = vsel %vm3420_vm3, %v3419_v29, %v5271_v44  ;;  %3702 = vmatprep.subr.bf16.mxu1 %v5329_v16  ;;  %v5333_v28 = vld [vmem:[%s6904_s27 + $0x40] sm:$0xff]  }
 0x94e   : > { %v5276_v31 = vunpack.i.h.bf16 %v5274_v30  ;;  %v5275_v32 = vunpack.i.l.bf16 %v5274_v30  ;;  %3703 = vmatpush1.bf16.msra.mxu1 %v5327_v5  ;;  %v5334_v29 = vld [vmem:[%s6904_s27] sm:$0xff]   ;;  %v5335_v30 = vld [vmem:[%s6904_s27 + $0x48] sm:$0xff]   ;;  %4855 = vmatprep.subr.bf16.mxu0 %v5333_v28 }
 0x94f   : > { %3704 = vmatprep.subr.bf16.mxu1 %v5332_v37 }
 0x950   : > { %v3424_v35 = vsel %vm3423_vm4, %v3421_v34, %v5275_v32  ;;  %v3425_v36 = vsel %vm3423_vm4, %v3422_v38, %v5276_v31  ;;  %v5336_v31 = vld [vmem:[%s6904_s27 + $0x8] sm:$0xff]   ;;  %v5337_v32 = vld [vmem:[%s6904_s27 + $0x50] sm:$0xff]   ;;  %v5339_v38 = vld [vmem:[%s6904_s27 + $0x58] sm:$0xff]  }
 0x951   : > { %v3426_v40 = vpack.c.bf16 %v3425_v36, %v3424_v35  ;;  %v5338_v34 = vld [vmem:[%s6904_s27 + $0x10] sm:$0xff]   ;;  %v5340_v35 = vld [vmem:[%s6904_s27 + $0x18] sm:$0xff]   ;;  %v5341_v36 = vld [vmem:[%s6904_s27 + $0x60] sm:$0xff]  }
 0x952   : > { %3705 = vmatpush1.bf16.msra.mxu1 %v5330_v8 }
 0x953   : > { %5016 = vmatmul.mubr.bf16.vlgmr.msra.gmra.mrb[8].mxu0 %v3426_v40  ;;  %v5342_v40 = vld [vmem:[%s6904_s27 + $0x20] sm:$0xff]  }
 0x954   : > { %4856 = vmatpush3.bf16.msra.mxu0 %v5334_v29 }
 0x955   : > { %4857 = vmatprep.subr.bf16.mxu0 %v5335_v30 }
 0x958   : > { %4858 = vmatpush3.bf16.msra.mxu0 %v5336_v31 }
 0x959   : > { %4859 = vmatprep.subr.bf16.mxu0 %v5337_v32 }
 0x95c   : > { %4860 = vmatpush3.bf16.msra.mxu0 %v5338_v34 }
 0x95d   : > { %4861 = vmatprep.subr.bf16.mxu0 %v5339_v38  ;;  %v4754_v38 = vld [vmem:[%s1347_s21] ss:$0 sm:$0xff] }
 0x960   : > { %4862 = vmatpush3.bf16.msra.mxu0 %v5340_v35 }
 0x961   : > { %4863 = vmatprep.subr.bf16.mxu0 %v5341_v36 }
 0x964   : > { %4864 = vmatpush3.bf16.msra.mxu0 %v5342_v40 }
 0xa26   : > { %v3532_v42 = vpop.f32.mrb[8].mxu0 }
 0xa27   : > { %v3533_v45 = vadd.f32 %v4727_v41, %v3532_v42  ;;  %v5017_v43 = vpop.f32.mrb[9].mxu0  ;;  %v5344_v42 = vld [vmem:[%s6904_s27 + $0x28] sm:$0xff]  }
 0xa28   : > { %v3535_v46 = vpop.f32.mrb[10].mxu0  ;;  %v5346_v43 = vld [vmem:[%s6904_s27 + $0x30] sm:$0xff]  }
 0xa29   : > { %v7344_v39 = vadd.f32 %v5397_v47, %v3533_v45  ;;  %v3536_v49 = vadd.f32 %v4727_v41, %v3535_v46  ;;  %v5018_v50 = vpop.f32.mrb[11].mxu0  ;;  %v5343_v41 = vld [vmem:[%s6904_s27 + $0x68] sm:$0xff]   ;;  %v5345_v45 = vld [vmem:[%s6904_s27 + $0x70] sm:$0xff]   ;;  %v5347_v46 = vld [vmem:[%s6904_s27 + $0x78] sm:$0xff]  }
 0xa2a   : > { %4865 = vmatprep.subr.bf16.mxu0 %v5343_v41  ;;  %v5348_v47 = vld [vmem:[%s6904_s27 + $0x38] sm:$0xff]   ;;  %s7747_s27 = sld [smem:[#allocation80_spill]] (!%p4771_p8) }
 0xa2b   : > { %v7346_v53 = vadd.f32 %v5398_v52, %v3536_v49  ;;  %3543 = vadd.xlane.f32.xlu1 %v7344_v39  ;;  %4866 = vmatpush3.bf16.msra.mxu0 %v5344_v42  ;;  %v3602_v49 = vsub.s32 0, %v7041_v33  ;;  %v3598_v50 = vld [vmem:[%s6901_s28] sm:$0x3]  ;;  %v3606_v52 = vsub.s32 1, %v7041_v33  ;;  %s7742_s28 = sld [smem:[#allocation78_spill]] (!%p4771_p8) }
 0xa2c   : > { %4867 = vmatprep.subr.bf16.mxu0 %v5345_v45 }
 0xa2d   : > { %3545 = vadd.xlane.f32.xlu0 %v7346_v53  ;;  %v3603_v54 = vrot.slane %v3598_v50, %v3602_v49  ;;  %v3607_v48 = vrot.slane %v3598_v50, %v3606_v52  ;;  %v6078_v50 = vmov (!%p4771_p8), 0.0  }
 0xa2e   : > { %5039 = vmatprep.subr.bf16.mxu1 (!%p4771_p8), %v6078_v50 }
 0xa2f   : > { %4868 = vmatpush3.bf16.msra.mxu0 %v5346_v43 }
 0xa30   : > { %4869 = vmatprep.subr.bf16.mxu0 %v5347_v46 }
 0xa31   : > { %s7743_s5 = smov (!%p4771_p8), %s7742_s28  ;;  %v5399_v49 = vld [vmem:[%s7742_s28] sm:$0xff] (!%p4771_p8)  }
 0xa32   : > { %v5402_v52 = vld [vmem:[%s7743_s5 + $0x18] sm:$0xff] (!%p4771_p8)  }
 0xa33   : > { %4870 = vmatpush3.bf16.msra.mxu0 %v5348_v47 }
 0xa34   : > { %5019 = vmatprep.subr.bf16.mxu0 (!%p4771_p8), %v6078_v50 }
 0xab8   : > { %v3544_v56 = vpop.xlane.xlu1 %3543 }
 0xab9   : > { %v3547_v57 = vmul.f32 0.0078125, %v3544_v56 }
 0xaba   : > { %v3546_v58 = vpop.xlane.xlu0 %3545 }
 0xabb   : > { %v3549_v59 = vsub.f32 %v7344_v39, %v3547_v57  ;;  %v3548_v60 = vmul.f32 0.0078125, %v3546_v58 }
 0xabd   : > { %v3550_v61 = vsub.f32 %v7346_v53, %v3548_v60  ;;  %v3551_v62 = vmul.f32 %v3549_v59, %v3549_v59 }
 0xabf   : > { %3553 = vadd.xlane.f32.xlu0 %v3551_v62  ;;  %v3552_v63 = vmul.f32 %v3550_v61, %v3550_v61 }
 0xac3   : > { %3555 = vadd.xlane.f32.xlu0 %v3552_v63 }
 0xb4c   : > { %v3554_v22 = vpop.xlane.xlu0 %3553 }
 0xb4d   : > { %v3557_v6 = vmul.f32 0.0078125, %v3554_v22 }
 0xb4f   : > { %v3559_v7 = vadd.f32 1e-05, %v3557_v6 }
 0xb50   : > { %v3556_v17 = vpop.xlane.xlu0 %3555 }
 0xb51   : > { %5385 = vrsqrt.f32 %v3559_v7  ;;  %v3558_v18 = vmul.f32 0.0078125, %v3556_v17 }
 0xb53   : > { %v3560_v3 = vadd.f32 1e-05, %v3558_v18 }
 0xb55   : > { %5387 = vrsqrt.f32 %v3560_v3 }
 0xb5b   : > { %v5386_v19 = vpop.eup %5385 }
 0xb5c   : > { %v3563_v20 = vmul.f32 %v5386_v19, %v3549_v59 }
 0xb5e   : > { %v3571_v27 = vmul.f32 %v4736_v23, %v3563_v20 }
 0xb5f   : > { %v5388_v25 = vpop.eup %5387 }
 0xb60   : > { %v3564_v26 = vmul.f32 %v5388_v25, %v3550_v61  ;;  %v3579_v13 = vadd.f32 %v4737_v11, %v3571_v27 }
 0xb62   : > { %v3572_v12 = vmul.f32 %v4736_v23, %v3564_v26 }
 0xb64   : > { %v3580_v44 = vadd.f32 %v4737_v11, %v3572_v12 }
 0xb66   : > { %v3581_v14 = vpack.c.bf16 %v3580_v44, %v3579_v13 }
 0xb68   : > { %3723 = vmatmul.mubr.bf16.vlgmr.msra.gmra.mrb[36].mxu1 %v3581_v14 }
 0xb69   : > { %5047 = vmatprep.mubr.msk.bf16.mxu1 (!%p4771_p8), %vm6079_vm5, %v6078_v50 }
 0xc3b   : > { %v3724_v51 = vpop.f32.mrb[36].mxu1 }
 0xc3c   : > { %v3725_v55 = vadd.f32 %v3724_v51, %v3603_v54  ;;  %v3726_v56 = vpop.f32.mrb[37].mxu1  ;;  %v5405_v51 = vld [vmem:[%s7743_s5 + $0x30] sm:$0xff] (!%p4771_p8)  }
 0xc3d   : > { %v3727_v57 = vadd.f32 %v3726_v56, %v3607_v48  ;;  %v3728_v58 = vpop.f32.mrb[38].mxu1 }
 0xc3e   : > { %v3737_v59 = vmul.f32 0.044715, %v3725_v55  ;;  %v3729_v60 = vadd.f32 %v3728_v58, %v3603_v54  ;;  %v3730_v61 = vpop.f32.mrb[39].mxu1  ;;  %v3733_v26 = vmul.f32 0.5, %v3725_v55  ;;  %v5403_v54 = vld [vmem:[%s7743_s5 + $0x20] sm:$0xff] (!%p4771_p8)  }
 0xc3f   : > { %v3738_v62 = vmul.f32 0.044715, %v3727_v57  ;;  %v3731_v63 = vadd.f32 %v3730_v61, %v3607_v48  ;;  %v3734_v12 = vmul.f32 0.5, %v3727_v57  ;;  %v5404_v48 = vld [vmem:[%s7743_s5 + $0x28] sm:$0xff] (!%p4771_p8)  }
 0xc40   : > { %v3741_v0 = vmul.f32 %v3737_v59, %v3725_v55  ;;  %v3739_v1 = vmul.f32 0.044715, %v3729_v60  ;;  %v3735_v27 = vmul.f32 0.5, %v3729_v60 }
 0xc41   : > { %v3742_v2 = vmul.f32 %v3738_v62, %v3727_v57  ;;  %v3740_v4 = vmul.f32 0.044715, %v3731_v63  ;;  %v3736_v13 = vmul.f32 0.5, %v3731_v63 }
 0xc42   : > { %v3745_v9 = vmul.f32 %v3741_v0, %v3725_v55  ;;  %v3743_v24 = vmul.f32 %v3739_v1, %v3729_v60 }
 0xc43   : > { %v3746_v10 = vmul.f32 %v3742_v2, %v3727_v57  ;;  %v3744_v33 = vmul.f32 %v3740_v4, %v3731_v63 }
 0xc44   : > { %v3749_v21 = vadd.f32 %v3745_v9, %v3725_v55  ;;  %v3747_v15 = vmul.f32 %v3743_v24, %v3729_v60  ;;  %v5406_v55 = vld [vmem:[%s7743_s5 + $0x38] sm:$0xff] (!%p4771_p8)  }
 0xc45   : > { %v3748_v16 = vmul.f32 %v3744_v33, %v3731_v63  ;;  %v3750_v5 = vadd.f32 %v3746_v10, %v3727_v57  ;;  %v4772_v57 = vld [vmem:[%s7744_s15] ss:$0 sm:$0xff] (!%p4771_p8) }
 0xc46   : > { %v3753_v37 = vmul.f32 0.7978846, %v3749_v21  ;;  %v3751_v8 = vadd.f32 %v3747_v15, %v3729_v60 }
 0xc47   : > { %v3752_v22 = vadd.f32 %v3748_v16, %v3731_v63  ;;  %v3754_v6 = vmul.f32 0.7978846, %v3750_v5 }
 0xc48   : > { %5389 = vtanh.f32 %v3753_v37  ;;  %v3755_v7 = vmul.f32 0.7978846, %v3751_v8  ;;  %v5407_v37 = vld [vmem:[%s7745_s0] sm:$0xff] (!%p4771_p8)   ;;  %v5408_v8 = vld [vmem:[%s7746_s12 + $0x8] sm:$0xff] (!%p4771_p8)  }
 0xc49   : > { %v3756_v17 = vmul.f32 0.7978846, %v3752_v22  ;;  %5391 = vtanh.f32 %v3754_v6  ;;  %5040 = vmatpush3.bf16.msra.mxu1 (!%p4771_p8), %v5407_v37  ;;  %v5409_v22 = vld [vmem:[%s7746_s12 + $0x10] sm:$0xff] (!%p4771_p8)   ;;  %v5410_v6 = vld [vmem:[%s7746_s12 + $0x18] sm:$0xff] (!%p4771_p8)  }
 0xc4a   : > { %5393 = vtanh.f32 %v3755_v7  ;;  %5041 = vmatprep.subr.bf16.mxu1 (!%p4771_p8), %v6078_v50 }
 0xc4b   : > { %5395 = vtanh.f32 %v3756_v17 }
 0xc4d   : > { %5042 = vmatpush3.bf16.msra.mxu1 (!%p4771_p8), %v5408_v8 }
 0xc4e   : > { %5043 = vmatprep.subr.bf16.mxu1 (!%p4771_p8), %v6078_v50 }
 0xc51   : > { %5044 = vmatpush3.bf16.msra.mxu1 (!%p4771_p8), %v5409_v22 }
 0xc52   : > { %v5390_v18 = vpop.eup %5389  ;;  %5045 = vmatprep.subr.bf16.mxu1 (!%p4771_p8), %v6078_v50 }
 0xc53   : > { %v5392_v3 = vpop.eup %5391  ;;  %v3761_v19 = vadd.f32 1.0, %v5390_v18 }
 0xc54   : > { %v5394_v20 = vpop.eup %5393  ;;  %v3762_v23 = vadd.f32 1.0, %v5392_v3 }
 0xc55   : > { %v5396_v25 = vpop.eup %5395  ;;  %v3763_v11 = vadd.f32 1.0, %v5394_v20  ;;  %v3765_v14 = vmul.f32 %v3761_v19, %v3733_v26  ;;  %5046 = vmatpush3.bf16.msra.mxu1 (!%p4771_p8), %v5410_v6 }
 0xc56   : > { %v3764_v44 = vadd.f32 1.0, %v5396_v25  ;;  %v3766_v29 = vmul.f32 %v3762_v23, %v3734_v12  ;;  %v4781_v25 = vld [vmem:[%s7747_s27] ss:$0 sm:$0xff] (!%p4771_p8) }
 0xc57   : > { %v3767_v28 = vmul.f32 %v3763_v11, %v3735_v27  ;;  %v4782_v27 = vld [vmem:[%s7748_s1] ss:$0 sm:$0xff] (!%p4771_p8) }
 0xc58   : > { %v3768_v30 = vmul.f32 %v3764_v44, %v3736_v13 }
 0xc59   : > { %v3769_v31 = vpack.c.bf16 %v3767_v28, %v3765_v14 }
 0xc5a   : > { %v3770_v32 = vpack.c.bf16 %v3768_v30, %v3766_v29 }
 0xc5c   : > { %3938 = vmatprep.mubr.bf16.mxu0 %v3770_v32 }
 0xc5d   : > { %3939 = vmatmul.mubr.bf16.vlgmr.msra.gmra.mrb[12].mxu0 %v3769_v31 }
 0xc5e   : > { %5020 = vmatpush3.bf16.msra.mxu0 (!%p4771_p8), %v5399_v49  ;;  %5035 = vmatprep.mubr.msk.bf16.mxu0 (!%p4771_p8), %vm6079_vm5, %v6078_v50 }
 0xc5f   : > { %5021 = vmatprep.subr.bf16.mxu0 (!%p4771_p8), %v6078_v50 }
 0xd30   : > { %v4871_v34 = vpop.f32.mrb[12].mxu0 }
 0xd31   : > { %v4872_v35 = vpop.f32.mrb[13].mxu0 }
 0xd32   : > { %v4873_v36 = vadd.f32 %v4872_v35, %v4871_v34  ;;  %v4874_v40 = vpop.f32.mrb[14].mxu0 }
 0xd33   : > { %v4875_v41 = vpop.f32.mrb[15].mxu0 }
 0xd34   : > { %v3941_v42 = vadd.f32 %v4873_v36, %v4754_v38  ;;  %v4876_v45 = vadd.f32 %v4875_v41, %v4874_v40  ;;  %3954 = sbr.rel (%p4771_p8) target bundleno = 4185 (0x1059), region = 196 }
 0xd36   : > { %v3947_v43 = vadd.f32 %v3941_v42, %v7344_v39  ;;  %v3944_v46 = vadd.f32 %v4876_v45, %v4754_v38  ;;  %v5400_v39 = vld [vmem:[%s7743_s5 + $0x8] sm:$0xff] (!%p4771_p8)  }
 0xd37   : > { %5022 = vmatpush3.bf16.msra.mxu0 (!%p4771_p8), %v5400_v39 }
 0xd38   : > { %3949 = vst [vmem:[#allocation2] sm:$0xff] %v3947_v43  ;;  %v3948_v47 = vadd.f32 %v3944_v46, %v7346_v53  ;;  %v5401_v53 = vld [vmem:[%s7743_s5 + $0x10] sm:$0xff] (!%p4771_p8)   ;;  %5023 = vmatprep.subr.bf16.mxu0 (!%p4771_p8), %v6078_v50 }
 0xd3a   : > { %3950 = vst [vmem:[#allocation2 + $0x8] sm:$0xff] %v3948_v47  ;;  %v3955_v56 = vpack.c.bf16 (!%p4771_p8), %v3948_v47, %v3947_v43 }
 0xd3b   : > { %5024 = vmatpush3.bf16.msra.mxu0 %v5401_v53 }
 0xd3c   : > { %5025 = vmatprep.subr.bf16.mxu0 %v6078_v50 }
 0xd3f   : > { %5026 = vmatpush3.bf16.msra.mxu0 %v5402_v52  ;;  %v4783_v52 = vld [vmem:[%s7749_s6] ss:$0 sm:$0xff] }
 0xd40   : > { %5027 = vmatprep.subr.bf16.mxu0 %v6078_v50 }
 0xd43   : > { %5028 = vmatpush3.bf16.msra.mxu0 %v5403_v54 }
 0xd44   : > { %5029 = vmatprep.subr.bf16.mxu0 %v6078_v50 }
 0xd47   : > { %5030 = vmatpush3.bf16.msra.mxu0 %v5404_v48 }
 0xd48   : > { %5031 = vmatprep.subr.bf16.mxu0 %v6078_v50 }
 0xd4b   : > { %5032 = vmatpush3.bf16.msra.mxu0 %v5405_v51 }
 0xd4c   : > { %5033 = vmatprep.subr.bf16.mxu0 %v6078_v50 }
 0xd4f   : > { %5034 = vmatpush3.bf16.msra.mxu0 %v5406_v55 }
 0xd52   : > { %5036 = vmatmul.mubr.bf16.vlgmr.msra.gmra.mrb[0].mxu0 %v3955_v56 }
 0xe25   : > { %v4061_v58 = vpop.f32.mrb[0].mxu0 }
 0xe26   : > { %v4062_v59 = vadd.f32 %v4772_v57, %v4061_v58  ;;  %v5037_v60 = vpop.f32.mrb[1].mxu0 }
 0xe27   : > { %v4064_v61 = vpop.f32.mrb[2].mxu0 }
 0xe28   : > { %v4065_v62 = vadd.f32 %v4772_v57, %v4064_v61  ;;  %v5038_v63 = vpop.f32.mrb[3].mxu0  ;;  %v4070_v0 = vsel %vm3420_vm3, %v4062_v59, 0.0 }
 0xe29   : > { %4071 = vadd.xlane.f32.xlu0 %v4070_v0 }
 0xe2a   : > { %v4073_v1 = vsel %vm3420_vm3, %v4065_v62, 0.0 }
 0xe2d   : > { %4074 = vadd.xlane.f32.xlu0 %v4073_v1 }
 0xeb6   : > { %v4072_v2 = vpop.xlane.xlu0 %4071 }
 0xeb7   : > { %v4077_v4 = vmul.f32 0.015625, %v4072_v2 }
 0xeb9   : > { %v4079_v9 = vsub.f32 %v4062_v59, %v4077_v4 }
 0xeba   : > { %v4075_v24 = vpop.xlane.xlu0 %4074 }
 0xebb   : > { %v4078_v10 = vmul.f32 0.015625, %v4075_v24  ;;  %v4081_v33 = vmul.f32 %v4079_v9, %v4079_v9 }
 0xebd   : > { %v4080_v21 = vsub.f32 %v4065_v62, %v4078_v10  ;;  %v4083_v15 = vsel %vm3420_vm3, %v4081_v33, 0.0 }
 0xebe   : > { %4084 = vadd.xlane.f32.xlu1 %v4083_v15 }
 0xebf   : > { %v4082_v16 = vmul.f32 %v4080_v21, %v4080_v21 }
 0xec1   : > { %v4086_v5 = vsel %vm3420_vm3, %v4082_v16, 0.0 }
 0xec2   : > { %4087 = vadd.xlane.f32.xlu1 %v4086_v5 }
 0xf4b   : > { %v4085_v7 = vpop.xlane.xlu1 %4084 }
 0xf4c   : > { %v4089_v17 = vmul.f32 0.015625, %v4085_v7 }
 0xf4e   : > { %v4091_v18 = vadd.f32 1e-05, %v4089_v17 }
 0xf4f   : > { %v4088_v3 = vpop.xlane.xlu1 %4087 }
 0xf50   : > { %5411 = vrsqrt.f32 %v4091_v18  ;;  %v4090_v19 = vmul.f32 0.015625, %v4088_v3 }
 0xf52   : > { %v4092_v20 = vadd.f32 1e-05, %v4090_v19 }
 0xf54   : > { %5413 = vrsqrt.f32 %v4092_v20 }
 0xf5a   : > { %v5412_v23 = vpop.eup %5411 }
 0xf5b   : > { %v4095_v26 = vmul.f32 %v5412_v23, %v4079_v9 }
 0xf5d   : > { %v4103_v11 = vmul.f32 %v4781_v25, %v4095_v26 }
 0xf5e   : > { %v5414_v12 = vpop.eup %5413 }
 0xf5f   : > { %v4111_v13 = vadd.f32 %v4782_v27, %v4103_v11  ;;  %v4096_v44 = vmul.f32 %v5414_v12, %v4080_v21 }
 0xf61   : > { %v4104_v14 = vmul.f32 %v4781_v25, %v4096_v44  ;;  %v4115_v28 = vmul.f32 0.044715, %v4111_v13  ;;  %v4113_v46 = vmul.f32 0.5, %v4111_v13 }
 0xf63   : > { %v4112_v29 = vadd.f32 %v4782_v27, %v4104_v14  ;;  %v4117_v30 = vmul.f32 %v4115_v28, %v4111_v13 }
 0xf65   : > { %v4116_v31 = vmul.f32 0.044715, %v4112_v29  ;;  %v4119_v32 = vmul.f32 %v4117_v30, %v4111_v13  ;;  %v4114_v47 = vmul.f32 0.5, %v4112_v29 }
 0xf67   : > { %v4118_v34 = vmul.f32 %v4116_v31, %v4112_v29  ;;  %v4121_v38 = vadd.f32 %v4119_v32, %v4111_v13 }
 0xf69   : > { %v4120_v35 = vmul.f32 %v4118_v34, %v4112_v29  ;;  %v4123_v36 = vmul.f32 0.7978846, %v4121_v38 }
 0xf6b   : > { %v4122_v40 = vadd.f32 %v4120_v35, %v4112_v29  ;;  %5415 = vtanh.f32 %v4123_v36 }
 0xf6d   : > { %v4124_v41 = vmul.f32 0.7978846, %v4122_v40 }
 0xf6f   : > { %5417 = vtanh.f32 %v4124_v41 }
 0xf75   : > { %v5416_v42 = vpop.eup %5415 }
 0xf76   : > { %v4127_v45 = vadd.f32 1.0, %v5416_v42 }
 0xf78   : > { %v4129_v50 = vmul.f32 %v4127_v45, %v4113_v46 }
 0xf79   : > { %v5418_v43 = vpop.eup %5417 }
 0xf7a   : > { %v4128_v49 = vadd.f32 1.0, %v5418_v43 }
 0xf7c   : > { %v4130_v39 = vmul.f32 %v4128_v49, %v4114_v47 }
 0xf7e   : > { %v4131_v53 = vpack.c.bf16 %v4130_v39, %v4129_v50 }
 0xf80   : > { %5048 = vmatmul.mubr.msk.bf16.vlgmr.msra.gmra.mrb[0].mxu1 %vm3420_vm3, %v4131_v53 }
0x1053   : > { %v4208_v54 = vpop.f32.mrb[0].mxu1 }
0x1054   : > { %v4209_v48 = vadd.f32 %v4783_v52, %v4208_v54  ;;  %v5049_v51 = vpop.f32.mrb[1].mxu1 }
0x1055   : > { %v4211_v55 = vpop.f32.mrb[2].mxu1 }
0x1056   : > { %4215 = vst [vmem:[%s6936_s22] sm:$0xff] %v4209_v48  ;;  %v4212_v56 = vadd.f32 %v4783_v52, %v4211_v55  ;;  %v5050_v57 = vpop.f32.mrb[3].mxu1 }
0x1058   : > { %4216 = vst [vmem:[%s6936_s22 + $0x8] sm:$0xff] %v4212_v56 }
0x1059 PF: > { %s7750_s11 = sld [smem:[#allocation46_spill]]  ;;  %s7751_s13 = sld [smem:[#allocation41_spill]] }
0x105a   : > { %s7752_s18 = sld [smem:[#allocation55_spill]]  ;;  %s4231_s10 = sshll.u32 %s6936_s22, 4  ;;  %s7461_s10 = int_to_ptr.vmem [resolvable:$true] %s4231_s10 }
0x105b   : > { %s7753_s4 = sld [smem:[#allocation84_spill]]  ;;  %s5893_s7 = scalar_lea.vmem %s7461_s10, 256 }
0x105c   : > { %p5894_p5 = scmp.ne.s32.totalorder %s7461_s10, %s5893_s7  ;;  %s6080_s8 = smov [#allocation29]  }
0x105d   : > { %s5897_s29 = sshll.u32 %s6080_s8, 4  ;;  %s5898_s29 = int_to_ptr.vmem [resolvable:$false] %s5897_s29 }
0x105e   : > { %s5899_s17 = scalar_lea.vmem %s5898_s29, 512  ;;  %p5900_p6 = scmp.lt.s32.totalorder %s7461_s10, %s5898_s29 }
0x105f   : > { %s4802_s14 = sshll.u32 %s7750_s11, 8  ;;  %s7755_s24 = sand.u32 1, %s7751_s13  }
0x1060   : > { %s7465_s0 = scalar_lea.sflag [#allocation5], %s7755_s24  ;;  %p7756_p3 = scmp.ne.s32.totalorder %s7752_s18, 0 }
0x1061   : > { %s7754_s23 = smov %s7753_s4  ;;  %s7458_s15 = scalar_lea.hbm %s7753_s4, %s4802_s14 }
0x1062   : > { %p5895_p10 = pnand %p5894_p5, %p7756_p3  ;;  %p5901_p7 = scmp.lt.s32.totalorder %s5899_s17, %s5893_s7 }
0x1064   : > { %p5896_p1 = pneg %p5895_p10  ;;  %p5902_p2 = por %p5901_p7, %p5900_p6 }
0x1066   : > { %p5903_p9 = pnand %p5902_p2, %p5896_p1 }
0x1068   : > { %5906 = shalt.err (!%p5903_p9)
}
0x1069   : > { %s5907_s22 = scalar_lea.hbm %s7458_s15, 256  ;;  %s5911_s28 = scalar_lea.hbm %s7754_s23, 512 }
0x106a   : > { %p5908_p12 = scmp.ne.s32.totalorder %s7458_s15, %s5907_s22  ;;  %p5912_p4 = scmp.lt.u32.totalorder %s7458_s15, %s7754_s23 }
0x106b   : > { %p5913_p13 = scmp.lt.u32.totalorder %s5911_s28, %s5907_s22  ;;  %p5915_p5 = scmp.lt.u32.totalorder %s5907_s22, %s7458_s15 }
0x106c   : > { %p5909_p11 = pnand %p5908_p12, %p7756_p3 }
0x106d   : > { %p5914_p8 = por %p5913_p13, %p5912_p4 }
0x106e   : > { %p5910_p0 = pneg %p5909_p11 }
0x106f   : > { %p5916_p10 = por %p5915_p5, %p5914_p8 }
0x1071   : > { %p5917_p1 = pnand %p5916_p10, %p5910_p0 }
0x1073   : > { %5920 = shalt.err (!%p5917_p1)
}
0x1074   : > { %s6081_s30 = smov 128   ;;  %s6082_s16 = smov 8  }
0x1075   : > { %5089 = dma.vmem_to_hbm [thread:$0]  (%p7756_p3), %s7461_s10, 256, %s7458_s15, %s7465_s0, %s6081_s30, %s6081_s30, %s6082_s16  }
0x1076 PF: > { %s7757_s1 = sld [smem:[#allocation48_spill]]  ;;  %s7758_s25 = sld [smem:[#allocation40_spill]] }
0x1077   : > { %s7759_s26 = sld [smem:[#allocation56_spill]] }
0x107c   : > { %p5152_p6 = scmp.ge.s32.totalorder %s7757_s1, 2  ;;  %s4246_s6 = sand.u32 1, %s7758_s25  }
0x107d   : > { %p7760_p7 = scmp.ne.s32.totalorder %s7759_s26, 0  ;;  %s4247_s11 = scalar_lea.sflag [#allocation5], %s4246_s6 }
0x107f   : > { %p5142_p2 = pnand %p5152_p6, %p7760_p7 }
0x1081   : > { %6002 = dma.done.wait (!%p5142_p2), %s4247_s11, 256  }
0x1082   : > { %6004 = vsyncadd (!%p5142_p2), %s4247_s11, 4294967040  ;;  %s62_s2 = sadd.s32 1, %s7757_s1   ;;  %s7761_s27 = sld [smem:[#allocation41_spill]] }
0x1083   : > { %p59_p9 = scmp.ge.s32.totalorder %s62_s2, 6   ;;  %s7762_s3 = sld [smem:[#allocation42_spill]] }
0x1084   : > { %s7763_s7 = sld [smem:[#allocation54_spill]]  ;;  %s7764_s28 = sld [smem:[#allocation43_spill]] }
0x1085   : > { %s7765_s8 = sld [smem:[#allocation44_spill]]  ;;  %s7766_s4 = sld [smem:[#allocation52_spill]] }
0x1086   : > { %s7767_s0 = sld [smem:[#allocation47_spill]]  ;;  %s7768_s13 = sld [smem:[#allocation50_spill]] }
0x1087   : > { %s7769_s30 = sld [smem:[#allocation51_spill]]  ;;  %s7770_s29 = smov %s6039_s9 }
0x1088   :  { %61 = sbr.rel (!%p59_p9) target bundleno = 51 (0x33), region = 346 }
0x108c   : > { %s7771_s9 = smov %s7768_s13 }
0x108f   :  { %4252 = vsyncpa [#allocation4], 1 }
0x1090   :  { %4254 = vsyncpa [#allocation4 + $0x1], 1 }
0x1091   :  { %4255 = vsyncpa [#allocation7], 1 }
0x1092   :  { %4256 = vsyncpa [#allocation10], 1 }
0x1093   :  { %4258 = vsyncpa [#allocation10 + $0x1], 1 }
0x1094   :  { %4259 = vsyncpa [#allocation13], 1 }
0x1095   :  { %4261 = vsyncpa [#allocation13 + $0x1], 1 }
0x1096   :  { %4262 = vsyncpa [#allocation16], 1 }
0x1097   :  { %4264 = vsyncpa [#allocation16 + $0x1], 1 }
0x1098   :  { %4265 = vsyncpa [#allocation19], 1 }
0x1099   :  { %4267 = vsyncpa [#allocation19 + $0x1], 1 }
0x109a   :  { %4268 = vsyncpa [#allocation22], 1 }
0x109b   :  { %4270 = vsyncpa [#allocation22 + $0x1], 1 }
0x109c   :  { %4271 = vsyncpa [#allocation25], 1 }
0x109d   :  { %4273 = vsyncpa [#allocation25 + $0x1], 1 }
0x109e   :  { %4274 = vsyncpa [#allocation28], 1 }
0x109f   :  { %4276 = vsyncpa [#allocation28 + $0x1], 1 }
0x10a0   :  { %4277 = vsyncpa [#allocation5], 1 }
0x10a1   :  { %4279 = vsyncpa [#allocation5 + $0x1], 1 }

</bundles_post_ra>
